<compile_context>
chip_gen: v7x
topology: tpu7x:2x2x1
jax: 0.10.0
libtpu: 0.0.40
codegen_flags: <defaults>
</compile_context>

<pallas_src>
import numpy as np

import jax
import jax.numpy as jnp
from jax.experimental import pallas as pl
from jax.experimental.pallas import tpu as pltpu

_EPS = 1e-5      # BatchNorm2d default eps
_SLOPE = 0.2     # LeakyReLU negative slope


# ---------------------------------------------------------------------------
# Parameters (PyTorch layouts) and host-side packing into GEMM matrices.
# ---------------------------------------------------------------------------
def init_generator_params(latent_dim=32, channel=1, seed=0):
    """Random parameters; ConvTranspose2d weights in PyTorch (Cin,Cout,4,4)."""
    hidden_dims = [latent_dim] + channel * [128, 64, 32, 16, 1]
    key = jax.random.PRNGKey(seed)
    params = []
    n_layers = len(hidden_dims) - 1
    for idx, (cin, cout) in enumerate(zip(hidden_dims[:-1], hidden_dims[1:])):
        key, k1, k2, k3, k4 = jax.random.split(key, 5)
        p = {
            "w_pt": jax.random.normal(k1, (cin, cout, 4, 4), jnp.float32) * 0.05,
            # Conv bias; for BN layers it cancels exactly under train-mode BN,
            # so the kernel only uses the final (no-BN) layer's bias.
            "b": jax.random.normal(k2, (cout,), jnp.float32) * 0.05,
        }
        if idx < n_layers - 1:
            p["gamma"] = 1.0 + 0.1 * jax.random.normal(k3, (cout,), jnp.float32)
            p["beta"] = 0.1 * jax.random.normal(k4, (cout,), jnp.float32)
        params.append(p)
    return params


def _build_banded_weight(w_pt, s_in):
    """ConvTranspose2d(k=4,s=2,p=1) weight (Cin,Cout,4,4) ->
    banded GEMM matrix (s_in*Cin, 4*s_out*Cout), s_out = 2*s_in.

    M[iw*Cin + ci, kh*(s_out*Cout) + ow*Cout + co] = W[ci, co, kh, kw]
    with kw = ow - 2*iw + 1 (zero outside [0,4)), so one GEMM does the channel
    contraction AND the width-direction overlap-add for all 4 kh taps at once.
    """
    cin, cout = w_pt.shape[0], w_pt.shape[1]
    s_out = 2 * s_in
    w = np.transpose(np.asarray(w_pt, np.float32), (2, 3, 0, 1))   # (kh,kw,ci,co)
    m = np.zeros((s_in, cin, 4, s_out, cout), np.float32)
    for iw in range(s_in):
        for kw in range(4):
            ow = 2 * iw - 1 + kw
            if 0 <= ow < s_out:
                m[iw, :, :, ow, :] = np.transpose(w[:, kw], (1, 0, 2))
    return m.reshape(s_in * cin, 4 * s_out * cout)


def pack_generator_params(params, latent_dim=32, channel=1):
    """Pack PyTorch-layout params into kernel-ready (bf16) banded GEMM weights."""
    hidden_dims = [latent_dim] + channel * [128, 64, 32, 16, 1]
    n_layers = len(hidden_dims) - 1
    ms, gammas, betas = [], [], []
    bias_row = None
    for l, p in enumerate(params):
        cout = hidden_dims[l + 1]
        s_in = 2 ** l
        ms.append(jnp.asarray(_build_banded_weight(p["w_pt"], s_in), jnp.bfloat16))
        if l < n_layers - 1:
            gammas.append(jnp.asarray(p["gamma"], jnp.float32).reshape(1, cout))
            betas.append(jnp.asarray(p["beta"], jnp.float32).reshape(1, cout))
        else:
            # Final-layer bias, pre-broadcast over the [even|odd] x (ow, c) lanes.
            s_out = 2 * s_in
            bias_row = jnp.tile(
                jnp.asarray(p["b"], jnp.float32).reshape(1, cout), (1, 2 * s_out))
    return {"m": ms, "gamma": gammas, "beta": betas, "bias_row": bias_row,
            "hidden_dims": hidden_dims}


# ---------------------------------------------------------------------------
# Fused generator kernel.
# ---------------------------------------------------------------------------
def _make_generator_kernel(n_batch, chans):
    n_layers = len(chans) - 1
    n_bn = n_layers - 1
    for c in chans[1:]:
        assert c & (c - 1) == 0, "channel widths must be powers of two"

    def kernel(*refs):
        pos = 0
        z_ref = refs[pos]; pos += 1
        m_refs = refs[pos:pos + n_layers]; pos += n_layers
        g_refs = refs[pos:pos + n_bn]; pos += n_bn
        bt_refs = refs[pos:pos + n_bn]; pos += n_bn
        bias_ref = refs[pos]; pos += 1
        out_ref = refs[pos]; pos += 1
        scr_ref = refs[pos]                     # (max_rows+1, 2, 256) f32 scratch

        n = n_batch
        # Activation "row image": a[(b*S + h), (w*C + c)] = act[b, h, w, c].
        a = z_ref[...]                          # (N, latent) == (N*1, 1*latent)
        for l in range(n_layers):
            cout = chans[l + 1]
            s_in = 2 ** l
            s_out = 2 * s_in
            blk = s_out * cout                  # lanes of one kh band
            rows = n * s_in
            last = l == n_layers - 1

            # ---- ConvTranspose2d: one MXU GEMM (bf16 x bf16 -> f32 acc) ----
            # Channel contraction + width overlap-add for all 4 kh taps.
            r = jnp.dot(a.astype(jnp.bfloat16), m_refs[l][...],
                        preferred_element_type=jnp.float32)     # (rows, 4*blk)

            # ---- height overlap-add (col2im over kh), in registers ----
            ev = r[:, 1 * blk:2 * blk]          # kh=1 -> even output rows
            od = r[:, 2 * blk:3 * blk]          # kh=2 -> odd output rows
            if s_in > 1:
                ih = (jax.lax.broadcasted_iota(jnp.int32, (rows, blk), 0)
                      & (s_in - 1))             # row index within a sample
                if rows % 8 == 0:
                    # Sublane rotation on the otherwise idle XLU.
                    dn = pltpu.roll(r[:, 3 * blk:4 * blk], 1, axis=0)
                    up = pltpu.roll(r[:, 0 * blk:1 * blk], rows - 1, axis=0)
                else:
                    # Shape-safe fallback: shift one row via the VMEM scratch
                    # (plain static-offset stores/loads, no RMW).
                    scr_ref[1:rows + 1, 0:1, 0:blk] = (
                        r[:, 3 * blk:4 * blk].reshape(rows, 1, blk))
                    scr_ref[0:rows, 1:2, 0:blk] = (
                        r[:, 0 * blk:1 * blk].reshape(rows, 1, blk))
                    dn = scr_ref[0:rows, 0:1, 0:blk].reshape(rows, blk)
                    up = scr_ref[1:rows + 1, 1:2, 0:blk].reshape(rows, blk)
                ev = ev + jnp.where(ih != 0, dn, 0.0)        # kh=3 from row above
                od = od + jnp.where(ih != s_in - 1, up, 0.0)  # kh=0 from row below

            if last:
                # Bias + tanh on register values, single lane-denser store.
                img = jnp.concatenate([ev, od], axis=1)      # (N*16, 2*blk)
                out_ref[...] = jnp.tanh(img + bias_ref[...])
            else:
                # ---- interleave even/odd rows: 2 plain stores + 1 full read ----
                scr_ref[0:rows, 0:1, 0:blk] = ev.reshape(rows, 1, blk)
                scr_ref[0:rows, 1:2, 0:blk] = od.reshape(rows, 1, blk)
                y = scr_ref[0:rows, :, 0:blk].reshape(2 * rows, blk)  # rows=(n,oh)

                # ---- train-mode BatchNorm (batch stats) + LeakyReLU(0.2) ----
                # Per-channel collapse over width and the broadcast back over
                # (ow, c) lanes are tiny MXU matmuls against a 0/1 matrix.
                cnt = float(n * s_out * s_out)
                row_sum = jnp.sum(y, axis=0, keepdims=True)       # (1, blk)
                row_sq = jnp.sum(y * y, axis=0, keepdims=True)    # (1, blk)
                kmod = (jax.lax.broadcasted_iota(jnp.int32, (blk, cout), 0)
                        & (cout - 1))
                cidx = jax.lax.broadcasted_iota(jnp.int32, (blk, cout), 1)
                wc = jnp.where(kmod == cidx, 1.0, 0.0)            # (blk, cout)
                sum_c = jnp.dot(row_sum, wc, preferred_element_type=jnp.float32)
                sq_c = jnp.dot(row_sq, wc, preferred_element_type=jnp.float32)
                mean = sum_c / cnt                                # (1, cout)
                var = jnp.maximum(sq_c / cnt - mean * mean, 0.0)
                scale = g_refs[l][...] * jax.lax.rsqrt(var + _EPS)
                shift = bt_refs[l][...] - mean * scale
                jmod = (jax.lax.broadcasted_iota(jnp.int32, (cout, blk), 1)
                        & (cout - 1))
                ridx = jax.lax.broadcasted_iota(jnp.int32, (cout, blk), 0)
                wct = jnp.where(jmod == ridx, 1.0, 0.0)           # (cout, blk)
                scale_row = jnp.dot(scale, wct, preferred_element_type=jnp.float32)
                shift_row = jnp.dot(shift, wct, preferred_element_type=jnp.float32)
                ybn = y * scale_row + shift_row
                a = jnp.where(ybn > 0, ybn, _SLOPE * ybn)         # next GEMM LHS

    return kernel


def _full_spec(arr):
    nd = arr.ndim
    return pl.BlockSpec(arr.shape, lambda i, _nd=nd: (0,) * _nd)


def generator_forward(z, packed):
    """z: (N, latent_dim) -> image (N, 1, 32, 32) in NCHW (PyTorch layout)."""
    chans = packed["hidden_dims"]
    n_layers = len(chans) - 1
    n = z.shape[0]
    c_last = chans[-1]
    s_in_last = 2 ** (n_layers - 1)             # 16
    s_out_last = 2 * s_in_last                  # 32
    out_shape2d = (n * s_in_last, 2 * s_out_last * c_last)   # (N*16, 64)

    max_rows = n * s_in_last                    # covers every layer's shift fallback
    max_blk = max(2 * (2 ** l) * chans[l + 1] for l in range(n_layers))

    inputs = ([z.astype(jnp.float32)] + list(packed["m"])
              + list(packed["gamma"]) + list(packed["beta"])
              + [packed["bias_row"]])

    out = pl.pallas_call(
        _make_generator_kernel(n, chans),
        grid=(1,),
        out_shape=jax.ShapeDtypeStruct(out_shape2d, jnp.float32),
        in_specs=[_full_spec(a) for a in inputs],
        out_specs=pl.BlockSpec(out_shape2d, lambda i: (0, 0)),
        scratch_shapes=[pltpu.VMEM((max_rows + 1, 2, max_blk), jnp.float32)],
        compiler_params=pltpu.CompilerParams(
            dimension_semantics=("arbitrary",)),
    )(*inputs)

    # Rows of `out` are (n, ih); lanes are [even row (ow,c) | odd row (ow,c)].
    img = out.reshape(n, s_in_last, 2, s_out_last, c_last)   # (n, ih, parity, ow, c)
    img = img.reshape(n, s_out_last, s_out_last, c_last)     # (n, H, W, C)
    return jnp.transpose(img, (0, 3, 1, 2))                  # NCHW


if __name__ == "__main__":
    latent_dim = 32
    batch = 2

    params = init_generator_params(latent_dim=latent_dim, channel=1, seed=0)
    packed = pack_generator_params(params, latent_dim=latent_dim, channel=1)

    z = jax.random.normal(jax.random.PRNGKey(0), (batch, latent_dim), jnp.float32)

    img = generator_forward(z, packed)
    img = jax.block_until_ready(img)

    assert img.shape == (batch, 1, 32, 32), img.shape
    assert bool(jnp.all(jnp.isfinite(img)))
    assert bool(jnp.all(jnp.abs(img) <= 1.0 + 1e-6))   # tanh output range
    print("KERNEL_OK")
</pallas_src>

<mosaic_0001>
module attributes {stable_mosaic.version = 11 : i64} {
  func.func @kernel(%arg0: i32, %arg1: memref<2x32xf32, #tpu.memory_space<vmem>>, %arg2: memref<32x1024xbf16, #tpu.memory_space<vmem>>, %arg3: memref<256x1024xbf16, #tpu.memory_space<vmem>>, %arg4: memref<256x1024xbf16, #tpu.memory_space<vmem>>, %arg5: memref<256x1024xbf16, #tpu.memory_space<vmem>>, %arg6: memref<256x128xbf16, #tpu.memory_space<vmem>>, %arg7: memref<1x128xf32, #tpu.memory_space<vmem>>, %arg8: memref<1x64xf32, #tpu.memory_space<vmem>>, %arg9: memref<1x32xf32, #tpu.memory_space<vmem>>, %arg10: memref<1x16xf32, #tpu.memory_space<vmem>>, %arg11: memref<1x128xf32, #tpu.memory_space<vmem>>, %arg12: memref<1x64xf32, #tpu.memory_space<vmem>>, %arg13: memref<1x32xf32, #tpu.memory_space<vmem>>, %arg14: memref<1x16xf32, #tpu.memory_space<vmem>>, %arg15: memref<1x64xf32, #tpu.memory_space<vmem>>, %arg16: memref<32x64xf32, #tpu.memory_space<vmem>>, %arg17: memref<33x2x256xf32, #tpu.memory_space<vmem>>) attributes {dimension_semantics = [#tpu.dimension_semantics<arbitrary>], iteration_bounds = array<i64: 1>, scalar_prefetch = 0 : i64, scratch_operands = 1 : i64, tpu.core_type = #tpu.core_type<tc>, window_params = [{pipeline_mode = #tpu.pipeline_mode<synchronous>, transform_indices = @transform_0, window_bounds = array<i64: 2, 32>}, {pipeline_mode = #tpu.pipeline_mode<synchronous>, transform_indices = @transform_1, window_bounds = array<i64: 32, 1024>}, {pipeline_mode = #tpu.pipeline_mode<synchronous>, transform_indices = @transform_2, window_bounds = array<i64: 256, 1024>}, {pipeline_mode = #tpu.pipeline_mode<synchronous>, transform_indices = @transform_3, window_bounds = array<i64: 256, 1024>}, {pipeline_mode = #tpu.pipeline_mode<synchronous>, transform_indices = @transform_4, window_bounds = array<i64: 256, 1024>}, {pipeline_mode = #tpu.pipeline_mode<synchronous>, transform_indices = @transform_5, window_bounds = array<i64: 256, 128>}, {pipeline_mode = #tpu.pipeline_mode<synchronous>, transform_indices = @transform_6, window_bounds = array<i64: 1, 128>}, {pipeline_mode = #tpu.pipeline_mode<synchronous>, transform_indices = @transform_7, window_bounds = array<i64: 1, 64>}, {pipeline_mode = #tpu.pipeline_mode<synchronous>, transform_indices = @transform_8, window_bounds = array<i64: 1, 32>}, {pipeline_mode = #tpu.pipeline_mode<synchronous>, transform_indices = @transform_9, window_bounds = array<i64: 1, 16>}, {pipeline_mode = #tpu.pipeline_mode<synchronous>, transform_indices = @transform_10, window_bounds = array<i64: 1, 128>}, {pipeline_mode = #tpu.pipeline_mode<synchronous>, transform_indices = @transform_11, window_bounds = array<i64: 1, 64>}, {pipeline_mode = #tpu.pipeline_mode<synchronous>, transform_indices = @transform_12, window_bounds = array<i64: 1, 32>}, {pipeline_mode = #tpu.pipeline_mode<synchronous>, transform_indices = @transform_13, window_bounds = array<i64: 1, 16>}, {pipeline_mode = #tpu.pipeline_mode<synchronous>, transform_indices = @transform_14, window_bounds = array<i64: 1, 64>}, {pipeline_mode = #tpu.pipeline_mode<synchronous>, transform_indices = @transform_15, window_bounds = array<i64: 32, 64>}]} {
    %c0 = arith.constant 0 : index
    %c0_0 = arith.constant 0 : index
    %0 = vector.load %arg1[%c0, %c0_0] : memref<2x32xf32, #tpu.memory_space<vmem>>, vector<2x32xf32>
    %1 = arith.truncf %0 : vector<2x32xf32> to vector<2x32xbf16>
    %c0_1 = arith.constant 0 : index
    %c0_2 = arith.constant 0 : index
    %2 = vector.load %arg2[%c0_1, %c0_2] : memref<32x1024xbf16, #tpu.memory_space<vmem>>, vector<32x1024xbf16>
    %cst = arith.constant dense<0.000000e+00> : vector<2x1024xf32>
    %3 = tpu.matmul %1, %2, %cst {dimension_numbers = #tpu.dot_dimension_numbers<[1], [0], [0], [1], [0, 0, 1, 1], [], []>} : vector<2x32xbf16>, vector<32x1024xbf16>, vector<2x1024xf32> -> vector<2x1024xf32>
    %4 = vector.extract_strided_slice %3 {offsets = [0, 256], sizes = [2, 256], strides = [1, 1]} : vector<2x1024xf32> to vector<2x256xf32>
    %5 = vector.extract_strided_slice %3 {offsets = [0, 512], sizes = [2, 256], strides = [1, 1]} : vector<2x1024xf32> to vector<2x256xf32>
    %6 = vector.shape_cast %4 : vector<2x256xf32> to vector<2x1x256xf32>
    %c0_3 = arith.constant 0 : index
    %c0_4 = arith.constant 0 : index
    %c0_5 = arith.constant 0 : index
    %7 = vector.load %arg17[%c0_3, %c0_4, %c0_5] : memref<33x2x256xf32, #tpu.memory_space<vmem>>, vector<2x1x256xf32>
    tpu.vector_store %arg17[%c0_3, %c0_4, %c0_5], %6 {strides = array<i32>} : memref<33x2x256xf32, #tpu.memory_space<vmem>>, vector<2x1x256xf32>,
    %8 = vector.shape_cast %5 : vector<2x256xf32> to vector<2x1x256xf32>
    %c0_6 = arith.constant 0 : index
    %c1 = arith.constant 1 : index
    %c0_7 = arith.constant 0 : index
    %9 = vector.load %arg17[%c0_6, %c1, %c0_7] : memref<33x2x256xf32, #tpu.memory_space<vmem>>, vector<2x1x256xf32>
    tpu.vector_store %arg17[%c0_6, %c1, %c0_7], %8 {strides = array<i32>} : memref<33x2x256xf32, #tpu.memory_space<vmem>>, vector<2x1x256xf32>,
    %c0_8 = arith.constant 0 : index
    %c0_9 = arith.constant 0 : index
    %c0_10 = arith.constant 0 : index
    %10 = vector.load %arg17[%c0_8, %c0_9, %c0_10] : memref<33x2x256xf32, #tpu.memory_space<vmem>>, vector<2x2x256xf32>
    %11 = vector.shape_cast %10 : vector<2x2x256xf32> to vector<4x256xf32>
    %cst_11 = arith.constant dense<0.000000e+00> : vector<256xf32>
    %12 = vector.multi_reduction <add>, %11, %cst_11 [0] : vector<4x256xf32> to vector<256xf32>
    %13 = vector.shape_cast %12 : vector<256xf32> to vector<1x256xf32>
    %14 = arith.mulf %11, %11 : vector<4x256xf32>
    %cst_12 = arith.constant dense<0.000000e+00> : vector<256xf32>
    %15 = vector.multi_reduction <add>, %14, %cst_12 [0] : vector<4x256xf32> to vector<256xf32>
    %16 = vector.shape_cast %15 : vector<256xf32> to vector<1x256xf32>
    %17 = tpu.iota {dimensions = array<i32: 0>} : vector<256x128xi32>
    %c127_i32 = arith.constant 127 : i32
    %18 = vector.broadcast %c127_i32 : i32 to vector<256x128xi32>
    %19 = arith.andi %17, %18 : vector<256x128xi32>
    %20 = tpu.iota {dimensions = array<i32: 1>} : vector<256x128xi32>
    %21 = arith.cmpi eq, %19, %20 : vector<256x128xi32>
    %cst_13 = arith.constant 1.000000e+00 : f32
    %cst_14 = arith.constant 0.000000e+00 : f32
    %22 = vector.broadcast %cst_13 : f32 to vector<256x128xf32>
    %23 = vector.broadcast %cst_14 : f32 to vector<256x128xf32>
    %24 = arith.select %21, %22, %23 : vector<256x128xi1>, vector<256x128xf32>
    %cst_15 = arith.constant dense<0.000000e+00> : vector<1x128xf32>
    %25 = tpu.matmul %13, %24, %cst_15 {dimension_numbers = #tpu.dot_dimension_numbers<[1], [0], [0], [1], [0, 0, 1, 1], [], []>} : vector<1x256xf32>, vector<256x128xf32>, vector<1x128xf32> -> vector<1x128xf32>
    %cst_16 = arith.constant dense<0.000000e+00> : vector<1x128xf32>
    %26 = tpu.matmul %16, %24, %cst_16 {dimension_numbers = #tpu.dot_dimension_numbers<[1], [0], [0], [1], [0, 0, 1, 1], [], []>} : vector<1x256xf32>, vector<256x128xf32>, vector<1x128xf32> -> vector<1x128xf32>
    %cst_17 = arith.constant 8.000000e+00 : f32
    %27 = vector.broadcast %cst_17 : f32 to vector<1x128xf32>
    %28 = arith.divf %25, %27 : vector<1x128xf32>
    %cst_18 = arith.constant 8.000000e+00 : f32
    %29 = vector.broadcast %cst_18 : f32 to vector<1x128xf32>
    %30 = arith.divf %26, %29 : vector<1x128xf32>
    %31 = arith.mulf %28, %28 : vector<1x128xf32>
    %32 = arith.subf %30, %31 : vector<1x128xf32>
    %cst_19 = arith.constant 0.000000e+00 : f32
    %33 = vector.broadcast %cst_19 : f32 to vector<1x128xf32>
    %34 = arith.maximumf %32, %33 : vector<1x128xf32>
    %c0_20 = arith.constant 0 : index
    %c0_21 = arith.constant 0 : index
    %35 = vector.load %arg7[%c0_20, %c0_21] : memref<1x128xf32, #tpu.memory_space<vmem>>, vector<1x128xf32>
    %cst_22 = arith.constant 9.99999974E-6 : f32
    %36 = vector.broadcast %cst_22 : f32 to vector<1x128xf32>
    %37 = arith.addf %34, %36 : vector<1x128xf32>
    %38 = math.rsqrt %37 : vector<1x128xf32>
    %39 = arith.mulf %35, %38 : vector<1x128xf32>
    %c0_23 = arith.constant 0 : index
    %c0_24 = arith.constant 0 : index
    %40 = vector.load %arg11[%c0_23, %c0_24] : memref<1x128xf32, #tpu.memory_space<vmem>>, vector<1x128xf32>
    %41 = arith.mulf %28, %39 : vector<1x128xf32>
    %42 = arith.subf %40, %41 : vector<1x128xf32>
    %43 = tpu.iota {dimensions = array<i32: 1>} : vector<128x256xi32>
    %c127_i32_25 = arith.constant 127 : i32
    %44 = vector.broadcast %c127_i32_25 : i32 to vector<128x256xi32>
    %45 = arith.andi %43, %44 : vector<128x256xi32>
    %46 = tpu.iota {dimensions = array<i32: 0>} : vector<128x256xi32>
    %47 = arith.cmpi eq, %45, %46 : vector<128x256xi32>
    %cst_26 = arith.constant 1.000000e+00 : f32
    %cst_27 = arith.constant 0.000000e+00 : f32
    %48 = vector.broadcast %cst_26 : f32 to vector<128x256xf32>
    %49 = vector.broadcast %cst_27 : f32 to vector<128x256xf32>
    %50 = arith.select %47, %48, %49 : vector<128x256xi1>, vector<128x256xf32>
    %cst_28 = arith.constant dense<0.000000e+00> : vector<1x256xf32>
    %51 = tpu.matmul %39, %50, %cst_28 {dimension_numbers = #tpu.dot_dimension_numbers<[1], [0], [0], [1], [0, 0, 1, 1], [], []>} : vector<1x128xf32>, vector<128x256xf32>, vector<1x256xf32> -> vector<1x256xf32>
    %cst_29 = arith.constant dense<0.000000e+00> : vector<1x256xf32>
    %52 = tpu.matmul %42, %50, %cst_29 {dimension_numbers = #tpu.dot_dimension_numbers<[1], [0], [0], [1], [0, 0, 1, 1], [], []>} : vector<1x128xf32>, vector<128x256xf32>, vector<1x256xf32> -> vector<1x256xf32>
    %53 = vector.broadcast %51 : vector<1x256xf32> to vector<4x256xf32>
    %54 = arith.mulf %11, %53 : vector<4x256xf32>
    %55 = vector.broadcast %52 : vector<1x256xf32> to vector<4x256xf32>
    %56 = arith.addf %54, %55 : vector<4x256xf32>
    %cst_30 = arith.constant 0.000000e+00 : f32
    %57 = vector.broadcast %cst_30 : f32 to vector<4x256xf32>
    %58 = arith.cmpf ogt, %56, %57 : vector<4x256xf32>
    %cst_31 = arith.constant 2.000000e-01 : f32
    %59 = vector.broadcast %cst_31 : f32 to vector<4x256xf32>
    %60 = arith.mulf %59, %56 : vector<4x256xf32>
    %61 = arith.select %58, %56, %60 : vector<4x256xi1>, vector<4x256xf32>
    %62 = arith.truncf %61 : vector<4x256xf32> to vector<4x256xbf16>
    %c0_32 = arith.constant 0 : index
    %c0_33 = arith.constant 0 : index
    %63 = vector.load %arg3[%c0_32, %c0_33] : memref<256x1024xbf16, #tpu.memory_space<vmem>>, vector<256x1024xbf16>
    %cst_34 = arith.constant dense<0.000000e+00> : vector<4x1024xf32>
    %64 = tpu.matmul %62, %63, %cst_34 {dimension_numbers = #tpu.dot_dimension_numbers<[1], [0], [0], [1], [0, 0, 1, 1], [], []>} : vector<4x256xbf16>, vector<256x1024xbf16>, vector<4x1024xf32> -> vector<4x1024xf32>
    %65 = vector.extract_strided_slice %64 {offsets = [0, 256], sizes = [4, 256], strides = [1, 1]} : vector<4x1024xf32> to vector<4x256xf32>
    %66 = vector.extract_strided_slice %64 {offsets = [0, 512], sizes = [4, 256], strides = [1, 1]} : vector<4x1024xf32> to vector<4x256xf32>
    %67 = tpu.iota {dimensions = array<i32: 0>} : vector<4x256xi32>
    %c1_i32 = arith.constant 1 : i32
    %68 = vector.broadcast %c1_i32 : i32 to vector<4x256xi32>
    %69 = arith.andi %67, %68 : vector<4x256xi32>
    %70 = vector.extract_strided_slice %64 {offsets = [0, 768], sizes = [4, 256], strides = [1, 1]} : vector<4x1024xf32> to vector<4x256xf32>
    %71 = vector.shape_cast %70 : vector<4x256xf32> to vector<4x1x256xf32>
    %c1_35 = arith.constant 1 : index
    %c0_36 = arith.constant 0 : index
    %c0_37 = arith.constant 0 : index
    %72 = vector.load %arg17[%c1_35, %c0_36, %c0_37] : memref<33x2x256xf32, #tpu.memory_space<vmem>>, vector<4x1x256xf32>
    tpu.vector_store %arg17[%c1_35, %c0_36, %c0_37], %71 {strides = array<i32>} : memref<33x2x256xf32, #tpu.memory_space<vmem>>, vector<4x1x256xf32>,
    %73 = vector.extract_strided_slice %64 {offsets = [0, 0], sizes = [4, 256], strides = [1, 1]} : vector<4x1024xf32> to vector<4x256xf32>
    %74 = vector.shape_cast %73 : vector<4x256xf32> to vector<4x1x256xf32>
    %c0_38 = arith.constant 0 : index
    %c1_39 = arith.constant 1 : index
    %c0_40 = arith.constant 0 : index
    %75 = vector.load %arg17[%c0_38, %c1_39, %c0_40] : memref<33x2x256xf32, #tpu.memory_space<vmem>>, vector<4x1x256xf32>
    tpu.vector_store %arg17[%c0_38, %c1_39, %c0_40], %74 {strides = array<i32>} : memref<33x2x256xf32, #tpu.memory_space<vmem>>, vector<4x1x256xf32>,
    %c0_41 = arith.constant 0 : index
    %c0_42 = arith.constant 0 : index
    %c0_43 = arith.constant 0 : index
    %76 = vector.load %arg17[%c0_41, %c0_42, %c0_43] : memref<33x2x256xf32, #tpu.memory_space<vmem>>, vector<4x1x256xf32>
    %77 = vector.shape_cast %76 : vector<4x1x256xf32> to vector<4x256xf32>
    %c1_44 = arith.constant 1 : index
    %c1_45 = arith.constant 1 : index
    %c0_46 = arith.constant 0 : index
    %78 = vector.load %arg17[%c1_44, %c1_45, %c0_46] : memref<33x2x256xf32, #tpu.memory_space<vmem>>, vector<4x1x256xf32>
    %79 = vector.shape_cast %78 : vector<4x1x256xf32> to vector<4x256xf32>
    %c0_i32 = arith.constant 0 : i32
    %80 = vector.broadcast %c0_i32 : i32 to vector<4x256xi32>
    %81 = arith.cmpi ne, %69, %80 : vector<4x256xi32>
    %cst_47 = arith.constant 0.000000e+00 : f32
    %82 = vector.broadcast %cst_47 : f32 to vector<4x256xf32>
    %83 = arith.select %81, %77, %82 : vector<4x256xi1>, vector<4x256xf32>
    %84 = arith.addf %65, %83 : vector<4x256xf32>
    %c1_i32_48 = arith.constant 1 : i32
    %85 = vector.broadcast %c1_i32_48 : i32 to vector<4x256xi32>
    %86 = arith.cmpi ne, %69, %85 : vector<4x256xi32>
    %cst_49 = arith.constant 0.000000e+00 : f32
    %87 = vector.broadcast %cst_49 : f32 to vector<4x256xf32>
    %88 = arith.select %86, %79, %87 : vector<4x256xi1>, vector<4x256xf32>
    %89 = arith.addf %66, %88 : vector<4x256xf32>
    %90 = vector.shape_cast %84 : vector<4x256xf32> to vector<4x1x256xf32>
    %c0_50 = arith.constant 0 : index
    %c0_51 = arith.constant 0 : index
    %c0_52 = arith.constant 0 : index
    %91 = vector.load %arg17[%c0_50, %c0_51, %c0_52] : memref<33x2x256xf32, #tpu.memory_space<vmem>>, vector<4x1x256xf32>
    tpu.vector_store %arg17[%c0_50, %c0_51, %c0_52], %90 {strides = array<i32>} : memref<33x2x256xf32, #tpu.memory_space<vmem>>, vector<4x1x256xf32>,
    %92 = vector.shape_cast %89 : vector<4x256xf32> to vector<4x1x256xf32>
    %c0_53 = arith.constant 0 : index
    %c1_54 = arith.constant 1 : index
    %c0_55 = arith.constant 0 : index
    %93 = vector.load %arg17[%c0_53, %c1_54, %c0_55] : memref<33x2x256xf32, #tpu.memory_space<vmem>>, vector<4x1x256xf32>
    tpu.vector_store %arg17[%c0_53, %c1_54, %c0_55], %92 {strides = array<i32>} : memref<33x2x256xf32, #tpu.memory_space<vmem>>, vector<4x1x256xf32>,
    %c0_56 = arith.constant 0 : index
    %c0_57 = arith.constant 0 : index
    %c0_58 = arith.constant 0 : index
    %94 = vector.load %arg17[%c0_56, %c0_57, %c0_58] : memref<33x2x256xf32, #tpu.memory_space<vmem>>, vector<4x2x256xf32>
    %95 = vector.shape_cast %94 : vector<4x2x256xf32> to vector<8x256xf32>
    %cst_59 = arith.constant dense<0.000000e+00> : vector<256xf32>
    %96 = vector.multi_reduction <add>, %95, %cst_59 [0] : vector<8x256xf32> to vector<256xf32>
    %97 = vector.shape_cast %96 : vector<256xf32> to vector<1x256xf32>
    %98 = arith.mulf %95, %95 : vector<8x256xf32>
    %cst_60 = arith.constant dense<0.000000e+00> : vector<256xf32>
    %99 = vector.multi_reduction <add>, %98, %cst_60 [0] : vector<8x256xf32> to vector<256xf32>
    %100 = vector.shape_cast %99 : vector<256xf32> to vector<1x256xf32>
    %101 = tpu.iota {dimensions = array<i32: 0>} : vector<256x64xi32>
    %c63_i32 = arith.constant 63 : i32
    %102 = vector.broadcast %c63_i32 : i32 to vector<256x64xi32>
    %103 = arith.andi %101, %102 : vector<256x64xi32>
    %104 = tpu.iota {dimensions = array<i32: 1>} : vector<256x64xi32>
    %105 = arith.cmpi eq, %103, %104 : vector<256x64xi32>
    %cst_61 = arith.constant 1.000000e+00 : f32
    %cst_62 = arith.constant 0.000000e+00 : f32
    %106 = vector.broadcast %cst_61 : f32 to vector<256x64xf32>
    %107 = vector.broadcast %cst_62 : f32 to vector<256x64xf32>
    %108 = arith.select %105, %106, %107 : vector<256x64xi1>, vector<256x64xf32>
    %cst_63 = arith.constant dense<0.000000e+00> : vector<1x64xf32>
    %109 = tpu.matmul %97, %108, %cst_63 {dimension_numbers = #tpu.dot_dimension_numbers<[1], [0], [0], [1], [0, 0, 1, 1], [], []>} : vector<1x256xf32>, vector<256x64xf32>, vector<1x64xf32> -> vector<1x64xf32>
    %cst_64 = arith.constant dense<0.000000e+00> : vector<1x64xf32>
    %110 = tpu.matmul %100, %108, %cst_64 {dimension_numbers = #tpu.dot_dimension_numbers<[1], [0], [0], [1], [0, 0, 1, 1], [], []>} : vector<1x256xf32>, vector<256x64xf32>, vector<1x64xf32> -> vector<1x64xf32>
    %cst_65 = arith.constant 3.200000e+01 : f32
    %111 = vector.broadcast %cst_65 : f32 to vector<1x64xf32>
    %112 = arith.divf %109, %111 : vector<1x64xf32>
    %cst_66 = arith.constant 3.200000e+01 : f32
    %113 = vector.broadcast %cst_66 : f32 to vector<1x64xf32>
    %114 = arith.divf %110, %113 : vector<1x64xf32>
    %115 = arith.mulf %112, %112 : vector<1x64xf32>
    %116 = arith.subf %114, %115 : vector<1x64xf32>
    %cst_67 = arith.constant 0.000000e+00 : f32
    %117 = vector.broadcast %cst_67 : f32 to vector<1x64xf32>
    %118 = arith.maximumf %116, %117 : vector<1x64xf32>
    %c0_68 = arith.constant 0 : index
    %c0_69 = arith.constant 0 : index
    %119 = vector.load %arg8[%c0_68, %c0_69] : memref<1x64xf32, #tpu.memory_space<vmem>>, vector<1x64xf32>
    %cst_70 = arith.constant 9.99999974E-6 : f32
    %120 = vector.broadcast %cst_70 : f32 to vector<1x64xf32>
    %121 = arith.addf %118, %120 : vector<1x64xf32>
    %122 = math.rsqrt %121 : vector<1x64xf32>
    %123 = arith.mulf %119, %122 : vector<1x64xf32>
    %c0_71 = arith.constant 0 : index
    %c0_72 = arith.constant 0 : index
    %124 = vector.load %arg12[%c0_71, %c0_72] : memref<1x64xf32, #tpu.memory_space<vmem>>, vector<1x64xf32>
    %125 = arith.mulf %112, %123 : vector<1x64xf32>
    %126 = arith.subf %124, %125 : vector<1x64xf32>
    %127 = tpu.iota {dimensions = array<i32: 1>} : vector<64x256xi32>
    %c63_i32_73 = arith.constant 63 : i32
    %128 = vector.broadcast %c63_i32_73 : i32 to vector<64x256xi32>
    %129 = arith.andi %127, %128 : vector<64x256xi32>
    %130 = tpu.iota {dimensions = array<i32: 0>} : vector<64x256xi32>
    %131 = arith.cmpi eq, %129, %130 : vector<64x256xi32>
    %cst_74 = arith.constant 1.000000e+00 : f32
    %cst_75 = arith.constant 0.000000e+00 : f32
    %132 = vector.broadcast %cst_74 : f32 to vector<64x256xf32>
    %133 = vector.broadcast %cst_75 : f32 to vector<64x256xf32>
    %134 = arith.select %131, %132, %133 : vector<64x256xi1>, vector<64x256xf32>
    %cst_76 = arith.constant dense<0.000000e+00> : vector<1x256xf32>
    %135 = tpu.matmul %123, %134, %cst_76 {dimension_numbers = #tpu.dot_dimension_numbers<[1], [0], [0], [1], [0, 0, 1, 1], [], []>} : vector<1x64xf32>, vector<64x256xf32>, vector<1x256xf32> -> vector<1x256xf32>
    %cst_77 = arith.constant dense<0.000000e+00> : vector<1x256xf32>
    %136 = tpu.matmul %126, %134, %cst_77 {dimension_numbers = #tpu.dot_dimension_numbers<[1], [0], [0], [1], [0, 0, 1, 1], [], []>} : vector<1x64xf32>, vector<64x256xf32>, vector<1x256xf32> -> vector<1x256xf32>
    %137 = vector.broadcast %135 : vector<1x256xf32> to vector<8x256xf32>
    %138 = arith.mulf %95, %137 : vector<8x256xf32>
    %139 = vector.broadcast %136 : vector<1x256xf32> to vector<8x256xf32>
    %140 = arith.addf %138, %139 : vector<8x256xf32>
    %cst_78 = arith.constant 0.000000e+00 : f32
    %141 = vector.broadcast %cst_78 : f32 to vector<8x256xf32>
    %142 = arith.cmpf ogt, %140, %141 : vector<8x256xf32>
    %cst_79 = arith.constant 2.000000e-01 : f32
    %143 = vector.broadcast %cst_79 : f32 to vector<8x256xf32>
    %144 = arith.mulf %143, %140 : vector<8x256xf32>
    %145 = arith.select %142, %140, %144 : vector<8x256xi1>, vector<8x256xf32>
    %146 = arith.truncf %145 : vector<8x256xf32> to vector<8x256xbf16>
    %c0_80 = arith.constant 0 : index
    %c0_81 = arith.constant 0 : index
    %147 = vector.load %arg4[%c0_80, %c0_81] : memref<256x1024xbf16, #tpu.memory_space<vmem>>, vector<256x1024xbf16>
    %cst_82 = arith.constant dense<0.000000e+00> : vector<8x1024xf32>
    %148 = tpu.matmul %146, %147, %cst_82 {dimension_numbers = #tpu.dot_dimension_numbers<[1], [0], [0], [1], [0, 0, 1, 1], [], []>} : vector<8x256xbf16>, vector<256x1024xbf16>, vector<8x1024xf32> -> vector<8x1024xf32>
    %149 = vector.extract_strided_slice %148 {offsets = [0, 256], sizes = [8, 256], strides = [1, 1]} : vector<8x1024xf32> to vector<8x256xf32>
    %150 = vector.extract_strided_slice %148 {offsets = [0, 512], sizes = [8, 256], strides = [1, 1]} : vector<8x1024xf32> to vector<8x256xf32>
    %151 = tpu.iota {dimensions = array<i32: 0>} : vector<8x256xi32>
    %c3_i32 = arith.constant 3 : i32
    %152 = vector.broadcast %c3_i32 : i32 to vector<8x256xi32>
    %153 = arith.andi %151, %152 : vector<8x256xi32>
    %154 = vector.extract_strided_slice %148 {offsets = [0, 768], sizes = [8, 256], strides = [1, 1]} : vector<8x1024xf32> to vector<8x256xf32>
    %c1_i32_83 = arith.constant 1 : i32
    %155 = tpu.dynamic_rotate %154 by %c1_i32_83 dim 0 : vector<8x256xf32>, i32 -> vector<8x256xf32>
    %156 = vector.extract_strided_slice %148 {offsets = [0, 0], sizes = [8, 256], strides = [1, 1]} : vector<8x1024xf32> to vector<8x256xf32>
    %c7_i32 = arith.constant 7 : i32
    %157 = tpu.dynamic_rotate %156 by %c7_i32 dim 0 : vector<8x256xf32>, i32 -> vector<8x256xf32>
    %c0_i32_84 = arith.constant 0 : i32
    %158 = vector.broadcast %c0_i32_84 : i32 to vector<8x256xi32>
    %159 = arith.cmpi ne, %153, %158 : vector<8x256xi32>
    %cst_85 = arith.constant 0.000000e+00 : f32
    %160 = vector.broadcast %cst_85 : f32 to vector<8x256xf32>
    %161 = arith.select %159, %155, %160 : vector<8x256xi1>, vector<8x256xf32>
    %162 = arith.addf %149, %161 : vector<8x256xf32>
    %c3_i32_86 = arith.constant 3 : i32
    %163 = vector.broadcast %c3_i32_86 : i32 to vector<8x256xi32>
    %164 = arith.cmpi ne, %153, %163 : vector<8x256xi32>
    %cst_87 = arith.constant 0.000000e+00 : f32
    %165 = vector.broadcast %cst_87 : f32 to vector<8x256xf32>
    %166 = arith.select %164, %157, %165 : vector<8x256xi1>, vector<8x256xf32>
    %167 = arith.addf %150, %166 : vector<8x256xf32>
    %168 = vector.shape_cast %162 : vector<8x256xf32> to vector<8x1x256xf32>
    %c0_88 = arith.constant 0 : index
    %c0_89 = arith.constant 0 : index
    %c0_90 = arith.constant 0 : index
    %169 = vector.load %arg17[%c0_88, %c0_89, %c0_90] : memref<33x2x256xf32, #tpu.memory_space<vmem>>, vector<8x1x256xf32>
    tpu.vector_store %arg17[%c0_88, %c0_89, %c0_90], %168 {strides = array<i32>} : memref<33x2x256xf32, #tpu.memory_space<vmem>>, vector<8x1x256xf32>,
    %170 = vector.shape_cast %167 : vector<8x256xf32> to vector<8x1x256xf32>
    %c0_91 = arith.constant 0 : index
    %c1_92 = arith.constant 1 : index
    %c0_93 = arith.constant 0 : index
    %171 = vector.load %arg17[%c0_91, %c1_92, %c0_93] : memref<33x2x256xf32, #tpu.memory_space<vmem>>, vector<8x1x256xf32>
    tpu.vector_store %arg17[%c0_91, %c1_92, %c0_93], %170 {strides = array<i32>} : memref<33x2x256xf32, #tpu.memory_space<vmem>>, vector<8x1x256xf32>,
    %c0_94 = arith.constant 0 : index
    %c0_95 = arith.constant 0 : index
    %c0_96 = arith.constant 0 : index
    %172 = vector.load %arg17[%c0_94, %c0_95, %c0_96] : memref<33x2x256xf32, #tpu.memory_space<vmem>>, vector<8x2x256xf32>
    %173 = vector.shape_cast %172 : vector<8x2x256xf32> to vector<16x256xf32>
    %cst_97 = arith.constant dense<0.000000e+00> : vector<256xf32>
    %174 = vector.multi_reduction <add>, %173, %cst_97 [0] : vector<16x256xf32> to vector<256xf32>
    %175 = vector.shape_cast %174 : vector<256xf32> to vector<1x256xf32>
    %176 = arith.mulf %173, %173 : vector<16x256xf32>
    %cst_98 = arith.constant dense<0.000000e+00> : vector<256xf32>
    %177 = vector.multi_reduction <add>, %176, %cst_98 [0] : vector<16x256xf32> to vector<256xf32>
    %178 = vector.shape_cast %177 : vector<256xf32> to vector<1x256xf32>
    %179 = tpu.iota {dimensions = array<i32: 0>} : vector<256x32xi32>
    %c31_i32 = arith.constant 31 : i32
    %180 = vector.broadcast %c31_i32 : i32 to vector<256x32xi32>
    %181 = arith.andi %179, %180 : vector<256x32xi32>
    %182 = tpu.iota {dimensions = array<i32: 1>} : vector<256x32xi32>
    %183 = arith.cmpi eq, %181, %182 : vector<256x32xi32>
    %cst_99 = arith.constant 1.000000e+00 : f32
    %cst_100 = arith.constant 0.000000e+00 : f32
    %184 = vector.broadcast %cst_99 : f32 to vector<256x32xf32>
    %185 = vector.broadcast %cst_100 : f32 to vector<256x32xf32>
    %186 = arith.select %183, %184, %185 : vector<256x32xi1>, vector<256x32xf32>
    %cst_101 = arith.constant dense<0.000000e+00> : vector<1x32xf32>
    %187 = tpu.matmul %175, %186, %cst_101 {dimension_numbers = #tpu.dot_dimension_numbers<[1], [0], [0], [1], [0, 0, 1, 1], [], []>} : vector<1x256xf32>, vector<256x32xf32>, vector<1x32xf32> -> vector<1x32xf32>
    %cst_102 = arith.constant dense<0.000000e+00> : vector<1x32xf32>
    %188 = tpu.matmul %178, %186, %cst_102 {dimension_numbers = #tpu.dot_dimension_numbers<[1], [0], [0], [1], [0, 0, 1, 1], [], []>} : vector<1x256xf32>, vector<256x32xf32>, vector<1x32xf32> -> vector<1x32xf32>
    %cst_103 = arith.constant 1.280000e+02 : f32
    %189 = vector.broadcast %cst_103 : f32 to vector<1x32xf32>
    %190 = arith.divf %187, %189 : vector<1x32xf32>
    %cst_104 = arith.constant 1.280000e+02 : f32
    %191 = vector.broadcast %cst_104 : f32 to vector<1x32xf32>
    %192 = arith.divf %188, %191 : vector<1x32xf32>
    %193 = arith.mulf %190, %190 : vector<1x32xf32>
    %194 = arith.subf %192, %193 : vector<1x32xf32>
    %cst_105 = arith.constant 0.000000e+00 : f32
    %195 = vector.broadcast %cst_105 : f32 to vector<1x32xf32>
    %196 = arith.maximumf %194, %195 : vector<1x32xf32>
    %c0_106 = arith.constant 0 : index
    %c0_107 = arith.constant 0 : index
    %197 = vector.load %arg9[%c0_106, %c0_107] : memref<1x32xf32, #tpu.memory_space<vmem>>, vector<1x32xf32>
    %cst_108 = arith.constant 9.99999974E-6 : f32
    %198 = vector.broadcast %cst_108 : f32 to vector<1x32xf32>
    %199 = arith.addf %196, %198 : vector<1x32xf32>
    %200 = math.rsqrt %199 : vector<1x32xf32>
    %201 = arith.mulf %197, %200 : vector<1x32xf32>
    %c0_109 = arith.constant 0 : index
    %c0_110 = arith.constant 0 : index
    %202 = vector.load %arg13[%c0_109, %c0_110] : memref<1x32xf32, #tpu.memory_space<vmem>>, vector<1x32xf32>
    %203 = arith.mulf %190, %201 : vector<1x32xf32>
    %204 = arith.subf %202, %203 : vector<1x32xf32>
    %205 = tpu.iota {dimensions = array<i32: 1>} : vector<32x256xi32>
    %c31_i32_111 = arith.constant 31 : i32
    %206 = vector.broadcast %c31_i32_111 : i32 to vector<32x256xi32>
    %207 = arith.andi %205, %206 : vector<32x256xi32>
    %208 = tpu.iota {dimensions = array<i32: 0>} : vector<32x256xi32>
    %209 = arith.cmpi eq, %207, %208 : vector<32x256xi32>
    %cst_112 = arith.constant 1.000000e+00 : f32
    %cst_113 = arith.constant 0.000000e+00 : f32
    %210 = vector.broadcast %cst_112 : f32 to vector<32x256xf32>
    %211 = vector.broadcast %cst_113 : f32 to vector<32x256xf32>
    %212 = arith.select %209, %210, %211 : vector<32x256xi1>, vector<32x256xf32>
    %cst_114 = arith.constant dense<0.000000e+00> : vector<1x256xf32>
    %213 = tpu.matmul %201, %212, %cst_114 {dimension_numbers = #tpu.dot_dimension_numbers<[1], [0], [0], [1], [0, 0, 1, 1], [], []>} : vector<1x32xf32>, vector<32x256xf32>, vector<1x256xf32> -> vector<1x256xf32>
    %cst_115 = arith.constant dense<0.000000e+00> : vector<1x256xf32>
    %214 = tpu.matmul %204, %212, %cst_115 {dimension_numbers = #tpu.dot_dimension_numbers<[1], [0], [0], [1], [0, 0, 1, 1], [], []>} : vector<1x32xf32>, vector<32x256xf32>, vector<1x256xf32> -> vector<1x256xf32>
    %215 = vector.broadcast %213 : vector<1x256xf32> to vector<16x256xf32>
    %216 = arith.mulf %173, %215 : vector<16x256xf32>
    %217 = vector.broadcast %214 : vector<1x256xf32> to vector<16x256xf32>
    %218 = arith.addf %216, %217 : vector<16x256xf32>
    %cst_116 = arith.constant 0.000000e+00 : f32
    %219 = vector.broadcast %cst_116 : f32 to vector<16x256xf32>
    %220 = arith.cmpf ogt, %218, %219 : vector<16x256xf32>
    %cst_117 = arith.constant 2.000000e-01 : f32
    %221 = vector.broadcast %cst_117 : f32 to vector<16x256xf32>
    %222 = arith.mulf %221, %218 : vector<16x256xf32>
    %223 = arith.select %220, %218, %222 : vector<16x256xi1>, vector<16x256xf32>
    %224 = arith.truncf %223 : vector<16x256xf32> to vector<16x256xbf16>
    %c0_118 = arith.constant 0 : index
    %c0_119 = arith.constant 0 : index
    %225 = vector.load %arg5[%c0_118, %c0_119] : memref<256x1024xbf16, #tpu.memory_space<vmem>>, vector<256x1024xbf16>
    %cst_120 = arith.constant dense<0.000000e+00> : vector<16x1024xf32>
    %226 = tpu.matmul %224, %225, %cst_120 {dimension_numbers = #tpu.dot_dimension_numbers<[1], [0], [0], [1], [0, 0, 1, 1], [], []>} : vector<16x256xbf16>, vector<256x1024xbf16>, vector<16x1024xf32> -> vector<16x1024xf32>
    %227 = vector.extract_strided_slice %226 {offsets = [0, 256], sizes = [16, 256], strides = [1, 1]} : vector<16x1024xf32> to vector<16x256xf32>
    %228 = vector.extract_strided_slice %226 {offsets = [0, 512], sizes = [16, 256], strides = [1, 1]} : vector<16x1024xf32> to vector<16x256xf32>
    %229 = tpu.iota {dimensions = array<i32: 0>} : vector<16x256xi32>
    %c7_i32_121 = arith.constant 7 : i32
    %230 = vector.broadcast %c7_i32_121 : i32 to vector<16x256xi32>
    %231 = arith.andi %229, %230 : vector<16x256xi32>
    %232 = vector.extract_strided_slice %226 {offsets = [0, 768], sizes = [16, 256], strides = [1, 1]} : vector<16x1024xf32> to vector<16x256xf32>
    %c1_i32_122 = arith.constant 1 : i32
    %233 = tpu.dynamic_rotate %232 by %c1_i32_122 dim 0 : vector<16x256xf32>, i32 -> vector<16x256xf32>
    %234 = vector.extract_strided_slice %226 {offsets = [0, 0], sizes = [16, 256], strides = [1, 1]} : vector<16x1024xf32> to vector<16x256xf32>
    %c15_i32 = arith.constant 15 : i32
    %235 = tpu.dynamic_rotate %234 by %c15_i32 dim 0 : vector<16x256xf32>, i32 -> vector<16x256xf32>
    %c0_i32_123 = arith.constant 0 : i32
    %236 = vector.broadcast %c0_i32_123 : i32 to vector<16x256xi32>
    %237 = arith.cmpi ne, %231, %236 : vector<16x256xi32>
    %cst_124 = arith.constant 0.000000e+00 : f32
    %238 = vector.broadcast %cst_124 : f32 to vector<16x256xf32>
    %239 = arith.select %237, %233, %238 : vector<16x256xi1>, vector<16x256xf32>
    %240 = arith.addf %227, %239 : vector<16x256xf32>
    %c7_i32_125 = arith.constant 7 : i32
    %241 = vector.broadcast %c7_i32_125 : i32 to vector<16x256xi32>
    %242 = arith.cmpi ne, %231, %241 : vector<16x256xi32>
    %cst_126 = arith.constant 0.000000e+00 : f32
    %243 = vector.broadcast %cst_126 : f32 to vector<16x256xf32>
    %244 = arith.select %242, %235, %243 : vector<16x256xi1>, vector<16x256xf32>
    %245 = arith.addf %228, %244 : vector<16x256xf32>
    %246 = vector.shape_cast %240 : vector<16x256xf32> to vector<16x1x256xf32>
    %c0_127 = arith.constant 0 : index
    %c0_128 = arith.constant 0 : index
    %c0_129 = arith.constant 0 : index
    %247 = vector.load %arg17[%c0_127, %c0_128, %c0_129] : memref<33x2x256xf32, #tpu.memory_space<vmem>>, vector<16x1x256xf32>
    tpu.vector_store %arg17[%c0_127, %c0_128, %c0_129], %246 {strides = array<i32>} : memref<33x2x256xf32, #tpu.memory_space<vmem>>, vector<16x1x256xf32>,
    %248 = vector.shape_cast %245 : vector<16x256xf32> to vector<16x1x256xf32>
    %c0_130 = arith.constant 0 : index
    %c1_131 = arith.constant 1 : index
    %c0_132 = arith.constant 0 : index
    %249 = vector.load %arg17[%c0_130, %c1_131, %c0_132] : memref<33x2x256xf32, #tpu.memory_space<vmem>>, vector<16x1x256xf32>
    tpu.vector_store %arg17[%c0_130, %c1_131, %c0_132], %248 {strides = array<i32>} : memref<33x2x256xf32, #tpu.memory_space<vmem>>, vector<16x1x256xf32>,
    %c0_133 = arith.constant 0 : index
    %c0_134 = arith.constant 0 : index
    %c0_135 = arith.constant 0 : index
    %250 = vector.load %arg17[%c0_133, %c0_134, %c0_135] : memref<33x2x256xf32, #tpu.memory_space<vmem>>, vector<16x2x256xf32>
    %251 = vector.shape_cast %250 : vector<16x2x256xf32> to vector<32x256xf32>
    %cst_136 = arith.constant dense<0.000000e+00> : vector<256xf32>
    %252 = vector.multi_reduction <add>, %251, %cst_136 [0] : vector<32x256xf32> to vector<256xf32>
    %253 = vector.shape_cast %252 : vector<256xf32> to vector<1x256xf32>
    %254 = arith.mulf %251, %251 : vector<32x256xf32>
    %cst_137 = arith.constant dense<0.000000e+00> : vector<256xf32>
    %255 = vector.multi_reduction <add>, %254, %cst_137 [0] : vector<32x256xf32> to vector<256xf32>
    %256 = vector.shape_cast %255 : vector<256xf32> to vector<1x256xf32>
    %257 = tpu.iota {dimensions = array<i32: 0>} : vector<256x16xi32>
    %c15_i32_138 = arith.constant 15 : i32
    %258 = vector.broadcast %c15_i32_138 : i32 to vector<256x16xi32>
    %259 = arith.andi %257, %258 : vector<256x16xi32>
    %260 = tpu.iota {dimensions = array<i32: 1>} : vector<256x16xi32>
    %261 = arith.cmpi eq, %259, %260 : vector<256x16xi32>
    %cst_139 = arith.constant 1.000000e+00 : f32
    %cst_140 = arith.constant 0.000000e+00 : f32
    %262 = vector.broadcast %cst_139 : f32 to vector<256x16xf32>
    %263 = vector.broadcast %cst_140 : f32 to vector<256x16xf32>
    %264 = arith.select %261, %262, %263 : vector<256x16xi1>, vector<256x16xf32>
    %cst_141 = arith.constant dense<0.000000e+00> : vector<1x16xf32>
    %265 = tpu.matmul %253, %264, %cst_141 {dimension_numbers = #tpu.dot_dimension_numbers<[1], [0], [0], [1], [0, 0, 1, 1], [], []>} : vector<1x256xf32>, vector<256x16xf32>, vector<1x16xf32> -> vector<1x16xf32>
    %cst_142 = arith.constant dense<0.000000e+00> : vector<1x16xf32>
    %266 = tpu.matmul %256, %264, %cst_142 {dimension_numbers = #tpu.dot_dimension_numbers<[1], [0], [0], [1], [0, 0, 1, 1], [], []>} : vector<1x256xf32>, vector<256x16xf32>, vector<1x16xf32> -> vector<1x16xf32>
    %cst_143 = arith.constant 5.120000e+02 : f32
    %267 = vector.broadcast %cst_143 : f32 to vector<1x16xf32>
    %268 = arith.divf %265, %267 : vector<1x16xf32>
    %cst_144 = arith.constant 5.120000e+02 : f32
    %269 = vector.broadcast %cst_144 : f32 to vector<1x16xf32>
    %270 = arith.divf %266, %269 : vector<1x16xf32>
    %271 = arith.mulf %268, %268 : vector<1x16xf32>
    %272 = arith.subf %270, %271 : vector<1x16xf32>
    %cst_145 = arith.constant 0.000000e+00 : f32
    %273 = vector.broadcast %cst_145 : f32 to vector<1x16xf32>
    %274 = arith.maximumf %272, %273 : vector<1x16xf32>
    %c0_146 = arith.constant 0 : index
    %c0_147 = arith.constant 0 : index
    %275 = vector.load %arg10[%c0_146, %c0_147] : memref<1x16xf32, #tpu.memory_space<vmem>>, vector<1x16xf32>
    %cst_148 = arith.constant 9.99999974E-6 : f32
    %276 = vector.broadcast %cst_148 : f32 to vector<1x16xf32>
    %277 = arith.addf %274, %276 : vector<1x16xf32>
    %278 = math.rsqrt %277 : vector<1x16xf32>
    %279 = arith.mulf %275, %278 : vector<1x16xf32>
    %c0_149 = arith.constant 0 : index
    %c0_150 = arith.constant 0 : index
    %280 = vector.load %arg14[%c0_149, %c0_150] : memref<1x16xf32, #tpu.memory_space<vmem>>, vector<1x16xf32>
    %281 = arith.mulf %268, %279 : vector<1x16xf32>
    %282 = arith.subf %280, %281 : vector<1x16xf32>
    %283 = tpu.iota {dimensions = array<i32: 1>} : vector<16x256xi32>
    %c15_i32_151 = arith.constant 15 : i32
    %284 = vector.broadcast %c15_i32_151 : i32 to vector<16x256xi32>
    %285 = arith.andi %283, %284 : vector<16x256xi32>
    %286 = tpu.iota {dimensions = array<i32: 0>} : vector<16x256xi32>
    %287 = arith.cmpi eq, %285, %286 : vector<16x256xi32>
    %cst_152 = arith.constant 1.000000e+00 : f32
    %cst_153 = arith.constant 0.000000e+00 : f32
    %288 = vector.broadcast %cst_152 : f32 to vector<16x256xf32>
    %289 = vector.broadcast %cst_153 : f32 to vector<16x256xf32>
    %290 = arith.select %287, %288, %289 : vector<16x256xi1>, vector<16x256xf32>
    %cst_154 = arith.constant dense<0.000000e+00> : vector<1x256xf32>
    %291 = tpu.matmul %279, %290, %cst_154 {dimension_numbers = #tpu.dot_dimension_numbers<[1], [0], [0], [1], [0, 0, 1, 1], [], []>} : vector<1x16xf32>, vector<16x256xf32>, vector<1x256xf32> -> vector<1x256xf32>
    %cst_155 = arith.constant dense<0.000000e+00> : vector<1x256xf32>
    %292 = tpu.matmul %282, %290, %cst_155 {dimension_numbers = #tpu.dot_dimension_numbers<[1], [0], [0], [1], [0, 0, 1, 1], [], []>} : vector<1x16xf32>, vector<16x256xf32>, vector<1x256xf32> -> vector<1x256xf32>
    %293 = vector.broadcast %291 : vector<1x256xf32> to vector<32x256xf32>
    %294 = arith.mulf %251, %293 : vector<32x256xf32>
    %295 = vector.broadcast %292 : vector<1x256xf32> to vector<32x256xf32>
    %296 = arith.addf %294, %295 : vector<32x256xf32>
    %cst_156 = arith.constant 0.000000e+00 : f32
    %297 = vector.broadcast %cst_156 : f32 to vector<32x256xf32>
    %298 = arith.cmpf ogt, %296, %297 : vector<32x256xf32>
    %cst_157 = arith.constant 2.000000e-01 : f32
    %299 = vector.broadcast %cst_157 : f32 to vector<32x256xf32>
    %300 = arith.mulf %299, %296 : vector<32x256xf32>
    %301 = arith.select %298, %296, %300 : vector<32x256xi1>, vector<32x256xf32>
    %302 = arith.truncf %301 : vector<32x256xf32> to vector<32x256xbf16>
    %c0_158 = arith.constant 0 : index
    %c0_159 = arith.constant 0 : index
    %303 = vector.load %arg6[%c0_158, %c0_159] : memref<256x128xbf16, #tpu.memory_space<vmem>>, vector<256x128xbf16>
    %cst_160 = arith.constant dense<0.000000e+00> : vector<32x128xf32>
    %304 = tpu.matmul %302, %303, %cst_160 {dimension_numbers = #tpu.dot_dimension_numbers<[1], [0], [0], [1], [0, 0, 1, 1], [], []>} : vector<32x256xbf16>, vector<256x128xbf16>, vector<32x128xf32> -> vector<32x128xf32>
    %305 = vector.extract_strided_slice %304 {offsets = [0, 32], sizes = [32, 32], strides = [1, 1]} : vector<32x128xf32> to vector<32x32xf32>
    %306 = vector.extract_strided_slice %304 {offsets = [0, 64], sizes = [32, 32], strides = [1, 1]} : vector<32x128xf32> to vector<32x32xf32>
    %307 = tpu.iota {dimensions = array<i32: 0>} : vector<32x32xi32>
    %c15_i32_161 = arith.constant 15 : i32
    %308 = vector.broadcast %c15_i32_161 : i32 to vector<32x32xi32>
    %309 = arith.andi %307, %308 : vector<32x32xi32>
    %310 = vector.extract_strided_slice %304 {offsets = [0, 96], sizes = [32, 32], strides = [1, 1]} : vector<32x128xf32> to vector<32x32xf32>
    %c1_i32_162 = arith.constant 1 : i32
    %311 = tpu.dynamic_rotate %310 by %c1_i32_162 dim 0 : vector<32x32xf32>, i32 -> vector<32x32xf32>
    %312 = vector.extract_strided_slice %304 {offsets = [0, 0], sizes = [32, 32], strides = [1, 1]} : vector<32x128xf32> to vector<32x32xf32>
    %c31_i32_163 = arith.constant 31 : i32
    %313 = tpu.dynamic_rotate %312 by %c31_i32_163 dim 0 : vector<32x32xf32>, i32 -> vector<32x32xf32>
    %c0_i32_164 = arith.constant 0 : i32
    %314 = vector.broadcast %c0_i32_164 : i32 to vector<32x32xi32>
    %315 = arith.cmpi ne, %309, %314 : vector<32x32xi32>
    %cst_165 = arith.constant 0.000000e+00 : f32
    %316 = vector.broadcast %cst_165 : f32 to vector<32x32xf32>
    %317 = arith.select %315, %311, %316 : vector<32x32xi1>, vector<32x32xf32>
    %318 = arith.addf %305, %317 : vector<32x32xf32>
    %c15_i32_166 = arith.constant 15 : i32
    %319 = vector.broadcast %c15_i32_166 : i32 to vector<32x32xi32>
    %320 = arith.cmpi ne, %309, %319 : vector<32x32xi32>
    %cst_167 = arith.constant 0.000000e+00 : f32
    %321 = vector.broadcast %cst_167 : f32 to vector<32x32xf32>
    %322 = arith.select %320, %313, %321 : vector<32x32xi1>, vector<32x32xf32>
    %323 = arith.addf %306, %322 : vector<32x32xf32>
    %324 = tpu.concatenate %318, %323 in 1 : vector<32x32xf32>, vector<32x32xf32> -> vector<32x64xf32>
    %c0_168 = arith.constant 0 : index
    %c0_169 = arith.constant 0 : index
    %325 = vector.load %arg15[%c0_168, %c0_169] : memref<1x64xf32, #tpu.memory_space<vmem>>, vector<1x64xf32>
    %326 = vector.broadcast %325 : vector<1x64xf32> to vector<32x64xf32>
    %327 = arith.addf %324, %326 : vector<32x64xf32>
    %328 = math.tanh %327 : vector<32x64xf32>
    %c0_170 = arith.constant 0 : index
    %c0_171 = arith.constant 0 : index
    %329 = vector.load %arg16[%c0_170, %c0_171] : memref<32x64xf32, #tpu.memory_space<vmem>>, vector<32x64xf32>
    tpu.vector_store %arg16[%c0_170, %c0_171], %328 {strides = array<i32>} : memref<32x64xf32, #tpu.memory_space<vmem>>, vector<32x64xf32>,
    return
  }
  func.func @transform_0(%arg0: i32) -> (i32, i32) {
    %c0_i32 = arith.constant 0 : i32
    %c0_i32_0 = arith.constant 0 : i32
    %c0_i32_1 = arith.constant 0 : i32
    return %c0_i32, %c0_i32_0 : i32, i32
  }
  func.func @transform_1(%arg0: i32) -> (i32, i32) {
    %c0_i32 = arith.constant 0 : i32
    %c0_i32_0 = arith.constant 0 : i32
    %c0_i32_1 = arith.constant 0 : i32
    return %c0_i32, %c0_i32_0 : i32, i32
  }
  func.func @transform_2(%arg0: i32) -> (i32, i32) {
    %c0_i32 = arith.constant 0 : i32
    %c0_i32_0 = arith.constant 0 : i32
    %c0_i32_1 = arith.constant 0 : i32
    return %c0_i32, %c0_i32_0 : i32, i32
  }
  func.func @transform_3(%arg0: i32) -> (i32, i32) {
    %c0_i32 = arith.constant 0 : i32
    %c0_i32_0 = arith.constant 0 : i32
    %c0_i32_1 = arith.constant 0 : i32
    return %c0_i32, %c0_i32_0 : i32, i32
  }
  func.func @transform_4(%arg0: i32) -> (i32, i32) {
    %c0_i32 = arith.constant 0 : i32
    %c0_i32_0 = arith.constant 0 : i32
    %c0_i32_1 = arith.constant 0 : i32
    return %c0_i32, %c0_i32_0 : i32, i32
  }
  func.func @transform_5(%arg0: i32) -> (i32, i32) {
    %c0_i32 = arith.constant 0 : i32
    %c0_i32_0 = arith.constant 0 : i32
    %c0_i32_1 = arith.constant 0 : i32
    return %c0_i32, %c0_i32_0 : i32, i32
  }
  func.func @transform_6(%arg0: i32) -> (i32, i32) {
    %c0_i32 = arith.constant 0 : i32
    %c0_i32_0 = arith.constant 0 : i32
    %c0_i32_1 = arith.constant 0 : i32
    return %c0_i32, %c0_i32_0 : i32, i32
  }
  func.func @transform_7(%arg0: i32) -> (i32, i32) {
    %c0_i32 = arith.constant 0 : i32
    %c0_i32_0 = arith.constant 0 : i32
    %c0_i32_1 = arith.constant 0 : i32
    return %c0_i32, %c0_i32_0 : i32, i32
  }
  func.func @transform_8(%arg0: i32) -> (i32, i32) {
    %c0_i32 = arith.constant 0 : i32
    %c0_i32_0 = arith.constant 0 : i32
    %c0_i32_1 = arith.constant 0 : i32
    return %c0_i32, %c0_i32_0 : i32, i32
  }
  func.func @transform_9(%arg0: i32) -> (i32, i32) {
    %c0_i32 = arith.constant 0 : i32
    %c0_i32_0 = arith.constant 0 : i32
    %c0_i32_1 = arith.constant 0 : i32
    return %c0_i32, %c0_i32_0 : i32, i32
  }
  func.func @transform_10(%arg0: i32) -> (i32, i32) {
    %c0_i32 = arith.constant 0 : i32
    %c0_i32_0 = arith.constant 0 : i32
    %c0_i32_1 = arith.constant 0 : i32
    return %c0_i32, %c0_i32_0 : i32, i32
  }
  func.func @transform_11(%arg0: i32) -> (i32, i32) {
    %c0_i32 = arith.constant 0 : i32
    %c0_i32_0 = arith.constant 0 : i32
    %c0_i32_1 = arith.constant 0 : i32
    return %c0_i32, %c0_i32_0 : i32, i32
  }
  func.func @transform_12(%arg0: i32) -> (i32, i32) {
    %c0_i32 = arith.constant 0 : i32
    %c0_i32_0 = arith.constant 0 : i32
    %c0_i32_1 = arith.constant 0 : i32
    return %c0_i32, %c0_i32_0 : i32, i32
  }
  func.func @transform_13(%arg0: i32) -> (i32, i32) {
    %c0_i32 = arith.constant 0 : i32
    %c0_i32_0 = arith.constant 0 : i32
    %c0_i32_1 = arith.constant 0 : i32
    return %c0_i32, %c0_i32_0 : i32, i32
  }
  func.func @transform_14(%arg0: i32) -> (i32, i32) {
    %c0_i32 = arith.constant 0 : i32
    %c0_i32_0 = arith.constant 0 : i32
    %c0_i32_1 = arith.constant 0 : i32
    return %c0_i32, %c0_i32_0 : i32, i32
  }
  func.func @transform_15(%arg0: i32) -> (i32, i32) {
    %c0_i32 = arith.constant 0 : i32
    %c0_i32_0 = arith.constant 0 : i32
    %c0_i32_1 = arith.constant 0 : i32
    return %c0_i32, %c0_i32_0 : i32, i32
  }
}

</mosaic_0001>

<bundles_post_ra>
// kernel: tpu_custom_call.1
= control target key start
LH: loop header
LB: loop body
LE: loop exit
PB: predicated region body
PF: predicated region fallthrough
CT: control target
= control target key end

     0   :  { %s10864_s0 = inlined_call_operand.hbm [shape: f32[2,32], index: 0, kind: input, shape index: {}]   ;;  %s10865_s1 = inlined_call_operand.hbm [shape: bf16[32,1024], index: 1, kind: input, shape index: {}]   ;;  %s10866_s2 = inlined_call_operand.hbm [shape: bf16[256,1024], index: 2, kind: input, shape index: {}]   ;;  %s10867_s3 = inlined_call_operand.hbm [shape: bf16[256,1024], index: 3, kind: input, shape index: {}]   ;;  %s10868_s4 = inlined_call_operand.hbm [shape: bf16[256,1024], index: 4, kind: input, shape index: {}]   ;;  %s10869_s5 = inlined_call_operand.hbm [shape: bf16[256,128], index: 5, kind: input, shape index: {}]   ;;  %s10870_s6 = inlined_call_operand.vmem [shape: f32[1,128], index: 6, kind: input, shape index: {}]   ;;  %s10871_s7 = inlined_call_operand.vmem [shape: f32[1,64], index: 7, kind: input, shape index: {}]   ;;  %s10872_s8 = inlined_call_operand.vmem [shape: f32[1,32], index: 8, kind: input, shape index: {}]   ;;  %s10873_s9 = inlined_call_operand.vmem [shape: f32[1,16], index: 9, kind: input, shape index: {}]   ;;  %s10874_s10 = inlined_call_operand.vmem [shape: f32[1,128], index: 10, kind: input, shape index: {}]   ;;  %s10875_s11 = inlined_call_operand.vmem [shape: f32[1,64], index: 11, kind: input, shape index: {}]   ;;  %s10876_s12 = inlined_call_operand.vmem [shape: f32[1,32], index: 12, kind: input, shape index: {}]   ;;  %s10877_s13 = inlined_call_operand.vmem [shape: f32[1,16], index: 13, kind: input, shape index: {}]   ;;  %s10878_s14 = inlined_call_operand.vmem [shape: f32[1,64], index: 14, kind: input, shape index: {}]   ;;  %s10879_s15 = inlined_call_operand.hbm [shape: f32[32,64], index: 15, kind: output, shape index: {}]  }
   0x1   :  { %10907 = sst [smem:[#allocation32_spill]] %s10879_s15 }
   0x2   :  { %20 = vsyncpa [#allocation4], 0 }
   0x3   :  { %21 = vsyncpa [#allocation7], 0 }
   0x4   :  { %22 = vsyncpa [#allocation10], 0 }
   0x5   :  { %23 = vsyncpa [#allocation13], 0 }
   0x6   :  { %24 = vsyncpa [#allocation5], 0  ;;  %s8787_s18 = smov [#allocation6]   ;;  %s8623_s22 = scalar_lea.hbm %s10865_s1, 2048 }
   0x7   :  { %s40_s19 = sshll.u32 %s8787_s18, 4  ;;  %p8624_p0 = scmp.ne.s32.totalorder %s10865_s1, %s8623_s22  ;;  %s41_s19 = int_to_ptr.vmem [resolvable:$true] %s40_s19 }
   0x8   :  { %p8627_p1 = scmp.lt.u32.totalorder %s8623_s22, %s10865_s1 }
   0xa   :  { %p8629_p2 = pnand %p8627_p1, %p8624_p0 }
   0xc   :  { %8632 = shalt.err (!%p8629_p2)
}
   0xd   :  { %s8633_s27 = scalar_lea.vmem %s41_s19, 2048  ;;  %p8638_p4 = scmp.lt.s32.totalorder %s41_s19, %s41_s19 }
   0xe   :  { %p8634_p3 = scmp.ne.s32.totalorder %s41_s19, %s8633_s27  ;;  %p8639_p5 = scmp.lt.s32.totalorder %s8633_s27, %s8633_s27 }
  0x10   :  { %p8640_p6 = por %p8639_p5, %p8638_p4 }
  0x12   :  { %p8641_p7 = pnand %p8640_p6, %p8634_p3 }
  0x14   :  { %8644 = shalt.err (!%p8641_p7)
}
  0x15   :  { %s8788_s28 = smov 512   ;;  %s8789_s29 = smov 32  }
  0x16   :  { %46 = dma.hbm_to_vmem [thread:$0]  %s10865_s1, 2048, %s41_s19, [#allocation7], %s8788_s28, %s8788_s28, %s8789_s29  }
  0x17   :  { %s8790_s17 = smov [#allocation9]   ;;  %s8791_s20 = smov [#allocation3]  }
  0x18   :  { %s64_s18 = sshll.u32 %s8790_s17, 4  ;;  %s31_s21 = sshll.u32 %s8791_s20, 4  ;;  %s65_s18 = int_to_ptr.vmem [resolvable:$true] %s64_s18  ;;  %s32_s21 = int_to_ptr.vmem [resolvable:$true] %s31_s21 }
  0x19   :  { %s8645_s24 = scalar_lea.hbm %s10867_s3, 16384 }
  0x1a   :  { %p8646_p8 = scmp.ne.s32.totalorder %s10867_s3, %s8645_s24  ;;  %p8649_p9 = scmp.lt.u32.totalorder %s8645_s24, %s10867_s3 }
  0x1c   :  { %p8651_p10 = pnand %p8649_p9, %p8646_p8 }
  0x1e   :  { %8654 = shalt.err (!%p8651_p10)
}
  0x1f   :  { %s8655_s1 = scalar_lea.vmem %s65_s18, 16384  ;;  %p8660_p12 = scmp.lt.s32.totalorder %s65_s18, %s65_s18 }
  0x20   :  { %p8656_p11 = scmp.ne.s32.totalorder %s65_s18, %s8655_s1  ;;  %p8661_p13 = scmp.lt.s32.totalorder %s8655_s1, %s8655_s1 }
  0x22   :  { %p8662_p0 = por %p8661_p13, %p8660_p12 }
  0x24   :  { %p8663_p1 = pnand %p8662_p0, %p8656_p11 }
  0x26   :  { %8666 = shalt.err (!%p8663_p1)
}
  0x27   :  { %70 = dma.hbm_to_vmem [thread:$0]  %s10867_s3, 16384, %s65_s18, [#allocation10], %s8788_s28, %s8788_s28, %s8789_s29  }
  0x28   :  { %s8667_s17 = scalar_lea.hbm %s10864_s0, 32 }
  0x29   :  { %p8668_p2 = scmp.ne.s32.totalorder %s10864_s0, %s8667_s17  ;;  %p8671_p3 = scmp.lt.u32.totalorder %s8667_s17, %s10864_s0 }
  0x2b   :  { %p8673_p4 = pnand %p8671_p3, %p8668_p2 }
  0x2d   :  { %8676 = shalt.err (!%p8673_p4)
}
  0x2e   :  { %s8677_s25 = scalar_lea.vmem %s32_s21, 32  ;;  %p8682_p6 = scmp.lt.s32.totalorder %s32_s21, %s32_s21 }
  0x2f   :  { %p8678_p5 = scmp.ne.s32.totalorder %s32_s21, %s8677_s25  ;;  %p8683_p7 = scmp.lt.s32.totalorder %s8677_s25, %s8677_s25 }
  0x31   :  { %p8684_p8 = por %p8683_p7, %p8682_p6 }
  0x33   :  { %p8685_p9 = pnand %p8684_p8, %p8678_p5 }
  0x35   :  { %8688 = shalt.err (!%p8685_p9)
}
  0x36   :  { %34 = dma.hbm_to_vmem [thread:$0]  %s10864_s0, 32, %s32_s21, [#allocation4]  }
  0x37   :  { %s8792_s26 = smov [#allocation8]   ;;  %s8793_s1 = smov [#allocation11]  }
  0x38   :  { %s52_s27 = sshll.u32 %s8792_s26, 4  ;;  %s76_s19 = sshll.u32 %s8793_s1, 4  ;;  %s53_s27 = int_to_ptr.vmem [resolvable:$true] %s52_s27  ;;  %s77_s19 = int_to_ptr.vmem [resolvable:$true] %s76_s19 }
  0x39   :  { %s8689_s15 = scalar_lea.hbm %s10866_s2, 16384 }
  0x3a   :  { %p8690_p10 = scmp.ne.s32.totalorder %s10866_s2, %s8689_s15  ;;  %p8693_p11 = scmp.lt.u32.totalorder %s8689_s15, %s10866_s2 }
  0x3c   :  { %p8695_p12 = pnand %p8693_p11, %p8690_p10 }
  0x3e   :  { %8698 = shalt.err (!%p8695_p12)
}
  0x3f   :  { %s8699_s0 = scalar_lea.vmem %s53_s27, 16384  ;;  %p8704_p0 = scmp.lt.s32.totalorder %s53_s27, %s53_s27 }
  0x40   :  { %p8700_p13 = scmp.ne.s32.totalorder %s53_s27, %s8699_s0  ;;  %p8705_p1 = scmp.lt.s32.totalorder %s8699_s0, %s8699_s0 }
  0x42   :  { %p8706_p2 = por %p8705_p1, %p8704_p0 }
  0x44   :  { %p8707_p3 = pnand %p8706_p2, %p8700_p13 }
  0x46   :  { %8710 = shalt.err (!%p8707_p3)
}
  0x47   :  { %58 = dma.hbm_to_vmem [thread:$0]  %s10866_s2, 16384, %s53_s27, [#allocation7], %s8788_s28, %s8788_s28, %s8789_s29  }
  0x48   :  { %s8711_s18 = scalar_lea.hbm %s10868_s4, 16384 }
  0x49   :  { %p8712_p4 = scmp.ne.s32.totalorder %s10868_s4, %s8711_s18  ;;  %p8715_p5 = scmp.lt.u32.totalorder %s8711_s18, %s10868_s4 }
  0x4b   :  { %p8717_p6 = pnand %p8715_p5, %p8712_p4 }
  0x4d   :  { %8720 = shalt.err (!%p8717_p6)
}
  0x4e   :  { %s8721_s15 = scalar_lea.vmem %s77_s19, 16384  ;;  %p8726_p8 = scmp.lt.s32.totalorder %s77_s19, %s77_s19 }
  0x4f   :  { %p8722_p7 = scmp.ne.s32.totalorder %s77_s19, %s8721_s15  ;;  %p8727_p9 = scmp.lt.s32.totalorder %s8721_s15, %s8721_s15 }
  0x51   :  { %p8728_p10 = por %p8727_p9, %p8726_p8 }
  0x53   :  { %p8729_p11 = pnand %p8728_p10, %p8722_p7 }
  0x55   :  { %8732 = shalt.err (!%p8729_p11)
}
  0x56   :  { %82 = dma.hbm_to_vmem [thread:$0]  %s10868_s4, 16384, %s77_s19, [#allocation10], %s8788_s28, %s8788_s28, %s8789_s29  }
  0x57   :  { %s8794_s17 = smov [#allocation12]   ;;  %s8733_s0 = scalar_lea.hbm %s10869_s5, 2048 }
  0x58   :  { %s88_s20 = sshll.u32 %s8794_s17, 4  ;;  %p8734_p12 = scmp.ne.s32.totalorder %s10869_s5, %s8733_s0  ;;  %s89_s20 = int_to_ptr.vmem [resolvable:$true] %s88_s20 }
  0x59   :  { %p8737_p13 = scmp.lt.u32.totalorder %s8733_s0, %s10869_s5 }
  0x5b   :  { %p8739_p0 = pnand %p8737_p13, %p8734_p12 }
  0x5d   :  { %8742 = shalt.err (!%p8739_p0)
}
  0x5e   :  { %s8743_s18 = scalar_lea.vmem %s89_s20, 2048  ;;  %p8748_p2 = scmp.lt.s32.totalorder %s89_s20, %s89_s20 }
  0x5f   :  { %p8744_p1 = scmp.ne.s32.totalorder %s89_s20, %s8743_s18  ;;  %p8749_p3 = scmp.lt.s32.totalorder %s8743_s18, %s8743_s18 }
  0x61   :  { %p8750_p4 = por %p8749_p3, %p8748_p2 }
  0x63   :  { %p8751_p5 = pnand %p8750_p4, %p8744_p1 }
  0x65   :  { %8754 = shalt.err (!%p8751_p5)
}
  0x66   :  { %s8795_s4 = smov 64   ;;  %s8796_s28 = smov 4  }
  0x67   :  { %94 = dma.hbm_to_vmem [thread:$0]  %s10869_s5, 2048, %s89_s20, [#allocation13], %s8795_s4, %s8795_s4, %s8796_s28  }
  0x68   :  { %8777 = dma.done.wait [#allocation4], 32  }
  0x69   :  { %8778 = vsyncadd [#allocation4], 4294967264 }
  0x6a   :  { %8779 = dma.done.wait [#allocation7], 18432  }
  0x6b   :  { %8780 = vsyncadd [#allocation7], 4294948864 }
  0x6c   :  { %8781 = dma.done.wait [#allocation10], 32768  }
  0x6d   :  { %8782 = vsyncadd [#allocation10], 4294934528 }
  0x6e   :  { %8783 = dma.done.wait [#allocation13], 2048  }
  0x6f   :  { %8784 = vsyncadd [#allocation13], 4294965248  ;;  %v8797_v0 = vmov 0   ;;  %v134_v1 = vld [vmem:[#allocation6 + $0x8] sm:$0xff]  ;;  %v132_v8 = vld [vmem:[#allocation3] sm:$0x3]  ;;  %v274_v19 = vlaneseq }
  0x70   :  { %218 = vmatprep.mubr.bf16.mxu1 %v8797_v0  ;;  %v136_v2 = vld [vmem:[#allocation6 + $0x28] sm:$0xff]  ;;  %vm182_vm0 = vcmask 261120   ;;  %v135_v9 = vld [vmem:[#allocation6 + $0x10] sm:$0xff]  ;;  %v133_v15 = vpack.c.bf16 %v132_v8, %v132_v8  ;;  %v10881_v32 = vmov 1.0|1.0  }
  0x71   :  { %v138_v3 = vld [vmem:[#allocation6 + $0x48] sm:$0xff]  ;;  %v7081_v4 = vcombine.high %v134_v1, %v136_v2  ;;  %v7080_v5 = vcombine.low %v134_v1, %v136_v2  ;;  %v137_v10 = vld [vmem:[#allocation6 + $0x30] sm:$0xff]  ;;  %v8975_v20 = vshrl.u32 %v274_v19, 7  ;;  %v8989_v26 = vand.u32 127, %v274_v19 }
  0x72   :  { %v140_v6 = vld [vmem:[#allocation6 + $0x68] sm:$0xff]  ;;  %v139_v12 = vld [vmem:[#allocation6 + $0x50] sm:$0xff]  ;;  %v7083_v14 = vcombine.high %v135_v9, %v137_v10  ;;  %v7082_v16 = vcombine.low %v135_v9, %v137_v10  ;;  %v8799_v61 = vmov 1966171168  }
  0x73   :  { %v7085_v7 = vcombine.high %v138_v3, %v140_v6  ;;  %186 = vmatprep.subr.bf16.mxu1 %v7081_v4  ;;  %v7084_v11 = vcombine.low %v138_v3, %v140_v6  ;;  %v141_v13 = vld [vmem:[#allocation6 + $0x70] sm:$0xff]  ;;  %v8978_v21 = vadd.s32 128, %v8975_v20  ;;  %v8981_v22 = vadd.s32 136, %v8975_v20 }
  0x74   :  { %187 = vmatpush1.bf16.msra.mxu1 %v7080_v5  ;;  %v7087_v17 = vcombine.high %v139_v12, %v141_v13  ;;  %v7086_v18 = vcombine.low %v139_v12, %v141_v13  ;;  %v8984_v23 = vadd.s32 8, %v8975_v20  ;;  %v425_v27 = vand.u32 127, %v8975_v20 }
  0x75   :  { %188 = vmatprep.subr.bf16.mxu1 %v7085_v7  ;;  %v441_v24 = vand.u32 127, %v8978_v21  ;;  %v442_v25 = vand.u32 127, %v8981_v22  ;;  %v8996_v29 = vadd.s32 144, %v8975_v20  ;;  %v8999_v30 = vadd.s32 152, %v8975_v20 }
  0x76   :  { %v426_v28 = vand.u32 127, %v8984_v23  ;;  %vm459_vm4 = vcmp.eq.s32.totalorder %v425_v27, %v8989_v26  ;;  %v9004_v31 = vadd.s32 16, %v8975_v20  ;;  %v9011_v35 = vadd.s32 24, %v8975_v20 }
  0x77   :  { %vm475_vm1 = vcmp.eq.s32.totalorder %v441_v24, %v8989_v26  ;;  %vm476_vm2 = vcmp.eq.s32.totalorder %v442_v25, %v8989_v26  ;;  %v443_v33 = vand.u32 127, %v8996_v29  ;;  %v444_v34 = vand.u32 127, %v8999_v30 }
  0x78   :  { %189 = vmatpush1.bf16.msra.mxu1 %v7084_v11  ;;  %vm8181_vm3 = vmpackc.low %vm476_vm2, %vm475_vm1  ;;  %vm460_vm5 = vcmp.eq.s32.totalorder %v426_v28, %v8989_v26  ;;  %v427_v36 = vand.u32 127, %v9004_v31  ;;  %v428_v37 = vand.u32 127, %v9011_v35  ;;  %v9020_v38 = vadd.s32 160, %v8975_v20 }
  0x79   :  { %227 = vmatprep.subr.bf16.mxu1 %v7083_v14  ;;  %8182 = vmatprep.subr.msk.bf16.mxu0 %vm8181_vm3, %v10881_v32  ;;  %vm8183_vm6 = vmpackc.low %vm460_vm5, %vm459_vm4  ;;  %vm477_vm7 = vcmp.eq.s32.totalorder %v443_v33, %v8989_v26  ;;  %vm478_vm8 = vcmp.eq.s32.totalorder %v444_v34, %v8989_v26  ;;  %v9028_v40 = vadd.s32 168, %v8975_v20  ;;  %v9031_v41 = vadd.s32 32, %v8975_v20 }
  0x7a   :  { %8184 = vmatpush3.bf16.msk.msra.mxu0 %vm8183_vm6, %v10881_v32  ;;  %vm8185_vm9 = vmpackc.low %vm478_vm8, %vm477_vm7  ;;  %vm9023_vm10 = vcmp.eq.s32.totalorder %v427_v36, %v8989_v26  ;;  %v9034_v42 = vadd.s32 40, %v8975_v20  ;;  %vm462_vm11 = vcmp.eq.s32.totalorder %v428_v37, %v8989_v26  ;;  %v445_v43 = vand.u32 127, %v9020_v38 }
  0x7b   :  { %7088 = vmatmul.mubr.msk.bf16.vlgmr.msra.gmra.mrb[0].mxu1 %vm182_vm0, %v133_v15  ;;  %8186 = vmatprep.subr.msk.bf16.mxu0 %vm8185_vm9, %v10881_v32  ;;  %v9041_v44 = vadd.s32 176, %v8975_v20  ;;  %v9044_v45 = vadd.s32 184, %v8975_v20  ;;  %vm8187_vm12 = vmpackc.low %vm462_vm11, %vm9023_vm10  ;;  %v446_v46 = vand.u32 127, %v9028_v40  ;;  %v429_v47 = vand.u32 127, %v9031_v41 }
  0x7c   :  { %228 = vmatpush1.bf16.msra.mxu1 %v7082_v16  ;;  %259 = vmatprep.mubr.bf16.mxu1 %v8797_v0  ;;  %v430_v48 = vand.u32 127, %v9034_v42  ;;  %v9052_v49 = vadd.s32 48, %v8975_v20  ;;  %vm9057_vm13 = vcmp.eq.s32.totalorder %v445_v43, %v8989_v26  ;;  %v9064_v53 = vadd.s32 56, %v8975_v20 }
  0x7d   :  { %229 = vmatprep.subr.bf16.mxu1 %v7087_v17  ;;  %v447_v51 = vand.u32 127, %v9041_v44  ;;  %v448_v52 = vand.u32 127, %v9044_v45  ;;  %vm480_vm14 = vcmp.eq.s32.totalorder %v446_v46, %v8989_v26  ;;  %vm9068_vm15 = vcmp.eq.s32.totalorder %v429_v47, %v8989_v26 }
  0x7e   :  { %8188 = vmatpush3.bf16.msk.msra.mxu0 %vm8187_vm12, %v10881_v32  ;;  %vm9073_vm1 = vcmp.eq.s32.totalorder %v430_v48, %v8989_v26  ;;  %v431_v56 = vand.u32 127, %v9052_v49  ;;  %vm8189_vm2 = vmpackc.low %vm480_vm14, %vm9057_vm13  ;;  %v432_v59 = vand.u32 127, %v9064_v53  ;;  %v9092_v60 = vadd.s32 192, %v8975_v20 }
  0x7f   :  { %vm9086_vm4 = vcmp.eq.s32.totalorder %v448_v52, %v8989_v26  ;;  %8190 = vmatprep.subr.msk.bf16.mxu0 %vm8189_vm2, %v10881_v32  ;;  %vm8191_vm5 = vmpackc.low %vm9073_vm1, %vm9068_vm15  ;;  %v9106_v62 = vadd.s32 200, %v8975_v20  ;;  %v9109_v63 = vadd.s32 64, %v8975_v20  ;;  %v9112_v0 = vadd.s32 72, %v8975_v20 }
  0x80   :  { %230 = vmatpush1.bf16.msra.mxu1 %v7086_v18  ;;  %vm9121_vm8 = vcmp.eq.s32.totalorder %v432_v59, %v8989_v26  ;;  %v449_v2 = vand.u32 127, %v9092_v60  ;;  %v9127_v3 = vadd.s32 208, %v8975_v20  ;;  %v9130_v4 = vadd.s32 216, %v8975_v20 }
  0x81   :  { %8214 = vmatprep.subr.msk.bf16.mxu1 %vm8181_vm3, %v10881_v32  ;;  %vm9081_vm3 = vcmp.eq.s32.totalorder %v447_v51, %v8989_v26  ;;  %v450_v5 = vand.u32 127, %v9106_v62  ;;  %v433_v6 = vand.u32 127, %v9109_v63  ;;  %v434_v7 = vand.u32 127, %v9112_v0 }
  0x82   :  { %8192 = vmatpush3.bf16.msk.msra.mxu0 %vm8191_vm5, %v10881_v32  ;;  %vm8193_vm7 = vmpackc.low %vm9086_vm4, %vm9081_vm3  ;;  %v9142_v8 = vadd.s32 80, %v8975_v20  ;;  %vm9145_vm10 = vcmp.eq.s32.totalorder %v449_v2, %v8989_v26  ;;  %v451_v10 = vand.u32 127, %v9127_v3  ;;  %v452_v11 = vand.u32 127, %v9130_v4 }
  0x83   :  { %7089 = vmatmul.mubr.msk.bf16.vlgmr.msra.gmra.mrb[4].mxu1 %vm182_vm0, %v133_v15  ;;  %8194 = vmatprep.subr.msk.bf16.mxu0 %vm8193_vm7, %v10881_v32  ;;  %v9152_v12 = vadd.s32 88, %v8975_v20  ;;  %vm484_vm11 = vcmp.eq.s32.totalorder %v450_v5, %v8989_v26  ;;  %vm9161_vm13 = vcmp.eq.s32.totalorder %v434_v7, %v8989_v26  ;;  %v9182_v24 = vadd.s32 224, %v8975_v20 }
  0x84   :  { %8216 = vmatpush3.bf16.msk.msra.mxu1 %vm8183_vm6, %v10881_v32  ;;  %vm9101_vm6 = vcmp.eq.s32.totalorder %v431_v56, %v8989_v26  ;;  %v435_v15 = vand.u32 127, %v9142_v8  ;;  %vm8197_vm14 = vmpackc.low %vm484_vm11, %vm9145_vm10  ;;  %vm9171_vm15 = vcmp.eq.s32.totalorder %v451_v10, %v8989_v26  ;;  %vm9176_vm1 = vcmp.eq.s32.totalorder %v452_v11, %v8989_v26 }
  0x85   :  { %8218 = vmatprep.subr.msk.bf16.mxu1 %vm8185_vm9, %v10881_v32  ;;  %vm8195_vm9 = vmpackc.low %vm9121_vm8, %vm9101_vm6  ;;  %10926 = vst [vmem:[#allocation20_spill] sm:$0xff] %v9152_v12  ;;  %v436_v18 = vand.u32 127, %v9152_v12  ;;  %v9196_v27 = vadd.s32 232, %v8975_v20  ;;  %v9199_v28 = vadd.s32 96, %v8975_v20  ;;  %v9202_v33 = vadd.s32 104, %v8975_v20 }
  0x86   :  { %8196 = vmatpush3.bf16.msk.msra.mxu0 %vm8195_vm9, %v10881_v32  ;;  %10935 = vst [vmem:[#allocation21_spill] sm:$0xff] %v9182_v24  ;;  %vm9191_vm3 = vcmp.eq.s32.totalorder %v435_v15, %v8989_v26  ;;  %vm8201_vm4 = vmpackc.low %vm9176_vm1, %vm9171_vm15  ;;  %v453_v36 = vand.u32 127, %v9182_v24  ;;  %v9215_v37 = vadd.s32 240, %v8975_v20  ;;  %v9218_v39 = vadd.s32 248, %v8975_v20 }
  0x87   :  { %8198 = vmatprep.subr.msk.bf16.mxu0 %vm8197_vm14, %v10881_v32  ;;  %10938 = vst [vmem:[#allocation22_spill] sm:$0xff] %v9196_v27  ;;  %10939 = vst [vmem:[#allocation23_spill] sm:$0xff] %v9199_v28  ;;  %v454_v43 = vand.u32 127, %v9196_v27  ;;  %v437_v46 = vand.u32 127, %v9199_v28  ;;  %v438_v47 = vand.u32 127, %v9202_v33  ;;  %v9224_v48 = vadd.s32 112, %v8975_v20 }
  0x88   :  { %8220 = vmatpush3.bf16.msk.msra.mxu1 %vm8187_vm12, %v10881_v32  ;;  %vm9156_vm12 = vcmp.eq.s32.totalorder %v433_v6, %v8989_v26  ;;  %10940 = vst [vmem:[#allocation24_spill] sm:$0xff] %v9202_v33  ;;  %10943 = vst [vmem:[#allocation25_spill] sm:$0xff] %v9215_v37  ;;  %vm9239_vm6 = vcmp.eq.s32.totalorder %v453_v36, %v8989_v26  ;;  %v455_v51 = vand.u32 127, %v9215_v37  ;;  %v456_v52 = vand.u32 127, %v9218_v39 }
  0x89   :  { %8222 = vmatprep.subr.msk.bf16.mxu1 %vm8189_vm2, %v10881_v32  ;;  %vm8199_vm2 = vmpackc.low %vm9161_vm13, %vm9156_vm12  ;;  %10944 = vst [vmem:[#allocation26_spill] sm:$0xff] %v9218_v39  ;;  %v9246_v54 = vadd.s32 120, %v8975_v20  ;;  %vm488_vm8 = vcmp.eq.s32.totalorder %v454_v43, %v8989_v26  ;;  %vm9268_vm10 = vcmp.eq.s32.totalorder %v437_v46, %v8989_v26  ;;  %vm472_vm11 = vcmp.eq.s32.totalorder %v438_v47, %v8989_v26 }
  0x8a   :  { %10945 = vst [vmem:[#allocation27_spill] sm:$0xff] %v9224_v48  ;;  %8200 = vmatpush3.bf16.msk.msra.mxu0 %vm8199_vm2, %v10881_v32  ;;  %v439_v56 = vand.u32 127, %v9224_v48  ;;  %vm489_vm12 = vcmp.eq.s32.totalorder %v455_v51, %v8989_v26  ;;  %vm490_vm13 = vcmp.eq.s32.totalorder %v456_v52, %v8989_v26  ;;  %v9292_v58 = vadd.s32 128, %v8989_v26 }
  0x8b   :  { %10948 = vst [vmem:[#allocation28_spill] sm:$0xff] %v9246_v54  ;;  %8202 = vmatprep.subr.msk.bf16.mxu0 %vm8201_vm4, %v10881_v32  ;;  %v440_v57 = vand.u32 127, %v9246_v54  ;;  %vm8209_vm15 = vmpackc.low %vm490_vm13, %vm489_vm12  ;;  %v272_v1 = vunpack.c.l.s4 %v8799_v61  ;;  %v10953_v14 = vmov 0  ;;  %v8800_v51 = vmov 1983009808  }
  0x8c   :  { %8224 = vmatpush3.bf16.msk.msra.mxu1 %vm8191_vm5, %v10881_v32  ;;  %vm9209_vm5 = vcmp.eq.s32.totalorder %v436_v18, %v8989_v26  ;;  %vm473_vm1 = vcmp.eq.s32.totalorder %v439_v56, %v8989_v26  ;;  %10951 = vst [vmem:[#allocation29_spill] sm:$0xff] %v9292_v58  ;;  %v9295_v59 = vand.u32 127, %v9292_v58  ;;  %v339_v52 = vunpack.c.l.s4 %v8800_v51 }
  0x8d   :  { %8226 = vmatprep.subr.msk.bf16.mxu1 %vm8193_vm7, %v10881_v32  ;;  %vm8203_vm7 = vmpackc.low %vm9209_vm5, %vm9191_vm3  ;;  %v273_v2 = vunpack.c.0.s8 %v272_v1 }
  0x8e   :  { %8204 = vmatpush3.bf16.msk.msra.mxu0 %vm8203_vm7, %v10881_v32  ;;  %vm682_vm5 = vcmp.eq.s32.totalorder %v9295_v59, %v8984_v23  ;;  %v340_v55 = vunpack.c.0.s8 %v339_v52  ;;  %vm686_vm12 = vcmp.eq.s32.totalorder %v9295_v59, %v9011_v35 }
  0x8f   :  { %v9304_v6 = vsub.s32 %v273_v2, %v8975_v20 }
  0x90   :  { %8228 = vmatpush3.bf16.msk.msra.mxu1 %vm8195_vm9, %v10881_v32  ;;  %vm8205_vm9 = vmpackc.low %vm488_vm8, %vm9239_vm6  ;;  %vm348_vm8 = vcmask 1043456  }
  0x91   :  { %8230 = vmatprep.subr.msk.bf16.mxu1 %vm8197_vm14, %v10881_v32  ;;  %8206 = vmatprep.subr.msk.bf16.mxu0 %vm8205_vm9, %v10881_v32  ;;  %vm8207_vm14 = vmpackc.low %vm472_vm11, %vm9268_vm10  ;;  %10952 = vst [vmem:[#allocation30_spill] sm:$0xff] %v9304_v6  ;;  %vm681_vm10 = vcmp.eq.s32.totalorder %v8989_v26, %v8984_v23  ;;  %vm684_vm11 = vcmp.eq.s32.totalorder %v9295_v59, %v9004_v31 }
  0x92   :  { %8208 = vmatpush3.bf16.msk.msra.mxu0 %vm8207_vm14, %v10881_v32 }
  0x93   :  { %8210 = vmatprep.subr.msk.bf16.mxu0 %vm8209_vm15, %v10881_v32 }
  0x94   :  { %8232 = vmatpush3.bf16.msk.msra.mxu1 %vm8199_vm2, %v10881_v32  ;;  %vm474_vm2 = vcmp.eq.s32.totalorder %v440_v57, %v8989_v26  ;;  %v9328_v57 = vsub.s32 %v340_v55, %v8975_v20 }
  0x95   :  { %8234 = vmatprep.subr.msk.bf16.mxu1 %vm8201_vm4, %v10881_v32  ;;  %vm8211_vm3 = vmpackc.low %vm474_vm2, %vm473_vm1  ;;  %vm680_vm4 = vcmp.eq.s32.totalorder %v9295_v59, %v8975_v20  ;;  %vm685_vm1 = vcmp.eq.s32.totalorder %v8989_v26, %v9011_v35 }
  0x96   :  { %8212 = vmatpush3.bf16.msk.msra.mxu0 %vm8211_vm3, %v10881_v32  ;;  %vm8245_vm6 = vmpackc.low %vm682_vm5, %vm680_vm4  ;;  %vm690_vm4 = vcmp.eq.s32.totalorder %v9295_v59, %v9034_v42 }
  0x97   :  { %8246 = vmatprep.subr.msk.bf16.mxu0 %vm8245_vm6, %v10881_v32 }
  0x98   :  { %8236 = vmatpush3.bf16.msk.msra.mxu1 %vm8203_vm7, %v10881_v32  ;;  %vm9308_vm7 = vcmp.lt.s32.totalorder %v274_v19, 256 }
  0x99   :  { %8238 = vmatprep.subr.msk.bf16.mxu1 %vm8205_vm9, %v10881_v32  ;;  %v10954_v14 = vsel %vm9308_vm7, 4294967295, %v10953_v14  ;;  %vm679_vm9 = vcmp.eq.s32.totalorder %v8989_v26, %v8975_v20 }
  0x9a   :  { %10955 = vst [vmem:[#allocation31_spill] sm:$0xff] %v10954_v14  ;;  %vm8247_vm13 = vmpackc.low %vm681_vm10, %vm679_vm9  ;;  %vm692_vm10 = vcmp.eq.s32.totalorder %v9295_v59, %v9052_v49 }
  0x9c   :  { %8240 = vmatpush3.bf16.msk.msra.mxu1 %vm8207_vm14, %v10881_v32  ;;  %vm8249_vm14 = vmpackc.low %vm686_vm12, %vm684_vm11  ;;  %vm694_vm11 = vcmp.eq.s32.totalorder %v9295_v59, %v9064_v53 }
  0x9d   :  { %8242 = vmatprep.subr.msk.bf16.mxu1 %vm8209_vm15, %v10881_v32  ;;  %vm683_vm15 = vcmp.eq.s32.totalorder %v8989_v26, %v9004_v31  ;;  %vm8257_vm12 = vmpackc.low %vm694_vm11, %vm692_vm10  ;;  %vm699_vm11 = vcmp.eq.s32.totalorder %v8989_v26, %v9142_v8 }
  0x9e   :  { %vm8251_vm2 = vmpackc.low %vm685_vm1, %vm683_vm15  ;;  %vm696_vm1 = vcmp.eq.s32.totalorder %v9295_v59, %v9109_v63 }
  0xa0   :  { %8244 = vmatpush3.bf16.msk.msra.mxu1 %vm8211_vm3, %v10881_v32  ;;  %vm688_vm3 = vcmp.eq.s32.totalorder %v9295_v59, %v9031_v41 }
  0xa1   :  { %8278 = vmatprep.subr.msk.bf16.mxu1 %vm8245_vm6, %v10881_v32  ;;  %vm8253_vm5 = vmpackc.low %vm690_vm4, %vm688_vm3  ;;  %vm687_vm6 = vcmp.eq.s32.totalorder %v8989_v26, %v9031_v41  ;;  %vm695_vm4 = vcmp.eq.s32.totalorder %v8989_v26, %v9109_v63 }
 0x14e   :  { %v220_v5 = vpop.f32.mrb[0].mxu1 }
 0x14f   :  { %v222_v7 = vpop.f32.mrb[1].mxu1 }
 0x150   :  { %v270_v9 = vcombine.low %v220_v5, %v222_v7  ;;  %v224_v10 = vpop.f32.mrb[2].mxu1 }
 0x151   :  { %v225_v11 = vpop.f32.mrb[3].mxu1 }
 0x152   :  { %v277_v13 = vrot.slane %v270_v9, %v9304_v6 }
 0x154   :  { %v278_v15 = vcombine.high %v277_v13, %v277_v13  ;;  %v285_v16 = vrot.slane %v277_v13, %v9304_v6 }
 0x156   :  { %v292_v17 = vrot.slane %v278_v15, %v9304_v6  ;;  %299 = vst.msk [vmem:[#allocation2] ss:$2 sm:$0x3] %vm9308_vm7, %v285_v16  ;;  %v261_v18 = vpop.f32.mrb[4].mxu1 }
 0x157   :  { %v263_v25 = vpop.f32.mrb[5].mxu1 }
 0x158   :  { %301 = vst.msk [vmem:[#allocation2 + $0x4] ss:$2 sm:$0x3] %vm9308_vm7, %v292_v17  ;;  %v304_v34 = vcombine.low %v261_v18, %v263_v25  ;;  %v265_v36 = vpop.f32.mrb[6].mxu1 }
 0x159   :  { %v266_v43 = vpop.f32.mrb[7].mxu1 }
 0x15a   :  { %v311_v19 = vrot.slane %v304_v34, %v9304_v6 }
 0x15c   :  { %v312_v46 = vcombine.high %v311_v19, %v311_v19  ;;  %v319_v47 = vrot.slane %v311_v19, %v9304_v6 }
 0x15e   :  { %v326_v50 = vrot.slane %v312_v46, %v9304_v6  ;;  %330 = vst.msk [vmem:[#allocation2 + $0x1] ss:$2 sm:$0x3] %vm9308_vm7, %v319_v47 }
 0x160   :  { %332 = vst.msk [vmem:[#allocation2 + $0x5] ss:$2 sm:$0x3] %vm9308_vm7, %v326_v50 }
 0x165   :  { %v9325_v56 = vld [vmem:[#allocation2] sm:$0xf] }
 0x166   :  { %v363_v2 = vmul.f32 %v9325_v56, %v9325_v56 }
 0x167   :  { %v9330_v61 = vld [vmem:[#allocation2 + $0x4] sm:$0xf] }
 0x168   :  { %v337_v1 = vcombine.low %v9325_v56, %v9330_v61  ;;  %v364_v5 = vmul.f32 %v9330_v61, %v9330_v61 }
 0x16a   :  { %v344_v7 = vrot.slane %v337_v1, %v9328_v57  ;;  %v367_v9 = vcombine.low %v363_v2, %v364_v5 }
 0x16c   :  { %v345_v10 = vcombine.high %v344_v7, %v344_v7  ;;  %v349_v11 = vsel %vm348_vm8, %v344_v7, 0.0  ;;  %v374_v13 = vrot.slane %v367_v9, %v9328_v57 }
 0x16d   :  { %v350_v15 = vrot.slane %v349_v11, 4 }
 0x16e   :  { %v356_v16 = vsel %vm348_vm8, %v345_v10, 0.0  ;;  %v375_v17 = vcombine.high %v374_v13, %v374_v13  ;;  %v378_v18 = vsel %vm348_vm8, %v374_v13, 0.0 }
 0x16f   :  { %v357_v25 = vrot.slane %v356_v16, 4  ;;  %v351_v34 = vadd.f32 %v350_v15, %v349_v11  ;;  %v379_v36 = vrot.slane %v378_v18, 4 }
 0x170   :  { %v385_v43 = vsel %vm348_vm8, %v375_v17, 0.0  ;;  %vm689_vm8 = vcmp.eq.s32.totalorder %v8989_v26, %v9034_v42 }
 0x171   :  { %v358_v19 = vadd.f32 %v357_v25, %v356_v16  ;;  %v352_v46 = vrot.slane %v351_v34, 2  ;;  %v386_v47 = vrot.slane %v385_v43, 4  ;;  %v380_v50 = vadd.f32 %v379_v36, %v378_v18  ;;  %vm8255_vm9 = vmpackc.low %vm689_vm8, %vm687_vm6  ;;  %v953_v36 = vld [vmem:[#allocation8 + $0x8] sm:$0xff] }
 0x172   :  { %v10956_v25 = vmov 1.0|1.0   ;;  %vm700_vm8 = vcmp.eq.s32.totalorder %v9295_v59, %v9142_v8 }
 0x173   :  { %v359_v51 = vrot.slane %v358_v19, 2  ;;  %v353_v52 = vadd.f32 %v352_v46, %v351_v34  ;;  %v387_v55 = vadd.f32 %v386_v47, %v385_v43  ;;  %v381_v1 = vrot.slane %v380_v50, 2  ;;  %v956_v34 = vld [vmem:[#allocation8 + $0x20] sm:$0xff]  ;;  %v957_v46 = vld [vmem:[#allocation8 + $0x28] sm:$0xff] }
 0x174   :  { %v7220_v47 = vcombine.low %v953_v36, %v957_v46 }
 0x175   :  { %v360_v2 = vadd.f32 %v359_v51, %v358_v19  ;;  %v388_v5 = vrot.slane %v387_v55, 2  ;;  %v382_v7 = vadd.f32 %v381_v1, %v380_v50  ;;  %v354_v9 = vrot.slane %v353_v52, 1 }
 0x176   :  { %v7221_v50 = vcombine.high %v953_v36, %v957_v46  ;;  %v673_v36 = vld [vmem:[%s10874_s10] sm:$0x1]  ;;  %v961_v46 = vld [vmem:[#allocation8 + $0x48] sm:$0xff] }
 0x177   :  { %v361_v32 = vrot.slane %v360_v2, 1  ;;  %v389_v10 = vadd.f32 %v388_v5, %v387_v55  ;;  %v383_v11 = vrot.slane %v382_v7, 1  ;;  %v355_v16 = vadd.f32 %v354_v9, %v353_v52 }
 0x179   :  { %v362_v13 = vadd.f32 %v361_v32, %v360_v2  ;;  %v390_v15 = vrot.slane %v389_v10, 1  ;;  %v384_v18 = vadd.f32 %v383_v11, %v382_v7  ;;  %v10883_v32 = vmov 0.0  }
 0x17b   :  { %587 = vmatprep.mubr.f32.mxu0 %v362_v13  ;;  %v391_v17 = vadd.f32 %v390_v15, %v389_v10 }
 0x17c   :  { %588 = vmatmul.mubr.f32.vlgmr.msra.gmra.mrb[0].mxu0 %v355_v16  ;;  %v669_v16 = vld [vmem:[%s10870_s6] sm:$0x1] }
 0x17d   :  { %657 = vmatprep.mubr.f32.mxu1 %v391_v17  ;;  %8248 = vmatpush1.bf16.msk.msra.mxu0 %vm8247_vm13, %v10956_v25  ;;  %v960_v17 = vld [vmem:[#allocation8 + $0x40] sm:$0xff] }
 0x17e   :  { %658 = vmatmul.mubr.f32.vlgmr.msra.gmra.mrb[8].mxu1 %v384_v18  ;;  %8250 = vmatprep.subr.msk.bf16.mxu0 %vm8249_vm14, %v10956_v25  ;;  %v964_v18 = vld [vmem:[#allocation8 + $0x60] sm:$0xff] }
 0x17f   :  { %8280 = vmatpush1.bf16.msk.msra.mxu1 %vm8247_vm13, %v10956_v25  ;;  %vm691_vm13 = vcmp.eq.s32.totalorder %v8989_v26, %v9052_v49  ;;  %807 = vmatprep.mubr.f32.mxu0 %v10883_v32 }
 0x180   :  { %8282 = vmatprep.subr.msk.bf16.mxu1 %vm8249_vm14, %v10956_v25  ;;  %vm693_vm14 = vcmp.eq.s32.totalorder %v8989_v26, %v9064_v53  ;;  %878 = vmatprep.mubr.f32.mxu1 %v10883_v32 }
 0x181   :  { %8252 = vmatpush1.bf16.msk.msra.mxu0 %vm8251_vm2, %v10956_v25  ;;  %vm8259_vm15 = vmpackc.low %vm693_vm14, %vm691_vm13  ;;  %vm704_vm13 = vcmp.eq.s32.totalorder %v9295_v59, %v9199_v28  ;;  %vm706_vm14 = vcmp.eq.s32.totalorder %v9295_v59, %v9202_v33 }
 0x182   :  { %8254 = vmatprep.subr.msk.bf16.mxu0 %vm8253_vm5, %v10956_v25 }
 0x183   :  { %8284 = vmatpush1.bf16.msk.msra.mxu1 %vm8251_vm2, %v10956_v25  ;;  %vm698_vm2 = vcmp.eq.s32.totalorder %v9295_v59, %v9112_v0 }
 0x184   :  { %8286 = vmatprep.subr.msk.bf16.mxu1 %vm8253_vm5, %v10956_v25  ;;  %vm8261_vm3 = vmpackc.low %vm698_vm2, %vm696_vm1  ;;  %vm697_vm5 = vcmp.eq.s32.totalorder %v8989_v26, %v9112_v0  ;;  %vm703_vm1 = vcmp.eq.s32.totalorder %v8989_v26, %v9199_v28  ;;  %vm705_vm2 = vcmp.eq.s32.totalorder %v8989_v26, %v9202_v33 }
 0x185   :  { %8256 = vmatpush1.bf16.msk.msra.mxu0 %vm8255_vm9, %v10956_v25  ;;  %vm8263_vm6 = vmpackc.low %vm697_vm5, %vm695_vm4  ;;  %vm710_vm5 = vcmp.eq.s32.totalorder %v9295_v59, %v9246_v54 }
 0x186   :  { %8258 = vmatprep.subr.msk.bf16.mxu0 %vm8257_vm12, %v10956_v25  ;;  %vm8269_vm4 = vmpackc.low %vm706_vm14, %vm704_vm13 }
 0x187   :  { %8288 = vmatpush1.bf16.msk.msra.mxu1 %vm8255_vm9, %v10956_v25  ;;  %vm702_vm9 = vcmp.eq.s32.totalorder %v9295_v59, %v9152_v12 }
 0x188   :  { %8290 = vmatprep.subr.msk.bf16.mxu1 %vm8257_vm12, %v10956_v25  ;;  %vm8265_vm10 = vmpackc.low %vm702_vm9, %vm700_vm8  ;;  %vm701_vm12 = vcmp.eq.s32.totalorder %v8989_v26, %v9152_v12  ;;  %vm707_vm9 = vcmp.eq.s32.totalorder %v8989_v26, %v9224_v48 }
 0x189   :  { %8260 = vmatpush1.bf16.msk.msra.mxu0 %vm8259_vm15, %v10956_v25 }
 0x18a   :  { %8262 = vmatprep.subr.msk.bf16.mxu0 %vm8261_vm3, %v10956_v25 }
 0x18b   :  { %8292 = vmatpush1.bf16.msk.msra.mxu1 %vm8259_vm15, %v10956_v25  ;;  %vm8267_vm15 = vmpackc.low %vm701_vm12, %vm699_vm11 }
 0x18c   :  { %8294 = vmatprep.subr.msk.bf16.mxu1 %vm8261_vm3, %v10956_v25  ;;  %vm708_vm3 = vcmp.eq.s32.totalorder %v9295_v59, %v9224_v48  ;;  %v952_v59 = vld [vmem:[#allocation8] sm:$0xff] }
 0x18d   :  { %8264 = vmatpush1.bf16.msk.msra.mxu0 %vm8263_vm6, %v10956_v25  ;;  %vm8273_vm8 = vmpackc.low %vm710_vm5, %vm708_vm3  ;;  %v7218_v43 = vcombine.low %v952_v59, %v956_v34  ;;  %v7219_v19 = vcombine.high %v952_v59, %v956_v34 }
 0x18e   :  { %8266 = vmatprep.subr.msk.bf16.mxu0 %vm8265_vm10, %v10956_v25 }
 0x18f   :  { %8296 = vmatpush1.bf16.msk.msra.mxu1 %vm8263_vm6, %v10956_v25  ;;  %vm8271_vm6 = vmpackc.low %vm705_vm2, %vm703_vm1 }
 0x190   :  { %8298 = vmatprep.subr.msk.bf16.mxu1 %vm8265_vm10, %v10956_v25  ;;  %vm709_vm10 = vcmp.eq.s32.totalorder %v8989_v26, %v9246_v54 }
 0x191   :  { %8268 = vmatpush1.bf16.msk.msra.mxu0 %vm8267_vm15, %v10956_v25  ;;  %vm8275_vm11 = vmpackc.low %vm709_vm10, %vm707_vm9 }
 0x192   :  { %8270 = vmatprep.subr.msk.bf16.mxu0 %vm8269_vm4, %v10956_v25 }
 0x193   :  { %8300 = vmatpush1.bf16.msk.msra.mxu1 %vm8267_vm15, %v10956_v25 }
 0x194   :  { %8302 = vmatprep.subr.msk.bf16.mxu1 %vm8269_vm4, %v10956_v25 }
 0x195   :  { %8272 = vmatpush1.bf16.msk.msra.mxu0 %vm8271_vm6, %v10956_v25 }
 0x196   :  { %8274 = vmatprep.subr.msk.bf16.mxu0 %vm8273_vm8, %v10956_v25 }
 0x197   :  { %8304 = vmatpush1.bf16.msk.msra.mxu1 %vm8271_vm6, %v10956_v25 }
 0x198   :  { %8306 = vmatprep.subr.msk.bf16.mxu1 %vm8273_vm8, %v10956_v25 }
 0x199   :  { %8276 = vmatpush1.bf16.msk.msra.mxu0 %vm8275_vm11, %v10956_v25 }
 0x19a   :  { %1720 = vmatprep.subr.bf16.mxu0 %v7219_v19  ;;  %v7227_v19 = vcombine.high %v960_v17, %v964_v18 }
 0x19b   :  { %8308 = vmatpush1.bf16.msk.msra.mxu1 %vm8275_vm11, %v10956_v25 }
 0x19c   :  { %1761 = vmatprep.subr.bf16.mxu1 %v7221_v50  ;;  %v965_v50 = vld [vmem:[#allocation8 + $0x68] sm:$0xff] }
 0x24f   :  { %v7905_v51 = vpop.f32.mrb[0].mxu0 }
 0x250   :  { %v7906_v52 = vpop.f32.mrb[1].mxu0 }
 0x251   :  { %v7907_v55 = vadd.f32 %v7906_v52, %v7905_v51  ;;  %v7940_v1 = vpop.f32.mrb[8].mxu1  ;;  %v968_v51 = vld [vmem:[#allocation8 + $0x80] sm:$0xff] }
 0x252   :  { %v7941_v2 = vpop.f32.mrb[9].mxu1  ;;  %v972_v52 = vld [vmem:[#allocation8 + $0xa0] sm:$0xff] }
 0x253   :  { %v664_v5 = vmul.f32 0.125, %v7907_v55  ;;  %v7942_v7 = vadd.f32 %v7941_v2, %v7940_v1  ;;  %v7226_v1 = vcombine.low %v960_v17, %v964_v18  ;;  %v984_v17 = vld [vmem:[#allocation8 + $0x100] sm:$0xff] }
 0x254   :  { %v988_v18 = vld [vmem:[#allocation8 + $0x120] sm:$0xff] }
 0x255   :  { %v666_v9 = vmul.f32 %v664_v5, %v664_v5  ;;  %v665_v10 = vmul.f32 0.125, %v7942_v7  ;;  %v7229_v7 = vcombine.high %v961_v46, %v965_v50 }
 0x257   :  { %v667_v11 = vsub.f32 %v665_v10, %v666_v9  ;;  %v7235_v9 = vcombine.high %v968_v51, %v972_v52  ;;  %v969_v10 = vld [vmem:[#allocation8 + $0x88] sm:$0xff] }
 0x259   :  { %v668_v13 = vmax.f32 %v667_v11, 0.0  ;;  %v973_v11 = vld [vmem:[#allocation8 + $0xa8] sm:$0xff] }
 0x25a   :  { %v7237_v32 = vcombine.high %v969_v10, %v973_v11 }
 0x25b   :  { %v670_v15 = vadd.f32 1e-05, %v668_v13  ;;  %v976_v13 = vld [vmem:[#allocation8 + $0xc0] sm:$0xff] }
 0x25d   :  { %8607 = vrsqrt.f32 %v670_v15  ;;  %v980_v15 = vld [vmem:[#allocation8 + $0xe0] sm:$0xff] }
 0x25e   :  { %v7243_v58 = vcombine.high %v976_v13, %v980_v15 }
 0x267   :  { %v8608_v59 = vpop.eup %8607 }
 0x268   :  { %v672_v34 = vmul.f32 %v8608_v59, %v669_v16  ;;  %v7228_v16 = vcombine.low %v961_v46, %v965_v50  ;;  %v7234_v59 = vcombine.low %v968_v51, %v972_v52  ;;  %v989_v46 = vld [vmem:[#allocation8 + $0x128] sm:$0xff]  ;;  %v992_v50 = vld [vmem:[#allocation8 + $0x140] sm:$0xff] }
 0x269   :  { %v996_v51 = vld [vmem:[#allocation8 + $0x160] sm:$0xff] }
 0x26a   :  { %808 = vmatmul.mubr.f32.vlgmr.msra.gmra.mrb[2].mxu0 %v672_v34  ;;  %v674_v55 = vmul.f32 %v672_v34, %v664_v5  ;;  %v977_v5 = vld [vmem:[#allocation8 + $0xc8] sm:$0xff]  ;;  %v7236_v34 = vcombine.low %v969_v10, %v973_v11  ;;  %v1000_v11 = vld [vmem:[#allocation8 + $0x180] sm:$0xff] }
 0x26b   :  { %1721 = vmatpush1.bf16.msra.mxu0 %v7218_v43  ;;  %v981_v43 = vld [vmem:[#allocation8 + $0xe8] sm:$0xff] }
 0x26c   :  { %v675_v2 = vsub.f32 %v673_v36, %v674_v55  ;;  %1722 = vmatprep.subr.bf16.mxu0 %v7227_v19  ;;  %v7242_v36 = vcombine.low %v976_v13, %v980_v15  ;;  %v7245_v19 = vcombine.high %v977_v5, %v981_v43  ;;  %v7251_v55 = vcombine.high %v984_v17, %v988_v18  ;;  %v997_v10 = vld [vmem:[#allocation8 + $0x168] sm:$0xff]  ;;  %v1004_v13 = vld [vmem:[#allocation8 + $0x1a0] sm:$0xff] }
 0x26d   :  { %v7244_v52 = vcombine.low %v977_v5, %v981_v43  ;;  %v1005_v5 = vld [vmem:[#allocation8 + $0x1a8] sm:$0xff]  ;;  %v1008_v43 = vld [vmem:[#allocation8 + $0x1c0] sm:$0xff] }
 0x26e   :  { %879 = vmatmul.mubr.f32.vlgmr.msra.gmra.mrb[10].mxu1 %v675_v2 }
 0x26f   :  { %1762 = vmatpush1.bf16.msra.mxu1 %v7220_v47  ;;  %1723 = vmatpush1.bf16.msra.mxu0 %v7226_v1  ;;  %v985_v47 = vld [vmem:[#allocation8 + $0x108] sm:$0xff]  ;;  %v7250_v1 = vcombine.low %v984_v17, %v988_v18  ;;  %v1012_v17 = vld [vmem:[#allocation8 + $0x1e0] sm:$0xff] }
 0x270   :  { %1763 = vmatprep.subr.bf16.mxu1 %v7229_v7  ;;  %1724 = vmatprep.subr.bf16.mxu0 %v7235_v9  ;;  %v7253_v2 = vcombine.high %v985_v47, %v989_v46  ;;  %v7259_v7 = vcombine.high %v992_v50, %v996_v51  ;;  %v993_v9 = vld [vmem:[#allocation8 + $0x148] sm:$0xff] }
 0x271   :  { %v7261_v15 = vcombine.high %v993_v9, %v997_v10  ;;  %v7260_v18 = vcombine.low %v993_v9, %v997_v10  ;;  %v1021_v9 = vld [vmem:[#allocation8 + $0x228] sm:$0xff]  ;;  %v1024_v10 = vld [vmem:[#allocation8 + $0x240] sm:$0xff] }
 0x273   :  { %1764 = vmatpush1.bf16.msra.mxu1 %v7228_v16  ;;  %1725 = vmatpush1.bf16.msra.mxu0 %v7234_v59  ;;  %v7267_v16 = vcombine.high %v1000_v11, %v1004_v13  ;;  %v1001_v59 = vld [vmem:[#allocation8 + $0x188] sm:$0xff] }
 0x274   :  { %1765 = vmatprep.subr.bf16.mxu1 %v7237_v32  ;;  %1726 = vmatprep.subr.bf16.mxu0 %v7243_v58  ;;  %v7252_v58 = vcombine.low %v985_v47, %v989_v46  ;;  %v7258_v32 = vcombine.low %v992_v50, %v996_v51  ;;  %v1013_v47 = vld [vmem:[#allocation8 + $0x1e8] sm:$0xff]  ;;  %v1016_v46 = vld [vmem:[#allocation8 + $0x200] sm:$0xff]  ;;  %v7268_v51 = vcombine.low %v1001_v59, %v1005_v5 }
 0x275   :  { %v1020_v50 = vld [vmem:[#allocation8 + $0x220] sm:$0xff] }
 0x277   :  { %1766 = vmatpush1.bf16.msra.mxu1 %v7236_v34  ;;  %1727 = vmatpush1.bf16.msra.mxu0 %v7242_v36  ;;  %v7266_v34 = vcombine.low %v1000_v11, %v1004_v13  ;;  %v7269_v36 = vcombine.high %v1001_v59, %v1005_v5  ;;  %v1028_v11 = vld [vmem:[#allocation8 + $0x260] sm:$0xff]  ;;  %v1029_v59 = vld [vmem:[#allocation8 + $0x268] sm:$0xff] }
 0x278   :  { %1767 = vmatprep.subr.bf16.mxu1 %v7245_v19  ;;  %1728 = vmatprep.subr.bf16.mxu0 %v7251_v55  ;;  %v7275_v19 = vcombine.high %v1008_v43, %v1012_v17  ;;  %v1009_v55 = vld [vmem:[#allocation8 + $0x1c8] sm:$0xff] }
 0x279   :  { %v7276_v13 = vcombine.low %v1009_v55, %v1013_v47 }
 0x27b   :  { %1768 = vmatpush1.bf16.msra.mxu1 %v7244_v52  ;;  %1729 = vmatpush1.bf16.msra.mxu0 %v7250_v1  ;;  %v7274_v52 = vcombine.low %v1008_v43, %v1012_v17  ;;  %v7277_v1 = vcombine.high %v1009_v55, %v1013_v47  ;;  %v7290_v43 = vcombine.low %v1024_v10, %v1028_v11  ;;  %v1037_v47 = vld [vmem:[#allocation8 + $0x2a8] sm:$0xff] }
 0x27c   :  { %1769 = vmatprep.subr.bf16.mxu1 %v7253_v2  ;;  %1730 = vmatprep.subr.bf16.mxu0 %v7259_v7  ;;  %v7283_v2 = vcombine.high %v1016_v46, %v1020_v50  ;;  %v1017_v7 = vld [vmem:[#allocation8 + $0x208] sm:$0xff] }
 0x27d   :  { %v7284_v5 = vcombine.low %v1017_v7, %v1021_v9 }
 0x27f   :  { %1770 = vmatpush1.bf16.msra.mxu1 %v7252_v58  ;;  %1731 = vmatpush1.bf16.msra.mxu0 %v7258_v32  ;;  %v7282_v58 = vcombine.low %v1016_v46, %v1020_v50  ;;  %v7285_v32 = vcombine.high %v1017_v7, %v1021_v9  ;;  %v1045_v9 = vld [vmem:[#allocation8 + $0x2e8] sm:$0xff] }
 0x280   :  { %1771 = vmatprep.subr.bf16.mxu1 %v7261_v15  ;;  %1732 = vmatprep.subr.bf16.mxu0 %v7267_v16  ;;  %v7291_v15 = vcombine.high %v1024_v10, %v1028_v11  ;;  %v1025_v16 = vld [vmem:[#allocation8 + $0x248] sm:$0xff] }
 0x281   :  { %v7293_v17 = vcombine.high %v1025_v16, %v1029_v59 }
 0x283   :  { %1772 = vmatpush1.bf16.msra.mxu1 %v7260_v18  ;;  %1733 = vmatpush1.bf16.msra.mxu0 %v7266_v34  ;;  %v7292_v18 = vcombine.low %v1025_v16, %v1029_v59  ;;  %v1032_v34 = vld [vmem:[#allocation8 + $0x280] sm:$0xff]  ;;  %v1053_v59 = vld [vmem:[#allocation8 + $0x328] sm:$0xff] }
 0x284   :  { %1773 = vmatprep.subr.bf16.mxu1 %v7269_v36  ;;  %1734 = vmatprep.subr.bf16.mxu0 %v7275_v19  ;;  %v1036_v36 = vld [vmem:[#allocation8 + $0x2a0] sm:$0xff]  ;;  %v1033_v19 = vld [vmem:[#allocation8 + $0x288] sm:$0xff] }
 0x285   :  { %v7299_v55 = vcombine.high %v1032_v34, %v1036_v36  ;;  %v7298_v46 = vcombine.low %v1032_v34, %v1036_v36  ;;  %v7300_v50 = vcombine.low %v1033_v19, %v1037_v47  ;;  %v1060_v34 = vld [vmem:[#allocation8 + $0x360] sm:$0xff]  ;;  %v1057_v36 = vld [vmem:[#allocation8 + $0x348] sm:$0xff] }
 0x287   :  { %1774 = vmatpush1.bf16.msra.mxu1 %v7268_v51  ;;  %1735 = vmatpush1.bf16.msra.mxu0 %v7274_v52  ;;  %v7301_v51 = vcombine.high %v1033_v19, %v1037_v47  ;;  %v1040_v52 = vld [vmem:[#allocation8 + $0x2c0] sm:$0xff] }
 0x288   :  { %1775 = vmatprep.subr.bf16.mxu1 %v7277_v1  ;;  %1736 = vmatprep.subr.bf16.mxu0 %v7283_v2  ;;  %v1044_v1 = vld [vmem:[#allocation8 + $0x2e0] sm:$0xff]  ;;  %v1041_v2 = vld [vmem:[#allocation8 + $0x2c8] sm:$0xff] }
 0x289   :  { %v7307_v7 = vcombine.high %v1040_v52, %v1044_v1  ;;  %v7306_v10 = vcombine.low %v1040_v52, %v1044_v1  ;;  %v7308_v11 = vcombine.low %v1041_v2, %v1045_v9  ;;  %v1068_v52 = vld [vmem:[#allocation8 + $0x3a0] sm:$0xff]  ;;  %v1065_v1 = vld [vmem:[#allocation8 + $0x388] sm:$0xff] }
 0x28b   :  { %1776 = vmatpush1.bf16.msra.mxu1 %v7276_v13  ;;  %1737 = vmatpush1.bf16.msra.mxu0 %v7282_v58  ;;  %v7309_v13 = vcombine.high %v1041_v2, %v1045_v9  ;;  %v1048_v58 = vld [vmem:[#allocation8 + $0x300] sm:$0xff]  ;;  %v1069_v9 = vld [vmem:[#allocation8 + $0x3a8] sm:$0xff] }
 0x28c   :  { %1777 = vmatprep.subr.bf16.mxu1 %v7285_v32  ;;  %1738 = vmatprep.subr.bf16.mxu0 %v7291_v15  ;;  %v1052_v32 = vld [vmem:[#allocation8 + $0x320] sm:$0xff]  ;;  %v1049_v15 = vld [vmem:[#allocation8 + $0x308] sm:$0xff] }
 0x28d   :  { %v7315_v16 = vcombine.high %v1048_v58, %v1052_v32 }
 0x28f   :  { %1778 = vmatpush1.bf16.msra.mxu1 %v7284_v5  ;;  %1739 = vmatpush1.bf16.msra.mxu0 %v7290_v43  ;;  %v7314_v5 = vcombine.low %v1048_v58, %v1052_v32  ;;  %v7316_v43 = vcombine.low %v1049_v15, %v1053_v59  ;;  %v7333_v58 = vcombine.high %v1065_v1, %v1069_v9 }
 0x290   :  { %1779 = vmatprep.subr.bf16.mxu1 %v7293_v17  ;;  %1740 = vmatprep.subr.bf16.mxu0 %v7299_v55  ;;  %v7317_v17 = vcombine.high %v1049_v15, %v1053_v59  ;;  %v1061_v55 = vld [vmem:[#allocation8 + $0x368] sm:$0xff] }
 0x291   :  { %v1073_v15 = vld [vmem:[#allocation8 + $0x3c8] sm:$0xff] }
 0x293   :  { %1780 = vmatpush1.bf16.msra.mxu1 %v7292_v18  ;;  %1741 = vmatpush1.bf16.msra.mxu0 %v7298_v46  ;;  %v1056_v18 = vld [vmem:[#allocation8 + $0x340] sm:$0xff]  ;;  %v7324_v46 = vcombine.low %v1057_v36, %v1061_v55 }
 0x294   :  { %1781 = vmatprep.subr.bf16.mxu1 %v7301_v51  ;;  %1742 = vmatprep.subr.bf16.mxu0 %v7307_v7  ;;  %v7323_v19 = vcombine.high %v1056_v18, %v1060_v34  ;;  %v7322_v47 = vcombine.low %v1056_v18, %v1060_v34  ;;  %v1064_v51 = vld [vmem:[#allocation8 + $0x380] sm:$0xff]  ;;  %v958_v18 = vld [vmem:[#allocation8 + $0x30] sm:$0xff]  ;;  %v955_v34 = vld [vmem:[#allocation8 + $0x18] sm:$0xff] }
 0x295   :  { %v7330_v2 = vcombine.low %v1064_v51, %v1068_v52  ;;  %v7331_v7 = vcombine.high %v1064_v51, %v1068_v52 }
 0x297   :  { %1782 = vmatpush1.bf16.msra.mxu1 %v7300_v50  ;;  %1743 = vmatpush1.bf16.msra.mxu0 %v7306_v10  ;;  %v7325_v50 = vcombine.high %v1057_v36, %v1061_v55  ;;  %v1072_v10 = vld [vmem:[#allocation8 + $0x3c0] sm:$0xff] }
 0x298   :  { %1783 = vmatprep.subr.bf16.mxu1 %v7309_v13  ;;  %1744 = vmatprep.subr.bf16.mxu0 %v7315_v16  ;;  %v7332_v13 = vcombine.low %v1065_v1, %v1069_v9  ;;  %v1077_v16 = vld [vmem:[#allocation8 + $0x3e8] sm:$0xff] }
 0x299   :  { %v7341_v59 = vcombine.high %v1073_v15, %v1077_v16 }
 0x29b   :  { %1784 = vmatpush1.bf16.msra.mxu1 %v7308_v11  ;;  %1745 = vmatpush1.bf16.msra.mxu0 %v7314_v5  ;;  %v1076_v11 = vld [vmem:[#allocation8 + $0x3e0] sm:$0xff] }
 0x29c   :  { %1785 = vmatprep.subr.bf16.mxu1 %v7317_v17  ;;  %1746 = vmatprep.subr.bf16.mxu0 %v7323_v19  ;;  %v7339_v32 = vcombine.high %v1072_v10, %v1076_v11  ;;  %v7338_v5 = vcombine.low %v1072_v10, %v1076_v11  ;;  %v954_v17 = vld [vmem:[#allocation8 + $0x10] sm:$0xff]  ;;  %v959_v19 = vld [vmem:[#allocation8 + $0x38] sm:$0xff] }
 0x29d   :  { %v7223_v36 = vcombine.high %v954_v17, %v958_v18  ;;  %v7222_v55 = vcombine.low %v954_v17, %v958_v18 }
 0x29f   :  { %1786 = vmatpush1.bf16.msra.mxu1 %v7316_v43  ;;  %1747 = vmatpush1.bf16.msra.mxu0 %v7322_v47  ;;  %v7340_v43 = vcombine.low %v1073_v15, %v1077_v16  ;;  %v7224_v47 = vcombine.low %v955_v34, %v959_v19 }
 0x2a0   :  { %1787 = vmatprep.subr.bf16.mxu1 %v7325_v50  ;;  %1748 = vmatprep.subr.bf16.mxu0 %v7331_v7  ;;  %v9439_v50 = vsub.s32 0, %v8975_v20 }
 0x2a3   :  { %1788 = vmatpush1.bf16.msra.mxu1 %v7324_v46  ;;  %1749 = vmatpush1.bf16.msra.mxu0 %v7330_v2  ;;  %v7225_v46 = vcombine.high %v955_v34, %v959_v19 }
 0x2a4   :  { %1789 = vmatprep.subr.bf16.mxu1 %v7333_v58  ;;  %1750 = vmatprep.subr.bf16.mxu0 %v7339_v32 }
 0x2a7   :  { %1790 = vmatpush1.bf16.msra.mxu1 %v7332_v13  ;;  %1751 = vmatpush1.bf16.msra.mxu0 %v7338_v5 }
 0x2a8   :  { %1791 = vmatprep.subr.bf16.mxu1 %v7341_v59  ;;  %1802 = vmatprep.subr.bf16.mxu0 %v7223_v36 }
 0x2ab   :  { %1792 = vmatpush1.bf16.msra.mxu1 %v7340_v43 }
 0x2ac   :  { %1843 = vmatprep.subr.bf16.mxu1 %v7225_v46 }
 0x33d   :  { %v809_v51 = vpop.f32.mrb[2].mxu0 }
 0x33e   :  { %v888_v52 = vrot.slane %v809_v51, %v9439_v50  ;;  %v811_v1 = vpop.f32.mrb[3].mxu0 }
 0x33f   :  { %v892_v2 = vrot.slane %v811_v1, %v9439_v50 }
 0x341   :  { %v895_v7 = vcombine.low %v888_v52, %v892_v2  ;;  %v880_v9 = vpop.f32.mrb[10].mxu1  ;;  %v962_v2 = vld [vmem:[#allocation8 + $0x50] sm:$0xff] }
 0x342   :  { %v911_v10 = vrot.slane %v880_v9, %v9439_v50  ;;  %v882_v11 = vpop.f32.mrb[11].mxu1  ;;  %v967_v9 = vld [vmem:[#allocation8 + $0x78] sm:$0xff] }
 0x343   :  { %v902_v13 = vrot.slane %v895_v7, %v9328_v57  ;;  %v915_v58 = vrot.slane %v882_v11, %v9439_v50  ;;  %v966_v7 = vld [vmem:[#allocation8 + $0x70] sm:$0xff] }
 0x345   :  { %v903_v32 = vcombine.high %v902_v13, %v902_v13  ;;  %v918_v15 = vcombine.low %v911_v10, %v915_v58  ;;  %v906_v16 = vmul.f32 %v902_v13, %v9325_v56  ;;  %v963_v56 = vld [vmem:[#allocation8 + $0x58] sm:$0xff]  ;;  %v7231_v13 = vcombine.high %v962_v2, %v966_v7 }
 0x346   :  { %v7233_v58 = vcombine.high %v963_v56, %v967_v9 }
 0x347   :  { %v925_v59 = vrot.slane %v918_v15, %v9328_v57  ;;  %v907_v5 = vmul.f32 %v903_v32, %v9330_v61  ;;  %v970_v61 = vld [vmem:[#allocation8 + $0x90] sm:$0xff]  ;;  %v971_v15 = vld [vmem:[#allocation8 + $0x98] sm:$0xff] }
 0x348   :  { %v974_v32 = vld [vmem:[#allocation8 + $0xb0] sm:$0xff] }
 0x349   :  { %v926_v43 = vcombine.high %v925_v59, %v925_v59  ;;  %v929_v17 = vadd.f32 %v925_v59, %v906_v16  ;;  %v975_v16 = vld [vmem:[#allocation8 + $0xb8] sm:$0xff]  ;;  %v7230_v59 = vcombine.low %v962_v2, %v966_v7 }
 0x34a   :  { %v987_v2 = vld [vmem:[#allocation8 + $0x118] sm:$0xff] }
 0x34b   :  { %v930_v18 = vadd.f32 %v926_v43, %v907_v5  ;;  %v933_v34 = vmul.f32 0.2, %v929_v17  ;;  %vm931_vm12 = vcmp.gt.f32.partialorder %v929_v17, 0.0  ;;  %v7232_v5 = vcombine.low %v963_v56, %v967_v9  ;;  %v991_v7 = vld [vmem:[#allocation8 + $0x138] sm:$0xff] }
 0x34c   :  { %v7239_v43 = vcombine.high %v970_v61, %v974_v32 }
 0x34d   :  { %vm932_vm13 = vcmp.gt.f32.partialorder %v930_v18, 0.0  ;;  %v934_v36 = vmul.f32 0.2, %v930_v18  ;;  %v935_v19 = vsel %vm931_vm12, %v929_v17, %v933_v34  ;;  %v7241_v17 = vcombine.high %v971_v15, %v975_v16  ;;  %v982_v34 = vld [vmem:[#allocation8 + $0xf0] sm:$0xff] }
 0x34f   :  { %v936_v46 = vsel %vm932_vm13, %v930_v18, %v934_v36  ;;  %v978_v18 = vld [vmem:[#allocation8 + $0xd0] sm:$0xff]  ;;  %v979_v36 = vld [vmem:[#allocation8 + $0xd8] sm:$0xff] }
 0x350   :  { %v939_v51 = vcombine.low %v935_v19, %v936_v46  ;;  %v983_v19 = vld [vmem:[#allocation8 + $0xf8] sm:$0xff]  ;;  %v7238_v46 = vcombine.low %v970_v61, %v974_v32  ;;  %v7246_v56 = vcombine.low %v978_v18, %v982_v34 }
 0x351   :  { %v7248_v9 = vcombine.low %v979_v36, %v983_v19  ;;  %v995_v61 = vld [vmem:[#allocation8 + $0x158] sm:$0xff] }
 0x352   :  { %v946_v52 = vrot.slane %v939_v51, %v9328_v57  ;;  %v7240_v51 = vcombine.low %v971_v15, %v975_v16  ;;  %v999_v32 = vld [vmem:[#allocation8 + $0x178] sm:$0xff]  ;;  %v7256_v16 = vcombine.low %v987_v2, %v991_v7 }
 0x354   :  { %v947_v1 = vcombine.high %v946_v52, %v946_v52  ;;  %v9450_v11 = vpack.c.bf16 %v946_v52, %v946_v52  ;;  %v986_v52 = vld [vmem:[#allocation8 + $0x110] sm:$0xff] }
 0x356   :  { %v951_v10 = vpack.c.bf16 %v947_v1, %v947_v1  ;;  %v990_v1 = vld [vmem:[#allocation8 + $0x130] sm:$0xff] }
 0x357   :  { %v7254_v15 = vcombine.low %v986_v52, %v990_v1 }
 0x358   :  { %1752 = vmatprep.mubr.bf16.mxu0 %v951_v10  ;;  %1793 = vmatprep.mubr.bf16.mxu1 %v951_v10 }
 0x359   :  { %1753 = vmatmul.mubr.bf16.vlgmr.msra.gmra.mrb[4].mxu0 %v9450_v11  ;;  %1794 = vmatmul.mubr.bf16.vlgmr.msra.gmra.mrb[12].mxu1 %v9450_v11 }
 0x35a   :  { %1803 = vmatpush1.bf16.msra.mxu0 %v7222_v55  ;;  %1844 = vmatpush1.bf16.msra.mxu1 %v7224_v47  ;;  %v7247_v55 = vcombine.high %v978_v18, %v982_v34  ;;  %v7249_v47 = vcombine.high %v979_v36, %v983_v19  ;;  %v1003_v18 = vld [vmem:[#allocation8 + $0x198] sm:$0xff]  ;;  %v7264_v19 = vcombine.low %v995_v61, %v999_v32 }
 0x35b   :  { %1834 = vmatprep.mubr.bf16.mxu0 %v951_v10  ;;  %1875 = vmatprep.mubr.bf16.mxu1 %v951_v10  ;;  %v7255_v10 = vcombine.high %v986_v52, %v990_v1  ;;  %v1007_v34 = vld [vmem:[#allocation8 + $0x1b8] sm:$0xff] }
 0x35c   :  { %1804 = vmatprep.subr.bf16.mxu0 %v7231_v13  ;;  %1845 = vmatprep.subr.bf16.mxu1 %v7233_v58  ;;  %v7257_v13 = vcombine.high %v987_v2, %v991_v7  ;;  %v994_v58 = vld [vmem:[#allocation8 + $0x150] sm:$0xff]  ;;  %v1011_v52 = vld [vmem:[#allocation8 + $0x1d8] sm:$0xff]  ;;  %v7272_v7 = vcombine.low %v1003_v18, %v1007_v34 }
 0x35d   :  { %v1015_v1 = vld [vmem:[#allocation8 + $0x1f8] sm:$0xff] }
 0x35e   :  { %1805 = vmatpush1.bf16.msra.mxu0 %v7230_v59  ;;  %1846 = vmatpush1.bf16.msra.mxu1 %v7232_v5  ;;  %v998_v59 = vld [vmem:[#allocation8 + $0x170] sm:$0xff] }
 0x35f   :  { %1806 = vmatprep.subr.bf16.mxu0 %v7239_v43  ;;  %1847 = vmatprep.subr.bf16.mxu1 %v7241_v17  ;;  %v7263_v5 = vcombine.high %v994_v58, %v998_v59  ;;  %v7265_v43 = vcombine.high %v995_v61, %v999_v32  ;;  %v1002_v17 = vld [vmem:[#allocation8 + $0x190] sm:$0xff]  ;;  %v7262_v36 = vcombine.low %v994_v58, %v998_v59  ;;  %v1019_v58 = vld [vmem:[#allocation8 + $0x218] sm:$0xff] }
 0x360   :  { %v1023_v59 = vld [vmem:[#allocation8 + $0x238] sm:$0xff]  ;;  %v7280_v32 = vcombine.low %v1011_v52, %v1015_v1 }
 0x362   :  { %1807 = vmatpush1.bf16.msra.mxu0 %v7238_v46  ;;  %1848 = vmatpush1.bf16.msra.mxu1 %v7240_v51  ;;  %v1006_v46 = vld [vmem:[#allocation8 + $0x1b0] sm:$0xff] }
 0x363   :  { %1808 = vmatprep.subr.bf16.mxu0 %v7247_v55  ;;  %1849 = vmatprep.subr.bf16.mxu1 %v7249_v47  ;;  %v7271_v51 = vcombine.high %v1002_v17, %v1006_v46  ;;  %v7273_v55 = vcombine.high %v1003_v18, %v1007_v34  ;;  %v1010_v47 = vld [vmem:[#allocation8 + $0x1d0] sm:$0xff]  ;;  %v7270_v2 = vcombine.low %v1002_v17, %v1006_v46  ;;  %v1027_v17 = vld [vmem:[#allocation8 + $0x258] sm:$0xff] }
 0x364   :  { %v1031_v46 = vld [vmem:[#allocation8 + $0x278] sm:$0xff]  ;;  %v7288_v34 = vcombine.low %v1019_v58, %v1023_v59 }
 0x366   :  { %1809 = vmatpush1.bf16.msra.mxu0 %v7246_v56  ;;  %1850 = vmatpush1.bf16.msra.mxu1 %v7248_v9  ;;  %v1014_v56 = vld [vmem:[#allocation8 + $0x1f0] sm:$0xff] }
 0x367   :  { %1810 = vmatprep.subr.bf16.mxu0 %v7255_v10  ;;  %1851 = vmatprep.subr.bf16.mxu1 %v7257_v13  ;;  %v7279_v9 = vcombine.high %v1010_v47, %v1014_v56  ;;  %v7281_v10 = vcombine.high %v1011_v52, %v1015_v1  ;;  %v1018_v13 = vld [vmem:[#allocation8 + $0x210] sm:$0xff]  ;;  %v7278_v61 = vcombine.low %v1010_v47, %v1014_v56  ;;  %v1035_v47 = vld [vmem:[#allocation8 + $0x298] sm:$0xff] }
 0x368   :  { %v1039_v56 = vld [vmem:[#allocation8 + $0x2b8] sm:$0xff]  ;;  %v7296_v1 = vcombine.low %v1027_v17, %v1031_v46 }
 0x36a   :  { %1811 = vmatpush1.bf16.msra.mxu0 %v7254_v15  ;;  %1852 = vmatpush1.bf16.msra.mxu1 %v7256_v16  ;;  %v1022_v15 = vld [vmem:[#allocation8 + $0x230] sm:$0xff] }
 0x36b   :  { %1812 = vmatprep.subr.bf16.mxu0 %v7263_v5  ;;  %1853 = vmatprep.subr.bf16.mxu1 %v7265_v43  ;;  %v7287_v16 = vcombine.high %v1018_v13, %v1022_v15  ;;  %v7289_v5 = vcombine.high %v1019_v58, %v1023_v59  ;;  %v1026_v43 = vld [vmem:[#allocation8 + $0x250] sm:$0xff]  ;;  %v7286_v18 = vcombine.low %v1018_v13, %v1022_v15  ;;  %v1043_v13 = vld [vmem:[#allocation8 + $0x2d8] sm:$0xff] }
 0x36c   :  { %v1047_v15 = vld [vmem:[#allocation8 + $0x2f8] sm:$0xff]  ;;  %v7304_v59 = vcombine.low %v1035_v47, %v1039_v56 }
 0x36e   :  { %1813 = vmatpush1.bf16.msra.mxu0 %v7262_v36  ;;  %1854 = vmatpush1.bf16.msra.mxu1 %v7264_v19  ;;  %v1030_v36 = vld [vmem:[#allocation8 + $0x270] sm:$0xff] }
 0x36f   :  { %1814 = vmatprep.subr.bf16.mxu0 %v7271_v51  ;;  %1855 = vmatprep.subr.bf16.mxu1 %v7273_v55  ;;  %v7295_v19 = vcombine.high %v1026_v43, %v1030_v36  ;;  %v7297_v51 = vcombine.high %v1027_v17, %v1031_v46  ;;  %v1034_v55 = vld [vmem:[#allocation8 + $0x290] sm:$0xff]  ;;  %v7294_v52 = vcombine.low %v1026_v43, %v1030_v36  ;;  %v1051_v43 = vld [vmem:[#allocation8 + $0x318] sm:$0xff] }
 0x370   :  { %v1055_v36 = vld [vmem:[#allocation8 + $0x338] sm:$0xff]  ;;  %v7312_v46 = vcombine.low %v1043_v13, %v1047_v15 }
 0x372   :  { %1815 = vmatpush1.bf16.msra.mxu0 %v7270_v2  ;;  %1856 = vmatpush1.bf16.msra.mxu1 %v7272_v7  ;;  %v1038_v2 = vld [vmem:[#allocation8 + $0x2b0] sm:$0xff] }
 0x373   :  { %1816 = vmatprep.subr.bf16.mxu0 %v7279_v9  ;;  %1857 = vmatprep.subr.bf16.mxu1 %v7281_v10  ;;  %v7303_v7 = vcombine.high %v1034_v55, %v1038_v2  ;;  %v7305_v9 = vcombine.high %v1035_v47, %v1039_v56  ;;  %v1042_v10 = vld [vmem:[#allocation8 + $0x2d0] sm:$0xff]  ;;  %v7302_v58 = vcombine.low %v1034_v55, %v1038_v2  ;;  %v1059_v55 = vld [vmem:[#allocation8 + $0x358] sm:$0xff] }
 0x374   :  { %v1063_v2 = vld [vmem:[#allocation8 + $0x378] sm:$0xff]  ;;  %v7320_v56 = vcombine.low %v1051_v43, %v1055_v36 }
 0x376   :  { %1817 = vmatpush1.bf16.msra.mxu0 %v7278_v61  ;;  %1858 = vmatpush1.bf16.msra.mxu1 %v7280_v32  ;;  %v1046_v61 = vld [vmem:[#allocation8 + $0x2f0] sm:$0xff] }
 0x377   :  { %1818 = vmatprep.subr.bf16.mxu0 %v7287_v16  ;;  %1859 = vmatprep.subr.bf16.mxu1 %v7289_v5  ;;  %v7311_v32 = vcombine.high %v1042_v10, %v1046_v61  ;;  %v7313_v16 = vcombine.high %v1043_v13, %v1047_v15  ;;  %v1050_v5 = vld [vmem:[#allocation8 + $0x310] sm:$0xff]  ;;  %v7310_v17 = vcombine.low %v1042_v10, %v1046_v61  ;;  %v1067_v10 = vld [vmem:[#allocation8 + $0x398] sm:$0xff] }
 0x378   :  { %v1071_v61 = vld [vmem:[#allocation8 + $0x3b8] sm:$0xff]  ;;  %v7328_v15 = vcombine.low %v1059_v55, %v1063_v2 }
 0x37a   :  { %1819 = vmatpush1.bf16.msra.mxu0 %v7286_v18  ;;  %1860 = vmatpush1.bf16.msra.mxu1 %v7288_v34  ;;  %v1054_v18 = vld [vmem:[#allocation8 + $0x330] sm:$0xff] }
 0x37b   :  { %1820 = vmatprep.subr.bf16.mxu0 %v7295_v19  ;;  %1861 = vmatprep.subr.bf16.mxu1 %v7297_v51  ;;  %v7319_v34 = vcombine.high %v1050_v5, %v1054_v18  ;;  %v7321_v19 = vcombine.high %v1051_v43, %v1055_v36  ;;  %v1058_v51 = vld [vmem:[#allocation8 + $0x350] sm:$0xff]  ;;  %v7318_v47 = vcombine.low %v1050_v5, %v1054_v18  ;;  %v1075_v5 = vld [vmem:[#allocation8 + $0x3d8] sm:$0xff] }
 0x37c   :  { %v1079_v18 = vld [vmem:[#allocation8 + $0x3f8] sm:$0xff]  ;;  %v7336_v36 = vcombine.low %v1067_v10, %v1071_v61 }
 0x37e   :  { %1821 = vmatpush1.bf16.msra.mxu0 %v7294_v52  ;;  %1862 = vmatpush1.bf16.msra.mxu1 %v7296_v1  ;;  %v1062_v52 = vld [vmem:[#allocation8 + $0x370] sm:$0xff] }
 0x37f   :  { %1822 = vmatprep.subr.bf16.mxu0 %v7303_v7  ;;  %1863 = vmatprep.subr.bf16.mxu1 %v7305_v9  ;;  %v7327_v1 = vcombine.high %v1058_v51, %v1062_v52  ;;  %v7329_v7 = vcombine.high %v1059_v55, %v1063_v2  ;;  %v1066_v9 = vld [vmem:[#allocation8 + $0x390] sm:$0xff]  ;;  %v7326_v13 = vcombine.low %v1058_v51, %v1062_v52  ;;  %v2227_v52 = vand.u32 63, %v8978_v21 }
 0x380   :  { %v7344_v51 = vcombine.low %v1075_v5, %v1079_v18  ;;  %v2228_v55 = vand.u32 63, %v8981_v22  ;;  %v2211_v2 = vand.u32 63, %v8975_v20 }
 0x381   :  { %vm2259_vm14 = vcmp.eq.s32.totalorder %v2227_v52, %v8989_v26 }
 0x382   :  { %1823 = vmatpush1.bf16.msra.mxu0 %v7302_v58  ;;  %1864 = vmatpush1.bf16.msra.mxu1 %v7304_v59  ;;  %v1070_v58 = vld [vmem:[#allocation8 + $0x3b0] sm:$0xff]  ;;  %vm2260_vm15 = vcmp.eq.s32.totalorder %v2228_v55, %v8989_v26  ;;  %vm2243_vm2 = vcmp.eq.s32.totalorder %v2211_v2, %v8989_v26 }
 0x383   :  { %1824 = vmatprep.subr.bf16.mxu0 %v7311_v32  ;;  %1865 = vmatprep.subr.bf16.mxu1 %v7313_v16  ;;  %v7335_v59 = vcombine.high %v1066_v9, %v1070_v58  ;;  %v7337_v32 = vcombine.high %v1067_v10, %v1071_v61  ;;  %v1074_v16 = vld [vmem:[#allocation8 + $0x3d0] sm:$0xff]  ;;  %v7334_v43 = vcombine.low %v1066_v9, %v1070_v58  ;;  %vm8309_vm1 = vmpackc.low %vm2260_vm15, %vm2259_vm14  ;;  %v2231_v9 = vand.u32 63, %v9020_v38 }
 0x384   :  { %v2232_v58 = vand.u32 63, %v9028_v40  ;;  %v2215_v10 = vand.u32 63, %v9031_v41  ;;  %v2216_v61 = vand.u32 63, %v9034_v42 }
 0x385   :  { %vm2263_vm12 = vcmp.eq.s32.totalorder %v2231_v9, %v8989_v26  ;;  %v2240_v9 = vand.u32 63, %v9196_v27 }
 0x386   :  { %1825 = vmatpush1.bf16.msra.mxu0 %v7310_v17  ;;  %1866 = vmatpush1.bf16.msra.mxu1 %v7312_v46  ;;  %v1078_v17 = vld [vmem:[#allocation8 + $0x3f0] sm:$0xff]  ;;  %vm2264_vm13 = vcmp.eq.s32.totalorder %v2232_v58, %v8989_v26  ;;  %vm2247_vm15 = vcmp.eq.s32.totalorder %v2215_v10, %v8989_v26  ;;  %v1974_v10 = vld [vmem:[#allocation2 + $0x11] ss:$2 sm:$0x3] }
 0x387   :  { %1826 = vmatprep.subr.bf16.mxu0 %v7319_v34  ;;  %1867 = vmatprep.subr.bf16.mxu1 %v7321_v19  ;;  %v7343_v46 = vcombine.high %v1074_v16, %v1078_v17  ;;  %v7345_v34 = vcombine.high %v1075_v5, %v1079_v18  ;;  %v7342_v19 = vcombine.low %v1074_v16, %v1078_v17  ;;  %vm8317_vm14 = vmpackc.low %vm2264_vm13, %vm2263_vm12  ;;  %v2242_v16 = vand.u32 63, %v9218_v39 }
 0x388   :  { %v2225_v5 = vand.u32 63, %v9224_v48  ;;  %v2226_v18 = vand.u32 63, %v9246_v54 }
 0x38a   :  { %1827 = vmatpush1.bf16.msra.mxu0 %v7318_v47  ;;  %1868 = vmatpush1.bf16.msra.mxu1 %v7320_v56  ;;  %v2212_v47 = vand.u32 63, %v8984_v23  ;;  %v2230_v56 = vand.u32 63, %v8999_v30 }
 0x38b   :  { %1828 = vmatprep.subr.bf16.mxu0 %v7327_v1  ;;  %1869 = vmatprep.subr.bf16.mxu1 %v7329_v7  ;;  %v2213_v1 = vand.u32 63, %v9004_v31  ;;  %v2214_v7 = vand.u32 63, %v9011_v35 }
 0x38c   :  { %vm2244_vm3 = vcmp.eq.s32.totalorder %v2212_v47, %v8989_v26  ;;  %vm2262_vm6 = vcmp.eq.s32.totalorder %v2230_v56, %v8989_v26  ;;  %v2221_v47 = vand.u32 63, %v9142_v8 }
 0x38d   :  { %vm8311_vm4 = vmpackc.low %vm2244_vm3, %vm2243_vm2  ;;  %vm2245_vm9 = vcmp.eq.s32.totalorder %v2213_v1, %v8989_v26  ;;  %vm2246_vm10 = vcmp.eq.s32.totalorder %v2214_v7, %v8989_v26  ;;  %v2239_v7 = vand.u32 63, %v9182_v24 }
 0x38e   :  { %1829 = vmatpush1.bf16.msra.mxu0 %v7326_v13  ;;  %1870 = vmatpush1.bf16.msra.mxu1 %v7328_v15  ;;  %vm8315_vm11 = vmpackc.low %vm2246_vm10, %vm2245_vm9  ;;  %v2233_v13 = vand.u32 63, %v9041_v44  ;;  %v2234_v15 = vand.u32 63, %v9044_v45 }
 0x38f   :  { %1830 = vmatprep.subr.bf16.mxu0 %v7335_v59  ;;  %1871 = vmatprep.subr.bf16.mxu1 %v7337_v32  ;;  %v2217_v59 = vand.u32 63, %v9052_v49  ;;  %v2218_v32 = vand.u32 63, %v9064_v53 }
 0x390   :  { %vm9493_vm2 = vcmp.eq.s32.totalorder %v2233_v13, %v8989_v26  ;;  %vm9498_vm3 = vcmp.eq.s32.totalorder %v2234_v15, %v8989_v26  ;;  %v2224_v13 = vand.u32 63, %v9202_v33 }
 0x392   :  { %1831 = vmatpush1.bf16.msra.mxu0 %v7334_v43  ;;  %1872 = vmatpush1.bf16.msra.mxu1 %v7336_v36  ;;  %v2235_v43 = vand.u32 63, %v9092_v60  ;;  %v2236_v36 = vand.u32 63, %v9106_v62 }
 0x393   :  { %1832 = vmatprep.subr.bf16.mxu0 %v7343_v46  ;;  %1873 = vmatprep.subr.bf16.mxu1 %v7345_v34  ;;  %v2219_v46 = vand.u32 63, %v9109_v63  ;;  %v2220_v34 = vand.u32 63, %v9112_v0 }
 0x394   :  { %vm9533_vm10 = vcmp.eq.s32.totalorder %v2235_v43, %v8989_v26 }
 0x395   :  { %vm9541_vm13 = vcmp.eq.s32.totalorder %v2219_v46, %v8989_v26 }
 0x396   :  { %1833 = vmatpush1.bf16.msra.mxu0 %v7342_v19  ;;  %1874 = vmatpush1.bf16.msra.mxu1 %v7344_v51  ;;  %v2237_v19 = vand.u32 63, %v9127_v3  ;;  %v2238_v51 = vand.u32 63, %v9130_v4 }
 0x397   :  { %8310 = vmatprep.subr.msk.bf16.mxu0 %vm8309_vm1, %v10956_v25  ;;  %8342 = vmatprep.subr.msk.bf16.mxu1 %vm8309_vm1, %v10956_v25  ;;  %vm2248_vm1 = vcmp.eq.s32.totalorder %v2216_v61, %v8989_v26  ;;  %v2223_v61 = vand.u32 63, %v9199_v28 }
 0x399   :  { %1835 = vmatmul.mubr.bf16.vlgmr.msra.gmra.mrb[8].mxu0 %v9450_v11  ;;  %1876 = vmatmul.mubr.bf16.vlgmr.msra.gmra.mrb[16].mxu1 %v9450_v11  ;;  %v2229_v11 = vand.u32 63, %v8996_v29 }
 0x39a   :  { %8312 = vmatpush3.bf16.msk.msra.mxu0 %vm8311_vm4, %v10956_v25  ;;  %8344 = vmatpush3.bf16.msk.msra.mxu1 %vm8311_vm4, %v10956_v25  ;;  %vm8319_vm4 = vmpackc.low %vm2248_vm1, %vm2247_vm15  ;;  %vm9553_vm15 = vcmp.eq.s32.totalorder %v2237_v19, %v8989_v26  ;;  %vm9558_vm1 = vcmp.eq.s32.totalorder %v2238_v51, %v8989_v26 }
 0x39b   :  { %vm2261_vm5 = vcmp.eq.s32.totalorder %v2229_v11, %v8989_v26  ;;  %v2222_v11 = vand.u32 63, %v9152_v12 }
 0x39c   :  { %vm8313_vm8 = vmpackc.low %vm2262_vm6, %vm2261_vm5  ;;  %vm9505_vm5 = vcmp.eq.s32.totalorder %v2217_v59, %v8989_v26  ;;  %vm9510_vm6 = vcmp.eq.s32.totalorder %v2218_v32, %v8989_v26  ;;  %v2241_v32 = vand.u32 63, %v9215_v37 }
 0x39d   :  { %8314 = vmatprep.subr.msk.bf16.mxu0 %vm8313_vm8, %v10956_v25  ;;  %8346 = vmatprep.subr.msk.bf16.mxu1 %vm8313_vm8, %v10956_v25  ;;  %vm8321_vm8 = vmpackc.low %vm9498_vm3, %vm9493_vm2 }
 0x39e   :  { %8316 = vmatpush3.bf16.msk.msra.mxu0 %vm8315_vm11, %v10956_v25  ;;  %8348 = vmatpush3.bf16.msk.msra.mxu1 %vm8315_vm11, %v10956_v25  ;;  %vm8323_vm9 = vmpackc.low %vm9510_vm6, %vm9505_vm5  ;;  %vm2268_vm11 = vcmp.eq.s32.totalorder %v2236_v36, %v8989_v26  ;;  %vm9582_vm5 = vcmp.eq.s32.totalorder %v2222_v11, %v8989_v26  ;;  %vm9589_vm6 = vcmp.eq.s32.totalorder %v2239_v7, %v8989_v26 }
 0x39f   :  { %8318 = vmatprep.subr.msk.bf16.mxu0 %vm8317_vm14, %v10956_v25  ;;  %8350 = vmatprep.subr.msk.bf16.mxu1 %vm8317_vm14, %v10956_v25  ;;  %vm8325_vm12 = vmpackc.low %vm2268_vm11, %vm9533_vm10  ;;  %vm9546_vm14 = vcmp.eq.s32.totalorder %v2220_v34, %v8989_v26  ;;  %vm9613_vm11 = vcmp.eq.s32.totalorder %v2223_v61, %v8989_v26 }
 0x3a0   :  { %vm8327_vm2 = vmpackc.low %vm9546_vm14, %vm9541_vm13  ;;  %vm2273_vm13 = vcmp.eq.s32.totalorder %v2241_v32, %v8989_v26  ;;  %vm2274_vm14 = vcmp.eq.s32.totalorder %v2242_v16, %v8989_v26 }
 0x3a1   :  { %vm8329_vm3 = vmpackc.low %vm9558_vm1, %vm9553_vm15 }
 0x3a2   :  { %8320 = vmatpush3.bf16.msk.msra.mxu0 %vm8319_vm4, %v10956_v25  ;;  %8352 = vmatpush3.bf16.msk.msra.mxu1 %vm8319_vm4, %v10956_v25  ;;  %vm9577_vm4 = vcmp.eq.s32.totalorder %v2221_v47, %v8989_v26  ;;  %vm8337_vm1 = vmpackc.low %vm2274_vm14, %vm2273_vm13 }
 0x3a3   :  { %8322 = vmatprep.subr.msk.bf16.mxu0 %vm8321_vm8, %v10956_v25  ;;  %8354 = vmatprep.subr.msk.bf16.mxu1 %vm8321_vm8, %v10956_v25  ;;  %vm9594_vm8 = vcmp.eq.s32.totalorder %v2240_v9, %v8989_v26 }
 0x3a4   :  { %vm8333_vm10 = vmpackc.low %vm9594_vm8, %vm9589_vm6 }
 0x3a6   :  { %8324 = vmatpush3.bf16.msk.msra.mxu0 %vm8323_vm9, %v10956_v25  ;;  %8356 = vmatpush3.bf16.msk.msra.mxu1 %vm8323_vm9, %v10956_v25  ;;  %vm8331_vm9 = vmpackc.low %vm9582_vm5, %vm9577_vm4 }
 0x3a7   :  { %8326 = vmatprep.subr.msk.bf16.mxu0 %vm8325_vm12, %v10956_v25  ;;  %8358 = vmatprep.subr.msk.bf16.mxu1 %vm8325_vm12, %v10956_v25  ;;  %vm2256_vm12 = vcmp.eq.s32.totalorder %v2224_v13, %v8989_v26 }
 0x3a8   :  { %vm8335_vm15 = vmpackc.low %vm2256_vm12, %vm9613_vm11 }
 0x3aa   :  { %8328 = vmatpush3.bf16.msk.msra.mxu0 %vm8327_vm2, %v10956_v25  ;;  %8360 = vmatpush3.bf16.msk.msra.mxu1 %vm8327_vm2, %v10956_v25  ;;  %vm2257_vm2 = vcmp.eq.s32.totalorder %v2225_v5, %v8989_v26  ;;  %v1884_v5 = vand.u32 1, %v8975_v20 }
 0x3ab   :  { %8330 = vmatprep.subr.msk.bf16.mxu0 %vm8329_vm3, %v10956_v25  ;;  %8362 = vmatprep.subr.msk.bf16.mxu1 %vm8329_vm3, %v10956_v25  ;;  %vm2258_vm3 = vcmp.eq.s32.totalorder %v2226_v18, %v8989_v26 }
 0x3ac   :  { %vm8339_vm4 = vmpackc.low %vm2258_vm3, %vm2257_vm2  ;;  %vm2018_vm5 = vcmp.ne.s32.totalorder %v1884_v5, 1  ;;  %vm1975_vm6 = vcmp.ne.s32.totalorder %v1884_v5, 0 }
 0x3ae   :  { %8332 = vmatpush3.bf16.msk.msra.mxu0 %vm8331_vm9, %v10956_v25  ;;  %8364 = vmatpush3.bf16.msk.msra.mxu1 %vm8331_vm9, %v10956_v25 }
 0x3af   :  { %8334 = vmatprep.subr.msk.bf16.mxu0 %vm8333_vm10, %v10956_v25  ;;  %8366 = vmatprep.subr.msk.bf16.mxu1 %vm8333_vm10, %v10956_v25 }
 0x3b2   :  { %8336 = vmatpush3.bf16.msk.msra.mxu0 %vm8335_vm15, %v10956_v25  ;;  %8368 = vmatpush3.bf16.msk.msra.mxu1 %vm8335_vm15, %v10956_v25 }
 0x3b3   :  { %8338 = vmatprep.subr.msk.bf16.mxu0 %vm8337_vm1, %v10956_v25  ;;  %8370 = vmatprep.subr.msk.bf16.mxu1 %vm8337_vm1, %v10956_v25 }
 0x3b6   :  { %8340 = vmatpush3.bf16.msk.msra.mxu0 %vm8339_vm4, %v10956_v25  ;;  %8372 = vmatpush3.bf16.msk.msra.mxu1 %vm8339_vm4, %v10956_v25 }
 0x42c   :  { %v1754_v43 = vpop.f32.mrb[4].mxu0  ;;  %v9636_v36 = vpop.f32.mrb[12].mxu1 }
 0x42d   :  { %v1756_v46 = vpop.f32.mrb[5].mxu0  ;;  %v9638_v34 = vpop.f32.mrb[13].mxu1 }
 0x42e   :  { %v1926_v19 = vcombine.low %v1754_v43, %v1756_v46  ;;  %v1758_v51 = vpop.f32.mrb[6].mxu0  ;;  %v1799_v52 = vpop.f32.mrb[14].mxu1 }
 0x42f   :  { %v1759_v55 = vpop.f32.mrb[7].mxu0  ;;  %v1800_v2 = vpop.f32.mrb[15].mxu1 }
 0x430   :  { %v1933_v47 = vrot.slane %v1926_v19, %v9304_v6 }
 0x432   :  { %v1934_v11 = vcombine.high %v1933_v47, %v1933_v47  ;;  %v1941_v56 = vrot.slane %v1933_v47, %v9304_v6 }
 0x434   :  { %v1948_v1 = vrot.slane %v1934_v11, %v9304_v6  ;;  %v1949_v7 = vcombine.high %v1941_v56, %v1941_v56  ;;  %1955 = vst.msk [vmem:[#allocation2 + $0x1] ss:$2 sm:$0x3] %vm9308_vm7, %v1941_v56 }
 0x436   :  { %v1950_v9 = vcombine.high %v1948_v1, %v1948_v1  ;;  %1956 = vst.msk [vmem:[#allocation2 + $0x5] ss:$2 sm:$0x3] %vm9308_vm7, %v1948_v1  ;;  %1958 = vst.msk [vmem:[#allocation2 + $0x9] ss:$2 sm:$0x3] %vm9308_vm7, %v1949_v7 }
 0x438   :  { %1960 = vst.msk [vmem:[#allocation2 + $0xd] ss:$2 sm:$0x3] %vm9308_vm7, %v1950_v9 }
 0x43d   :  { %v1968_v61 = vld [vmem:[#allocation2 + $0x5] ss:$2 sm:$0x3]  ;;  %v1970_v13 = vld [vmem:[#allocation2 + $0x9] ss:$2 sm:$0x3] }
 0x43e   :  { %v2023_v59 = vcombine.low %v1968_v61, %v1970_v13 }
 0x43f   :  { %v1972_v58 = vld [vmem:[#allocation2 + $0xd] ss:$2 sm:$0x3] }
 0x440   :  { %v2024_v15 = vcombine.low %v1972_v58, %v1974_v10  ;;  %v2031_v16 = vrot.slane %v2023_v59, %v9304_v6 }
 0x442   :  { %v2038_v32 = vrot.slane %v2024_v15, %v9304_v6 }
 0x444   :  { %v2039_v17 = vcombine.low %v2031_v16, %v2038_v32  ;;  %v2040_v18 = vcombine.high %v2031_v16, %v2038_v32 }
 0x446   :  { %v2047_v43 = vrot.slane %v2039_v17, %v9304_v6  ;;  %v2054_v46 = vrot.slane %v2040_v18, %v9304_v6 }
 0x448   :  { %v2057_v51 = vsel %vm2018_vm5, %v2047_v43, 0.0  ;;  %v2058_v47 = vsel %vm2018_vm5, %v2054_v46, 0.0 }
 0x46c   :  { %v1836_v19 = vpop.f32.mrb[8].mxu0  ;;  %v1877_v52 = vpop.f32.mrb[16].mxu1 }
 0x46d   :  { %v2059_v55 = vadd.f32 %v2057_v51, %v1836_v19  ;;  %v1838_v2 = vpop.f32.mrb[9].mxu0  ;;  %v1879_v11 = vpop.f32.mrb[17].mxu1 }
 0x46e   :  { %v2060_v56 = vadd.f32 %v2058_v47, %v1838_v2  ;;  %v1887_v1 = vcombine.low %v1877_v52, %v1879_v11  ;;  %v1840_v7 = vpop.f32.mrb[10].mxu0  ;;  %v1881_v9 = vpop.f32.mrb[18].mxu1 }
 0x46f   :  { %v1841_v58 = vpop.f32.mrb[11].mxu0  ;;  %v1882_v10 = vpop.f32.mrb[19].mxu1 }
 0x470   :  { %v2098_v61 = vcombine.low %v2059_v55, %v2060_v56  ;;  %v1894_v13 = vrot.slane %v1887_v1, %v9304_v6  ;;  %v1961_v55 = vld [vmem:[#allocation2] ss:$2 sm:$0x3] }
 0x472   :  { %v2105_v15 = vrot.slane %v2098_v61, %v9304_v6  ;;  %v1895_v59 = vcombine.high %v1894_v13, %v1894_v13  ;;  %v1902_v32 = vrot.slane %v1894_v13, %v9304_v6 }
 0x474   :  { %v2106_v16 = vcombine.high %v2105_v15, %v2105_v15  ;;  %v2113_v17 = vrot.slane %v2105_v15, %v9304_v6  ;;  %v1909_v18 = vrot.slane %v1895_v59, %v9304_v6  ;;  %v1910_v43 = vcombine.high %v1902_v32, %v1902_v32  ;;  %1917 = vst.msk [vmem:[#allocation2 + $0x4] ss:$2 sm:$0x3] %vm9308_vm7, %v1902_v32 }
 0x476   :  { %v2120_v46 = vrot.slane %v2106_v16, %v9304_v6  ;;  %v2121_v19 = vcombine.high %v2113_v17, %v2113_v17  ;;  %2127 = vst.msk [vmem:[#allocation2 + $0x1] ss:$2 sm:$0x3] %vm9308_vm7, %v2113_v17  ;;  %v1911_v51 = vcombine.high %v1909_v18, %v1909_v18  ;;  %1919 = vst.msk [vmem:[#allocation2 + $0x8] ss:$2 sm:$0x3] %vm9308_vm7, %v1909_v18 }
 0x477   :  { %1921 = vst.msk [vmem:[#allocation2 + $0xc] ss:$2 sm:$0x3] %vm9308_vm7, %v1910_v43 }
 0x478   :  { %v2122_v52 = vcombine.high %v2120_v46, %v2120_v46  ;;  %2128 = vst.msk [vmem:[#allocation2 + $0x5] ss:$2 sm:$0x3] %vm9308_vm7, %v2120_v46  ;;  %2129 = vst.msk [vmem:[#allocation2 + $0x9] ss:$2 sm:$0x3] %vm9308_vm7, %v2121_v19 }
 0x479   :  { %1923 = vst.msk [vmem:[#allocation2 + $0x10] ss:$2 sm:$0x3] %vm9308_vm7, %v1911_v51 }
 0x47a   :  { %2130 = vst.msk [vmem:[#allocation2 + $0xd] ss:$2 sm:$0x3] %vm9308_vm7, %v2122_v52 }
 0x47b   :  { %v1962_v2 = vld [vmem:[#allocation2 + $0x4] ss:$2 sm:$0x3] }
 0x47c   :  { %v1980_v47 = vcombine.low %v1961_v55, %v1962_v2 }
 0x47d   :  { %v1964_v11 = vld [vmem:[#allocation2 + $0x8] ss:$2 sm:$0x3] }
 0x47e   :  { %v1966_v56 = vld [vmem:[#allocation2 + $0xc] ss:$2 sm:$0x3]  ;;  %v1988_v7 = vrot.slane %v1980_v47, %v9304_v6 }
 0x47f   :  { %v1981_v1 = vcombine.low %v1964_v11, %v1966_v56 }
 0x481   :  { %v1995_v9 = vrot.slane %v1981_v1, %v9304_v6 }
 0x483   :  { %v1996_v58 = vcombine.low %v1988_v7, %v1995_v9  ;;  %v1997_v10 = vcombine.high %v1988_v7, %v1995_v9 }
 0x485   :  { %v2004_v61 = vrot.slane %v1996_v58, %v9304_v6  ;;  %v2011_v13 = vrot.slane %v1997_v10, %v9304_v6 }
 0x487   :  { %v2014_v15 = vsel %vm1975_vm6, %v2004_v61, 0.0  ;;  %v2015_v59 = vsel %vm1975_vm6, %v2011_v13, 0.0 }
 0x488   :  { %v2016_v32 = vadd.f32 %v2014_v15, %v9636_v36  ;;  %v2017_v16 = vadd.f32 %v2015_v59, %v9638_v34 }
 0x48a   :  { %v2063_v17 = vcombine.low %v2016_v32, %v2017_v16 }
 0x48c   :  { %v2070_v18 = vrot.slane %v2063_v17, %v9304_v6 }
 0x48e   :  { %v2071_v43 = vcombine.high %v2070_v18, %v2070_v18  ;;  %v2078_v46 = vrot.slane %v2070_v18, %v9304_v6 }
 0x490   :  { %v2085_v19 = vrot.slane %v2071_v43, %v9304_v6  ;;  %v2086_v51 = vcombine.high %v2078_v46, %v2078_v46  ;;  %2092 = vst.msk [vmem:[#allocation2] ss:$2 sm:$0x3] %vm9308_vm7, %v2078_v46 }
 0x492   :  { %v2087_v5 = vcombine.high %v2085_v19, %v2085_v19  ;;  %2093 = vst.msk [vmem:[#allocation2 + $0x4] ss:$2 sm:$0x3] %vm9308_vm7, %v2085_v19  ;;  %2094 = vst.msk [vmem:[#allocation2 + $0x8] ss:$2 sm:$0x3] %vm9308_vm7, %v2086_v51 }
 0x494   :  { %2095 = vst.msk [vmem:[#allocation2 + $0xc] ss:$2 sm:$0x3] %vm9308_vm7, %v2087_v5 }
 0x497   :  { %v9695_v36 = vld [vmem:[#allocation2] sm:$0xf] }
 0x498   :  { %v2171_v2 = vmul.f32 %v9695_v36, %v9695_v36 }
 0x499   :  { %v9697_v34 = vld [vmem:[#allocation2 + $0x4] sm:$0xf]  ;;  %v9699_v52 = vld [vmem:[#allocation2 + $0x8] sm:$0xf] }
 0x49a   :  { %v2139_v55 = vcombine.low %v9695_v36, %v9697_v34  ;;  %v2172_v47 = vmul.f32 %v9697_v34, %v9697_v34  ;;  %v2173_v1 = vmul.f32 %v9699_v52, %v9699_v52 }
 0x49b   :  { %v9707_v11 = vld [vmem:[#allocation2 + $0xc] sm:$0xf] }
 0x49c   :  { %v2140_v56 = vcombine.low %v9699_v52, %v9707_v11  ;;  %v2174_v7 = vmul.f32 %v9707_v11, %v9707_v11  ;;  %v2179_v9 = vcombine.low %v2171_v2, %v2172_v47  ;;  %v2147_v58 = vrot.slane %v2139_v55, %v9328_v57 }
 0x49e   :  { %v2154_v10 = vrot.slane %v2140_v56, %v9328_v57  ;;  %v2180_v61 = vcombine.low %v2173_v1, %v2174_v7  ;;  %v2187_v59 = vrot.slane %v2179_v9, %v9328_v57 }
 0x4a0   :  { %v2156_v13 = vcombine.high %v2147_v58, %v2154_v10  ;;  %v2155_v15 = vcombine.low %v2147_v58, %v2154_v10  ;;  %v2194_v32 = vrot.slane %v2180_v61, %v9328_v57 }
 0x4a2   :  { %v2165_v16 = vrot.slane %v2156_v13, 4  ;;  %v2159_v17 = vrot.slane %v2155_v15, 4  ;;  %v2196_v18 = vcombine.high %v2187_v59, %v2194_v32  ;;  %v2195_v43 = vcombine.low %v2187_v59, %v2194_v32 }
 0x4a3   :  { %v10985_v32 = vmov 0.0  }
 0x4a4   :  { %v2166_v46 = vadd.f32 %v2165_v16, %v2156_v13  ;;  %v2160_v19 = vadd.f32 %v2159_v17, %v2155_v15  ;;  %v2205_v51 = vrot.slane %v2196_v18, 4  ;;  %v2199_v5 = vrot.slane %v2195_v43, 4  ;;  %v10986_v16 = vld [vmem:[#allocation29_spill] sm:$0xff] }
 0x4a5   :  { %v2461_v17 = vand.u32 63, %v10986_v16 }
 0x4a6   :  { %v2167_v2 = vrot.slane %v2166_v46, 2  ;;  %v2161_v47 = vrot.slane %v2160_v19, 2  ;;  %v2206_v55 = vadd.f32 %v2205_v51, %v2196_v18  ;;  %v2200_v14 = vadd.f32 %v2199_v5, %v2195_v43  ;;  %v2753_v51 = vld [vmem:[#allocation9] sm:$0xff] }
 0x4a7   :  { %v2460_v18 = vand.u32 63, %v8989_v26  ;;  %vm2463_vm8 = vcmp.eq.s32.totalorder %v2461_v17, %v8975_v20  ;;  %vm2465_vm9 = vcmp.eq.s32.totalorder %v2461_v17, %v8984_v23  ;;  %vm2467_vm14 = vcmp.eq.s32.totalorder %v2461_v17, %v9004_v31  ;;  %v2757_v5 = vld [vmem:[#allocation9 + $0x20] sm:$0xff] }
 0x4a8   :  { %v2168_v56 = vadd.f32 %v2167_v2, %v2166_v46  ;;  %v2162_v1 = vadd.f32 %v2161_v47, %v2160_v19  ;;  %v2207_v7 = vrot.slane %v2206_v55, 2  ;;  %v2201_v58 = vrot.slane %v2200_v14, 2  ;;  %vm9724_vm10 = vmpackc.low %vm2465_vm9, %vm2463_vm8  ;;  %v2786_v19 = vld [vmem:[#allocation9 + $0x108] sm:$0xff] }
 0x4a9   :  { %vm2462_vm11 = vcmp.eq.s32.totalorder %v2460_v18, %v8975_v20  ;;  %vm2464_vm12 = vcmp.eq.s32.totalorder %v2460_v18, %v8984_v23  ;;  %8374 = vmatprep.subr.msk.bf16.mxu1 %vm9724_vm10, %v10956_v25  ;;  %vm2469_vm15 = vcmp.eq.s32.totalorder %v2461_v17, %v9011_v35  ;;  %vm2466_vm2 = vcmp.eq.s32.totalorder %v2460_v18, %v9004_v31 }
 0x4aa   :  { %v2169_v10 = vrot.slane %v2168_v56, 1  ;;  %v2163_v9 = vrot.slane %v2162_v1, 1  ;;  %v2208_v6 = vadd.f32 %v2207_v7, %v2206_v55  ;;  %v2202_v61 = vadd.f32 %v2201_v58, %v2200_v14  ;;  %vm9733_vm13 = vmpackc.low %vm2464_vm12, %vm2462_vm11  ;;  %v2761_v55 = vld [vmem:[#allocation9 + $0x40] sm:$0xff] }
 0x4ab   :  { %vm9742_vm1 = vmpackc.low %vm2469_vm15, %vm2467_vm14  ;;  %vm2468_vm3 = vcmp.eq.s32.totalorder %v2460_v18, %v9011_v35  ;;  %vm2471_vm5 = vcmp.eq.s32.totalorder %v2461_v17, %v9031_v41  ;;  %vm2473_vm6 = vcmp.eq.s32.totalorder %v2461_v17, %v9034_v42  ;;  %vm2470_vm8 = vcmp.eq.s32.totalorder %v2460_v18, %v9031_v41  ;;  %v2769_v58 = vld [vmem:[#allocation9 + $0x80] sm:$0xff] }
 0x4ac   :  { %v2170_v54 = vadd.f32 %v2169_v10, %v2168_v56  ;;  %v2164_v48 = vadd.f32 %v2163_v9, %v2162_v1  ;;  %v2209_v39 = vrot.slane %v2208_v6, 1  ;;  %v2203_v59 = vrot.slane %v2202_v61, 1  ;;  %vm9751_vm4 = vmpackc.low %vm2468_vm3, %vm2466_vm2  ;;  %v2765_v56 = vld [vmem:[#allocation9 + $0x60] sm:$0xff] }
 0x4ad   :  { %vm2472_vm9 = vcmp.eq.s32.totalorder %v2460_v18, %v9034_v42  ;;  %vm9762_vm11 = vmpackc.low %vm2473_vm6, %vm2471_vm5  ;;  %vm2475_vm12 = vcmp.eq.s32.totalorder %v2461_v17, %v9052_v49  ;;  %vm2477_vm14 = vcmp.eq.s32.totalorder %v2461_v17, %v9064_v53  ;;  %vm2474_vm3 = vcmp.eq.s32.totalorder %v2460_v18, %v9052_v49  ;;  %v2773_v10 = vld [vmem:[#allocation9 + $0xa0] sm:$0xff] }
 0x4ae   :  { %2371 = vmatprep.mubr.f32.mxu0 %v2170_v54  ;;  %v2210_v13 = vadd.f32 %v2209_v39, %v2208_v6  ;;  %v2204_v15 = vadd.f32 %v2203_v59, %v2202_v61  ;;  %vm9771_vm15 = vmpackc.low %vm2472_vm9, %vm2470_vm8  ;;  %vm2476_vm5 = vcmp.eq.s32.totalorder %v2460_v18, %v9064_v53  ;;  %v7444_v2 = vcombine.low %v2753_v51, %v2757_v5  ;;  %v2777_v59 = vld [vmem:[#allocation9 + $0xc0] sm:$0xff]  ;;  %v2762_v54 = vld [vmem:[#allocation9 + $0x48] sm:$0xff] }
 0x4af   :  { %2372 = vmatmul.mubr.f32.vlgmr.msra.gmra.mrb[12].mxu0 %v2164_v48  ;;  %vm9775_vm2 = vmpackc.low %vm2477_vm14, %vm2475_vm12  ;;  %v7445_v47 = vcombine.high %v2753_v51, %v2757_v5  ;;  %v7453_v1 = vcombine.high %v2761_v55, %v2765_v56  ;;  %v7452_v7 = vcombine.low %v2761_v55, %v2765_v56  ;;  %v7461_v9 = vcombine.high %v2769_v58, %v2773_v10  ;;  %v2785_v18 = vld [vmem:[#allocation9 + $0x100] sm:$0xff]  ;;  %v2457_v48 = vld [vmem:[%s10875_s11] sm:$0x1] }
 0x4b0   :  { %2441 = vmatprep.mubr.f32.mxu1 %v2210_v13  ;;  %vm9787_vm6 = vmpackc.low %vm2476_vm5, %vm2474_vm3  ;;  %v7460_v61 = vcombine.low %v2769_v58, %v2773_v10  ;;  %v2781_v13 = vld [vmem:[#allocation9 + $0xe0] sm:$0xff] }
 0x4b1   :  { %2442 = vmatmul.mubr.f32.vlgmr.msra.gmra.mrb[20].mxu1 %v2204_v15  ;;  %3521 = vmatprep.subr.bf16.mxu0 %v7445_v47  ;;  %v7469_v15 = vcombine.high %v2777_v59, %v2781_v13  ;;  %v7468_v17 = vcombine.low %v2777_v59, %v2781_v13  ;;  %v2789_v14 = vld [vmem:[#allocation9 + $0x120] sm:$0xff] }
 0x4b2   :  { %2562 = vmatprep.mubr.f32.mxu1 %v10985_v32  ;;  %8376 = vmatpush1.bf16.msk.msra.mxu1 %vm9733_vm13, %v10956_v25  ;;  %v7477_v51 = vcombine.high %v2785_v18, %v2789_v14  ;;  %v7476_v5 = vcombine.low %v2785_v18, %v2789_v14  ;;  %v2797_v47 = vld [vmem:[#allocation9 + $0x160] sm:$0xff] }
 0x4b3   :  { %8378 = vmatprep.subr.msk.bf16.mxu1 %vm9742_vm1, %v10956_v25  ;;  %3522 = vmatpush1.bf16.msra.mxu0 %v7444_v2  ;;  %v2793_v2 = vld [vmem:[#allocation9 + $0x140] sm:$0xff] }
 0x4b4   :  { %3523 = vmatprep.subr.bf16.mxu0 %v7453_v1  ;;  %v7485_v55 = vcombine.high %v2793_v2, %v2797_v47  ;;  %v7484_v56 = vcombine.low %v2793_v2, %v2797_v47  ;;  %v2801_v1 = vld [vmem:[#allocation9 + $0x180] sm:$0xff]  ;;  %v2453_v47 = vld [vmem:[%s10871_s7] sm:$0x1] }
 0x4b6   :  { %8380 = vmatpush1.bf16.msk.msra.mxu1 %vm9751_vm4, %v10956_v25 }
 0x4b7   :  { %8382 = vmatprep.subr.msk.bf16.mxu1 %vm9762_vm11, %v10956_v25  ;;  %3524 = vmatpush1.bf16.msra.mxu0 %v7452_v7  ;;  %v2805_v7 = vld [vmem:[#allocation9 + $0x1a0] sm:$0xff] }
 0x4b8   :  { %3525 = vmatprep.subr.bf16.mxu0 %v7461_v9  ;;  %v7493_v58 = vcombine.high %v2801_v1, %v2805_v7  ;;  %v7492_v10 = vcombine.low %v2801_v1, %v2805_v7  ;;  %v2758_v7 = vld [vmem:[#allocation9 + $0x28] sm:$0xff] }
 0x4ba   :  { %8384 = vmatpush1.bf16.msk.msra.mxu1 %vm9771_vm15, %v10956_v25 }
 0x4bb   :  { %8386 = vmatprep.subr.msk.bf16.mxu1 %vm9775_vm2, %v10956_v25  ;;  %3526 = vmatpush1.bf16.msra.mxu0 %v7460_v61 }
 0x4bc   :  { %3527 = vmatprep.subr.bf16.mxu0 %v7469_v15 }
 0x4be   :  { %8388 = vmatpush1.bf16.msk.msra.mxu1 %vm9787_vm6, %v10956_v25 }
 0x4bf   :  { %8390 = vmatprep.subr.msk.bf16.mxu1 %vm9724_vm10, %v10956_v25  ;;  %3528 = vmatpush1.bf16.msra.mxu0 %v7468_v17  ;;  %vm2494_vm10 = vcmask 523264  }
 0x4c0   :  { %3529 = vmatprep.subr.bf16.mxu0 %v7477_v51 }
 0x4c3   :  { %3530 = vmatpush1.bf16.msra.mxu0 %v7476_v5 }
 0x4c4   :  { %3531 = vmatprep.subr.bf16.mxu0 %v7485_v55 }
 0x4c7   :  { %3532 = vmatpush1.bf16.msra.mxu0 %v7484_v56 }
 0x4c8   :  { %3533 = vmatprep.subr.bf16.mxu0 %v7493_v58  ;;  %v2766_v58 = vld [vmem:[#allocation9 + $0x68] sm:$0xff] }
 0x4c9   :  { %v7455_v43 = vcombine.high %v2762_v54, %v2766_v58  ;;  %v7454_v46 = vcombine.low %v2762_v54, %v2766_v58  ;;  %v2809_v54 = vld [vmem:[#allocation9 + $0x1c0] sm:$0xff] }
 0x4ca   :  { %v2813_v58 = vld [vmem:[#allocation9 + $0x1e0] sm:$0xff] }
 0x4cb   :  { %3534 = vmatpush1.bf16.msra.mxu0 %v7492_v10 }
 0x582   :  { %v7975_v9 = vpop.f32.mrb[12].mxu0 }
 0x583   :  { %v7976_v61 = vpop.f32.mrb[13].mxu0 }
 0x584   :  { %v7977_v59 = vadd.f32 %v7976_v61, %v7975_v9  ;;  %v8010_v13 = vpop.f32.mrb[20].mxu1  ;;  %v2770_v9 = vld [vmem:[#allocation9 + $0x88] sm:$0xff] }
 0x585   :  { %v8011_v15 = vpop.f32.mrb[21].mxu1  ;;  %v2774_v61 = vld [vmem:[#allocation9 + $0xa8] sm:$0xff] }
 0x586   :  { %v2448_v17 = vmul.f32 0.03125, %v7977_v59  ;;  %v8012_v18 = vadd.f32 %v8011_v15, %v8010_v13  ;;  %v7463_v59 = vcombine.high %v2770_v9, %v2774_v61  ;;  %v2778_v13 = vld [vmem:[#allocation9 + $0xc8] sm:$0xff] }
 0x587   :  { %v2782_v15 = vld [vmem:[#allocation9 + $0xe8] sm:$0xff] }
 0x588   :  { %v2450_v14 = vmul.f32 %v2448_v17, %v2448_v17  ;;  %v2449_v51 = vmul.f32 0.03125, %v8012_v18  ;;  %v7471_v18 = vcombine.high %v2778_v13, %v2782_v15 }
 0x58a   :  { %v2451_v16 = vsub.f32 %v2449_v51, %v2450_v14  ;;  %v2790_v14 = vld [vmem:[#allocation9 + $0x128] sm:$0xff]  ;;  %v7470_v51 = vcombine.low %v2778_v13, %v2782_v15  ;;  %v2821_v13 = vld [vmem:[#allocation9 + $0x220] sm:$0xff] }
 0x58b   :  { %v2818_v15 = vld [vmem:[#allocation9 + $0x208] sm:$0xff] }
 0x58c   :  { %v2452_v5 = vmax.f32 %v2451_v16, 0.0  ;;  %v2754_v16 = vld [vmem:[#allocation9 + $0x8] sm:$0xff] }
 0x58d   :  { %v7447_v39 = vcombine.high %v2754_v16, %v2758_v7  ;;  %v7446_v6 = vcombine.low %v2754_v16, %v2758_v7  ;;  %v2806_v16 = vld [vmem:[#allocation9 + $0x1a8] sm:$0xff] }
 0x58e   :  { %v2454_v2 = vadd.f32 1e-05, %v2452_v5  ;;  %v7479_v5 = vcombine.high %v2786_v19, %v2790_v14 }
 0x590   :  { %8609 = vrsqrt.f32 %v2454_v2  ;;  %v2794_v2 = vld [vmem:[#allocation9 + $0x148] sm:$0xff] }
 0x59a   :  { %v8610_v55 = vpop.eup %8609 }
 0x59b   :  { %v2456_v56 = vmul.f32 %v8610_v55, %v2453_v47  ;;  %v2798_v47 = vld [vmem:[#allocation9 + $0x168] sm:$0xff]  ;;  %v7478_v55 = vcombine.low %v2786_v19, %v2790_v14 }
 0x59c   :  { %v7486_v7 = vcombine.low %v2794_v2, %v2798_v47 }
 0x59d   :  { %7426 = vmatmul.mubr.msk.f32.vlgmr.msra.gmra.mrb[22].mxu1 %vm2494_vm10, %v2456_v56  ;;  %v2458_v1 = vmul.f32 %v2456_v56, %v2448_v17  ;;  %v7462_v17 = vcombine.low %v2770_v9, %v2774_v61  ;;  %v7487_v56 = vcombine.high %v2794_v2, %v2798_v47  ;;  %v7500_v9 = vcombine.low %v2809_v54, %v2813_v58  ;;  %v2829_v2 = vld [vmem:[#allocation9 + $0x260] sm:$0xff]  ;;  %v2826_v47 = vld [vmem:[#allocation9 + $0x248] sm:$0xff] }
 0x59e   :  { %8392 = vmatpush1.bf16.msk.msra.mxu1 %vm9733_vm13, %v10956_v25  ;;  %2636 = vmatprep.mubr.f32.mxu1 %v10985_v32 }
 0x59f   :  { %8394 = vmatprep.subr.msk.bf16.mxu1 %vm9742_vm1, %v10956_v25  ;;  %v2459_v10 = vsub.f32 %v2457_v48, %v2458_v1  ;;  %v2802_v1 = vld [vmem:[#allocation9 + $0x188] sm:$0xff] }
 0x5a0   :  { %v7494_v48 = vcombine.low %v2802_v1, %v2806_v16 }
 0x5a2   :  { %8396 = vmatpush1.bf16.msk.msra.mxu1 %vm9751_vm4, %v10956_v25 }
 0x5a3   :  { %8398 = vmatprep.subr.msk.bf16.mxu1 %vm9762_vm11, %v10956_v25 }
 0x5a6   :  { %8400 = vmatpush1.bf16.msk.msra.mxu1 %vm9771_vm15, %v10956_v25 }
 0x5a7   :  { %8402 = vmatprep.subr.msk.bf16.mxu1 %vm9775_vm2, %v10956_v25 }
 0x5aa   :  { %8404 = vmatpush1.bf16.msk.msra.mxu1 %vm9787_vm6, %v10956_v25 }
 0x5ab   :  { %3562 = vmatprep.subr.bf16.mxu1 %v7447_v39  ;;  %v7495_v39 = vcombine.high %v2802_v1, %v2806_v16 }
 0x5ad   :  { %7443 = vmatmul.mubr.msk.f32.vlgmr.msra.gmra.mrb[24].mxu1 %vm2494_vm10, %v2459_v10  ;;  %v7501_v10 = vcombine.high %v2809_v54, %v2813_v58  ;;  %v2834_v54 = vld [vmem:[#allocation9 + $0x288] sm:$0xff] }
 0x5ae   :  { %3563 = vmatpush1.bf16.msra.mxu1 %v7446_v6  ;;  %v2810_v6 = vld [vmem:[#allocation9 + $0x1c8] sm:$0xff] }
 0x5af   :  { %3564 = vmatprep.subr.bf16.mxu1 %v7455_v43  ;;  %v2814_v43 = vld [vmem:[#allocation9 + $0x1e8] sm:$0xff]  ;;  %3535 = vmatprep.subr.bf16.mxu0 %v7501_v10 }
 0x5b0   :  { %v7502_v61 = vcombine.low %v2810_v6, %v2814_v43  ;;  %3536 = vmatpush1.bf16.msra.mxu0 %v7500_v9 }
 0x5b2   :  { %3565 = vmatpush1.bf16.msra.mxu1 %v7454_v46  ;;  %v7503_v46 = vcombine.high %v2810_v6, %v2814_v43  ;;  %v2838_v6 = vld [vmem:[#allocation9 + $0x2a8] sm:$0xff] }
 0x5b3   :  { %3566 = vmatprep.subr.bf16.mxu1 %v7463_v59  ;;  %v2817_v59 = vld [vmem:[#allocation9 + $0x200] sm:$0xff]  ;;  %v7527_v43 = vcombine.high %v2834_v54, %v2838_v6  ;;  %v7526_v9 = vcombine.low %v2834_v54, %v2838_v6  ;;  %v2862_v54 = vld [vmem:[#allocation9 + $0x368] sm:$0xff] }
 0x5b4   :  { %v7508_v19 = vcombine.low %v2817_v59, %v2821_v13 }
 0x5b6   :  { %3567 = vmatpush1.bf16.msra.mxu1 %v7462_v17  ;;  %v7509_v17 = vcombine.high %v2817_v59, %v2821_v13  ;;  %v2842_v59 = vld [vmem:[#allocation9 + $0x2c8] sm:$0xff] }
 0x5b7   :  { %3568 = vmatprep.subr.bf16.mxu1 %v7471_v18  ;;  %v2822_v18 = vld [vmem:[#allocation9 + $0x228] sm:$0xff] }
 0x5b8   :  { %v7510_v14 = vcombine.low %v2818_v15, %v2822_v18  ;;  %3537 = vmatprep.subr.bf16.mxu0 %v7509_v17 }
 0x5b9   :  { %3538 = vmatpush1.bf16.msra.mxu0 %v7508_v19 }
 0x5ba   :  { %3569 = vmatpush1.bf16.msra.mxu1 %v7470_v51  ;;  %v7511_v51 = vcombine.high %v2818_v15, %v2822_v18  ;;  %v2846_v15 = vld [vmem:[#allocation9 + $0x2e8] sm:$0xff] }
 0x5bb   :  { %3570 = vmatprep.subr.bf16.mxu1 %v7479_v5  ;;  %v2825_v5 = vld [vmem:[#allocation9 + $0x240] sm:$0xff]  ;;  %v7534_v18 = vcombine.low %v2842_v59, %v2846_v15  ;;  %v7535_v19 = vcombine.high %v2842_v59, %v2846_v15 }
 0x5bc   :  { %v7516_v1 = vcombine.low %v2825_v5, %v2829_v2  ;;  %v2873_v15 = vld [vmem:[#allocation9 + $0x3c0] sm:$0xff] }
 0x5be   :  { %3571 = vmatpush1.bf16.msra.mxu1 %v7478_v55  ;;  %v7517_v55 = vcombine.high %v2825_v5, %v2829_v2  ;;  %v2850_v5 = vld [vmem:[#allocation9 + $0x308] sm:$0xff] }
 0x5bf   :  { %3572 = vmatprep.subr.bf16.mxu1 %v7487_v56  ;;  %v2830_v56 = vld [vmem:[#allocation9 + $0x268] sm:$0xff] }
 0x5c0   :  { %v7518_v16 = vcombine.low %v2826_v47, %v2830_v56  ;;  %3539 = vmatprep.subr.bf16.mxu0 %v7517_v55 }
 0x5c1   :  { %3540 = vmatpush1.bf16.msra.mxu0 %v7516_v1 }
 0x5c2   :  { %3573 = vmatpush1.bf16.msra.mxu1 %v7486_v7  ;;  %v7519_v7 = vcombine.high %v2826_v47, %v2830_v56  ;;  %v2854_v47 = vld [vmem:[#allocation9 + $0x328] sm:$0xff] }
 0x5c3   :  { %3574 = vmatprep.subr.bf16.mxu1 %v7495_v39  ;;  %v2833_v39 = vld [vmem:[#allocation9 + $0x280] sm:$0xff]  ;;  %v7542_v56 = vcombine.low %v2850_v5, %v2854_v47  ;;  %v7543_v1 = vcombine.high %v2850_v5, %v2854_v47  ;;  %v2878_v5 = vld [vmem:[#allocation9 + $0x3e8] sm:$0xff] }
 0x5c6   :  { %3575 = vmatpush1.bf16.msra.mxu1 %v7494_v48  ;;  %v2837_v48 = vld [vmem:[#allocation9 + $0x2a0] sm:$0xff] }
 0x5c7   :  { %3576 = vmatprep.subr.bf16.mxu1 %v7503_v46  ;;  %v7525_v58 = vcombine.high %v2833_v39, %v2837_v48  ;;  %v7524_v10 = vcombine.low %v2833_v39, %v2837_v48  ;;  %v2845_v46 = vld [vmem:[#allocation9 + $0x2e0] sm:$0xff]  ;;  %v2858_v39 = vld [vmem:[#allocation9 + $0x348] sm:$0xff] }
 0x5c8   :  { %v7550_v6 = vcombine.low %v2858_v39, %v2862_v54 }
 0x5c9   :  { %3541 = vmatprep.subr.bf16.mxu0 %v7525_v58 }
 0x5ca   :  { %3577 = vmatpush1.bf16.msra.mxu1 %v7502_v61  ;;  %3542 = vmatpush1.bf16.msra.mxu0 %v7524_v10  ;;  %v2841_v61 = vld [vmem:[#allocation9 + $0x2c0] sm:$0xff]  ;;  %v7551_v10 = vcombine.high %v2858_v39, %v2862_v54  ;;  %v9835_v39 = vld [vmem:[#allocation9 + $0x38] sm:$0xff]  ;;  %v2771_v54 = vld [vmem:[#allocation9 + $0x90] sm:$0xff] }
 0x5cb   :  { %3578 = vmatprep.subr.bf16.mxu1 %v7511_v51  ;;  %v7533_v13 = vcombine.high %v2841_v61, %v2845_v46  ;;  %v7532_v17 = vcombine.low %v2841_v61, %v2845_v46  ;;  %v2853_v51 = vld [vmem:[#allocation9 + $0x320] sm:$0xff]  ;;  %v2866_v61 = vld [vmem:[#allocation9 + $0x388] sm:$0xff] }
 0x5cd   :  { %3543 = vmatprep.subr.bf16.mxu0 %v7533_v13  ;;  %v2870_v13 = vld [vmem:[#allocation9 + $0x3a8] sm:$0xff] }
 0x5ce   :  { %3579 = vmatpush1.bf16.msra.mxu1 %v7510_v14  ;;  %3544 = vmatpush1.bf16.msra.mxu0 %v7532_v17  ;;  %v2849_v14 = vld [vmem:[#allocation9 + $0x300] sm:$0xff] }
 0x5cf   :  { %3580 = vmatprep.subr.bf16.mxu1 %v7519_v7  ;;  %v7541_v2 = vcombine.high %v2849_v14, %v2853_v51  ;;  %v7540_v55 = vcombine.low %v2849_v14, %v2853_v51  ;;  %v2861_v7 = vld [vmem:[#allocation9 + $0x360] sm:$0xff]  ;;  %v2874_v51 = vld [vmem:[#allocation9 + $0x3c8] sm:$0xff] }
 0x5d0   :  { %v2877_v17 = vld [vmem:[#allocation9 + $0x3e0] sm:$0xff] }
 0x5d1   :  { %3545 = vmatprep.subr.bf16.mxu0 %v7541_v2  ;;  %v7565_v14 = vcombine.high %v2873_v15, %v2877_v17  ;;  %v7567_v2 = vcombine.high %v2874_v51, %v2878_v5  ;;  %v7564_v47 = vcombine.low %v2873_v15, %v2877_v17 }
 0x5d2   :  { %3581 = vmatpush1.bf16.msra.mxu1 %v7518_v16  ;;  %3546 = vmatpush1.bf16.msra.mxu0 %v7540_v55  ;;  %v2857_v16 = vld [vmem:[#allocation9 + $0x340] sm:$0xff]  ;;  %v7566_v55 = vcombine.low %v2874_v51, %v2878_v5 }
 0x5d3   :  { %3582 = vmatprep.subr.bf16.mxu1 %v7527_v43  ;;  %v7549_v48 = vcombine.high %v2857_v16, %v2861_v7  ;;  %v7548_v58 = vcombine.low %v2857_v16, %v2861_v7  ;;  %v2865_v43 = vld [vmem:[#allocation9 + $0x380] sm:$0xff]  ;;  %v9831_v16 = vld [vmem:[#allocation9 + $0x18] sm:$0xff] }
 0x5d5   :  { %3547 = vmatprep.subr.bf16.mxu0 %v7549_v48 }
 0x5d6   :  { %3583 = vmatpush1.bf16.msra.mxu1 %v7526_v9  ;;  %3548 = vmatpush1.bf16.msra.mxu0 %v7548_v58  ;;  %v2869_v9 = vld [vmem:[#allocation9 + $0x3a0] sm:$0xff]  ;;  %v7451_v58 = vcombine.high %v9831_v16, %v9835_v39 }
 0x5d7   :  { %3584 = vmatprep.subr.bf16.mxu1 %v7535_v19  ;;  %v7556_v46 = vcombine.low %v2865_v43, %v2869_v9  ;;  %v7557_v59 = vcombine.high %v2865_v43, %v2869_v9  ;;  %v7559_v19 = vcombine.high %v2866_v61, %v2870_v13 }
 0x5d9   :  { %3549 = vmatprep.subr.bf16.mxu0 %v7557_v59 }
 0x5da   :  { %3585 = vmatpush1.bf16.msra.mxu1 %v7534_v18  ;;  %v7558_v18 = vcombine.low %v2866_v61, %v2870_v13  ;;  %3550 = vmatpush1.bf16.msra.mxu0 %v7556_v46 }
 0x5db   :  { %3586 = vmatprep.subr.bf16.mxu1 %v7543_v1  ;;  %3551 = vmatprep.subr.bf16.mxu0 %v7565_v14  ;;  %v9829_v1 = vld [vmem:[#allocation9 + $0x30] sm:$0xff] }
 0x5de   :  { %3587 = vmatpush1.bf16.msra.mxu1 %v7542_v56  ;;  %3552 = vmatpush1.bf16.msra.mxu0 %v7564_v47  ;;  %v9827_v56 = vld [vmem:[#allocation9 + $0x10] sm:$0xff] }
 0x5df   :  { %3588 = vmatprep.subr.bf16.mxu1 %v7551_v10  ;;  %v7449_v7 = vcombine.high %v9827_v56, %v9829_v1  ;;  %v7448_v48 = vcombine.low %v9827_v56, %v9829_v1 }
 0x5e1   :  { %3603 = vmatprep.subr.bf16.mxu0 %v7449_v7 }
 0x5e2   :  { %3589 = vmatpush1.bf16.msra.mxu1 %v7550_v6 }
 0x5e3   :  { %3590 = vmatprep.subr.bf16.mxu1 %v7559_v19 }
 0x5e6   :  { %3591 = vmatpush1.bf16.msra.mxu1 %v7558_v18 }
 0x5e7   :  { %3592 = vmatprep.subr.bf16.mxu1 %v7567_v2 }
 0x5ea   :  { %3593 = vmatpush1.bf16.msra.mxu1 %v7566_v55 }
 0x5eb   :  { %3644 = vmatprep.subr.bf16.mxu1 %v7451_v58 }
 0x670   :  { %v2564_v6 = vpop.f32.mrb[22].mxu1 }
 0x671   :  { %v2646_v10 = vrot.slane %v2564_v6, %v9439_v50  ;;  %v2566_v43 = vpop.f32.mrb[23].mxu1 }
 0x672   :  { %v2650_v9 = vrot.slane %v2566_v43, %v9439_v50 }
 0x674   :  { %v2653_v61 = vcombine.low %v2646_v10, %v2650_v9  ;;  %v2654_v46 = vcombine.high %v2646_v10, %v2650_v9 }
 0x676   :  { %v2661_v59 = vrot.slane %v2653_v61, %v9328_v57  ;;  %v2668_v13 = vrot.slane %v2654_v46, %v9328_v57 }
 0x678   :  { %v2669_v14 = vcombine.high %v2661_v59, %v2661_v59  ;;  %v2670_v51 = vcombine.high %v2668_v13, %v2668_v13  ;;  %v2675_v47 = vmul.f32 %v2661_v59, %v9695_v36  ;;  %v2677_v55 = vmul.f32 %v2668_v13, %v9699_v52 }
 0x67a   :  { %v2676_v6 = vmul.f32 %v2669_v14, %v9697_v34  ;;  %v2678_v10 = vmul.f32 %v2670_v51, %v9707_v11 }
 0x680   :  { %v2638_v15 = vpop.f32.mrb[24].mxu1 }
 0x681   :  { %v2682_v17 = vrot.slane %v2638_v15, %v9439_v50  ;;  %v2640_v18 = vpop.f32.mrb[25].mxu1 }
 0x682   :  { %v2686_v19 = vrot.slane %v2640_v18, %v9439_v50 }
 0x684   :  { %v2689_v5 = vcombine.low %v2682_v17, %v2686_v19  ;;  %v2690_v2 = vcombine.high %v2682_v17, %v2686_v19 }
 0x686   :  { %v2697_v7 = vrot.slane %v2689_v5, %v9328_v57  ;;  %v2704_v58 = vrot.slane %v2690_v2, %v9328_v57 }
 0x688   :  { %v2705_v43 = vcombine.high %v2697_v7, %v2697_v7  ;;  %v2706_v9 = vcombine.high %v2704_v58, %v2704_v58  ;;  %v2711_v61 = vadd.f32 %v2697_v7, %v2675_v47  ;;  %v2713_v46 = vadd.f32 %v2704_v58, %v2677_v55  ;;  %v2763_v7 = vld [vmem:[#allocation9 + $0x50] sm:$0xff] }
 0x689   :  { %v2767_v58 = vld [vmem:[#allocation9 + $0x70] sm:$0xff] }
 0x68a   :  { %v2712_v15 = vadd.f32 %v2705_v43, %v2676_v6  ;;  %v2714_v18 = vadd.f32 %v2706_v9, %v2678_v10  ;;  %vm2715_vm13 = vcmp.gt.f32.partialorder %v2711_v61, 0.0  ;;  %vm2717_vm1 = vcmp.gt.f32.partialorder %v2713_v46, 0.0  ;;  %v2764_v6 = vld [vmem:[#allocation9 + $0x58] sm:$0xff] }
 0x68b   :  { %v2719_v17 = vmul.f32 0.2, %v2711_v61  ;;  %v2721_v36 = vmul.f32 0.2, %v2713_v46  ;;  %v2768_v10 = vld [vmem:[#allocation9 + $0x78] sm:$0xff] }
 0x68c   :  { %vm2716_vm4 = vcmp.gt.f32.partialorder %v2712_v15, 0.0  ;;  %vm2718_vm8 = vcmp.gt.f32.partialorder %v2714_v18, 0.0  ;;  %v2720_v52 = vmul.f32 0.2, %v2712_v15  ;;  %v2722_v59 = vmul.f32 0.2, %v2714_v18 }
 0x68d   :  { %v2723_v13 = vsel %vm2715_vm13, %v2711_v61, %v2719_v17  ;;  %v2725_v19 = vsel %vm2717_vm1, %v2713_v46, %v2721_v36  ;;  %v7457_v61 = vcombine.high %v2763_v7, %v2767_v58  ;;  %v7459_v46 = vcombine.high %v2764_v6, %v2768_v10  ;;  %v2776_v17 = vld [vmem:[#allocation9 + $0xb8] sm:$0xff] }
 0x68e   :  { %v2724_v5 = vsel %vm2716_vm4, %v2712_v15, %v2720_v52  ;;  %v2726_v34 = vsel %vm2718_vm8, %v2714_v18, %v2722_v59  ;;  %v2775_v15 = vld [vmem:[#allocation9 + $0xb0] sm:$0xff]  ;;  %v2772_v18 = vld [vmem:[#allocation9 + $0x98] sm:$0xff]  ;;  %v11003_v36 = vcombine.low %v9831_v16, %v9835_v39  ;;  %v7456_v52 = vcombine.low %v2763_v7, %v2767_v58 }
 0x68f   :  { %v2731_v14 = vcombine.low %v2723_v13, %v2724_v5  ;;  %v2732_v11 = vcombine.low %v2725_v19, %v2726_v34  ;;  %v7458_v59 = vcombine.low %v2764_v6, %v2768_v10  ;;  %v7465_v13 = vcombine.high %v2771_v54, %v2775_v15  ;;  %v2779_v5 = vld [vmem:[#allocation9 + $0xd0] sm:$0xff] }
 0x690   :  { %v7467_v19 = vcombine.high %v2772_v18, %v2776_v17  ;;  %v2783_v34 = vld [vmem:[#allocation9 + $0xf0] sm:$0xff]  ;;  %v7464_v56 = vcombine.low %v2771_v54, %v2775_v15  ;;  %v7466_v1 = vcombine.low %v2772_v18, %v2776_v17  ;;  %v2796_v54 = vld [vmem:[#allocation9 + $0x158] sm:$0xff] }
 0x691   :  { %v2739_v51 = vrot.slane %v2731_v14, %v9328_v57  ;;  %v2746_v2 = vrot.slane %v2732_v11, %v9328_v57  ;;  %v2780_v14 = vld [vmem:[#allocation9 + $0xd8] sm:$0xff]  ;;  %v7473_v16 = vcombine.high %v2779_v5, %v2783_v34  ;;  %v2795_v10 = vld [vmem:[#allocation9 + $0x150] sm:$0xff] }
 0x692   :  { %v2784_v11 = vld [vmem:[#allocation9 + $0xf8] sm:$0xff] }
 0x693   :  { %v2748_v47 = vcombine.high %v2739_v51, %v2746_v2  ;;  %v2747_v55 = vcombine.low %v2739_v51, %v2746_v2  ;;  %v7475_v39 = vcombine.high %v2780_v14, %v2784_v11  ;;  %v2791_v51 = vld [vmem:[#allocation9 + $0x130] sm:$0xff]  ;;  %v2788_v2 = vld [vmem:[#allocation9 + $0x118] sm:$0xff]  ;;  %v7474_v7 = vcombine.low %v2780_v14, %v2784_v11 }
 0x694   :  { %v2811_v11 = vld [vmem:[#allocation9 + $0x1d0] sm:$0xff] }
 0x695   :  { %v2752_v43 = vpack.c.bf16 %v2748_v47, %v2748_v47  ;;  %v9857_v9 = vpack.c.bf16 %v2747_v55, %v2747_v55  ;;  %v2792_v47 = vld [vmem:[#allocation9 + $0x138] sm:$0xff]  ;;  %v7472_v55 = vcombine.low %v2779_v5, %v2783_v34 }
 0x696   :  { %v7483_v6 = vcombine.high %v2788_v2, %v2792_v47  ;;  %v7482_v15 = vcombine.low %v2788_v2, %v2792_v47  ;;  %v2819_v47 = vld [vmem:[#allocation9 + $0x210] sm:$0xff] }
 0x697   :  { %3553 = vmatprep.mubr.bf16.mxu0 %v2752_v43  ;;  %3594 = vmatprep.mubr.bf16.mxu1 %v2752_v43 }
 0x698   :  { %3554 = vmatmul.mubr.bf16.vlgmr.msra.gmra.mrb[16].mxu0 %v9857_v9  ;;  %3595 = vmatmul.mubr.bf16.vlgmr.msra.gmra.mrb[28].mxu1 %v9857_v9 }
 0x699   :  { %3604 = vmatpush1.bf16.msra.mxu0 %v7448_v48  ;;  %3645 = vmatpush1.bf16.msra.mxu1 %v11003_v36  ;;  %v2787_v48 = vld [vmem:[#allocation9 + $0x110] sm:$0xff] }
 0x69a   :  { %3635 = vmatprep.mubr.bf16.mxu0 %v2752_v43  ;;  %3676 = vmatprep.mubr.bf16.mxu1 %v2752_v43  ;;  %v7481_v58 = vcombine.high %v2787_v48, %v2791_v51  ;;  %v2799_v43 = vld [vmem:[#allocation9 + $0x170] sm:$0xff] }
 0x69b   :  { %3605 = vmatprep.subr.bf16.mxu0 %v7457_v61  ;;  %3646 = vmatprep.subr.bf16.mxu1 %v7459_v46  ;;  %v2800_v61 = vld [vmem:[#allocation9 + $0x178] sm:$0xff]  ;;  %v7480_v46 = vcombine.low %v2787_v48, %v2791_v51  ;;  %v7489_v18 = vcombine.high %v2795_v10, %v2799_v43  ;;  %v2803_v36 = vld [vmem:[#allocation9 + $0x190] sm:$0xff] }
 0x69c   :  { %v7491_v17 = vcombine.high %v2796_v54, %v2800_v61  ;;  %v7490_v5 = vcombine.low %v2796_v54, %v2800_v61  ;;  %v2827_v61 = vld [vmem:[#allocation9 + $0x250] sm:$0xff] }
 0x69d   :  { %3606 = vmatpush1.bf16.msra.mxu0 %v7456_v52  ;;  %3647 = vmatpush1.bf16.msra.mxu1 %v7458_v59  ;;  %v2807_v52 = vld [vmem:[#allocation9 + $0x1b0] sm:$0xff]  ;;  %v2804_v59 = vld [vmem:[#allocation9 + $0x198] sm:$0xff] }
 0x69e   :  { %3607 = vmatprep.subr.bf16.mxu0 %v7465_v13  ;;  %3648 = vmatprep.subr.bf16.mxu1 %v7467_v19  ;;  %v2808_v13 = vld [vmem:[#allocation9 + $0x1b8] sm:$0xff]  ;;  %v7488_v19 = vcombine.low %v2795_v10, %v2799_v43  ;;  %v7497_v34 = vcombine.high %v2803_v36, %v2807_v52 }
 0x69f   :  { %v7499_v14 = vcombine.high %v2804_v59, %v2808_v13  ;;  %v7498_v48 = vcombine.low %v2804_v59, %v2808_v13  ;;  %v2835_v13 = vld [vmem:[#allocation9 + $0x290] sm:$0xff] }
 0x6a1   :  { %3608 = vmatpush1.bf16.msra.mxu0 %v7464_v56  ;;  %3649 = vmatpush1.bf16.msra.mxu1 %v7466_v1  ;;  %v2815_v56 = vld [vmem:[#allocation9 + $0x1f0] sm:$0xff]  ;;  %v2812_v1 = vld [vmem:[#allocation9 + $0x1d8] sm:$0xff] }
 0x6a2   :  { %3609 = vmatprep.subr.bf16.mxu0 %v7473_v16  ;;  %3650 = vmatprep.subr.bf16.mxu1 %v7475_v39  ;;  %v2816_v16 = vld [vmem:[#allocation9 + $0x1f8] sm:$0xff]  ;;  %v7496_v39 = vcombine.low %v2803_v36, %v2807_v52  ;;  %v7505_v51 = vcombine.high %v2811_v11, %v2815_v56 }
 0x6a3   :  { %v7507_v2 = vcombine.high %v2812_v1, %v2816_v16  ;;  %v7506_v10 = vcombine.low %v2812_v1, %v2816_v16  ;;  %v2843_v16 = vld [vmem:[#allocation9 + $0x2d0] sm:$0xff] }
 0x6a5   :  { %3610 = vmatpush1.bf16.msra.mxu0 %v7472_v55  ;;  %3651 = vmatpush1.bf16.msra.mxu1 %v7474_v7  ;;  %v2823_v55 = vld [vmem:[#allocation9 + $0x230] sm:$0xff]  ;;  %v2820_v7 = vld [vmem:[#allocation9 + $0x218] sm:$0xff] }
 0x6a6   :  { %3611 = vmatprep.subr.bf16.mxu0 %v7481_v58  ;;  %3652 = vmatprep.subr.bf16.mxu1 %v7483_v6  ;;  %v2824_v58 = vld [vmem:[#allocation9 + $0x238] sm:$0xff]  ;;  %v7504_v6 = vcombine.low %v2811_v11, %v2815_v56  ;;  %v7513_v43 = vcombine.high %v2819_v47, %v2823_v55 }
 0x6a7   :  { %v7515_v54 = vcombine.high %v2820_v7, %v2824_v58  ;;  %v7514_v36 = vcombine.low %v2820_v7, %v2824_v58  ;;  %v2851_v58 = vld [vmem:[#allocation9 + $0x310] sm:$0xff] }
 0x6a9   :  { %3612 = vmatpush1.bf16.msra.mxu0 %v7480_v46  ;;  %3653 = vmatpush1.bf16.msra.mxu1 %v7482_v15  ;;  %v2831_v46 = vld [vmem:[#allocation9 + $0x270] sm:$0xff]  ;;  %v2828_v15 = vld [vmem:[#allocation9 + $0x258] sm:$0xff] }
 0x6aa   :  { %3613 = vmatprep.subr.bf16.mxu0 %v7489_v18  ;;  %3654 = vmatprep.subr.bf16.mxu1 %v7491_v17  ;;  %v2832_v18 = vld [vmem:[#allocation9 + $0x278] sm:$0xff]  ;;  %v7512_v17 = vcombine.low %v2819_v47, %v2823_v55  ;;  %v7521_v52 = vcombine.high %v2827_v61, %v2831_v46 }
 0x6ab   :  { %v7523_v59 = vcombine.high %v2828_v15, %v2832_v18  ;;  %v7522_v11 = vcombine.low %v2828_v15, %v2832_v18  ;;  %v2859_v18 = vld [vmem:[#allocation9 + $0x350] sm:$0xff] }
 0x6ad   :  { %3614 = vmatpush1.bf16.msra.mxu0 %v7488_v19  ;;  %3655 = vmatpush1.bf16.msra.mxu1 %v7490_v5  ;;  %v2839_v19 = vld [vmem:[#allocation9 + $0x2b0] sm:$0xff]  ;;  %v2836_v5 = vld [vmem:[#allocation9 + $0x298] sm:$0xff] }
 0x6ae   :  { %3615 = vmatprep.subr.bf16.mxu0 %v7497_v34  ;;  %3656 = vmatprep.subr.bf16.mxu1 %v7499_v14  ;;  %v2840_v34 = vld [vmem:[#allocation9 + $0x2b8] sm:$0xff]  ;;  %v7520_v14 = vcombine.low %v2827_v61, %v2831_v46  ;;  %v7529_v56 = vcombine.high %v2835_v13, %v2839_v19 }
 0x6af   :  { %v7531_v1 = vcombine.high %v2836_v5, %v2840_v34  ;;  %v7530_v47 = vcombine.low %v2836_v5, %v2840_v34  ;;  %v2867_v34 = vld [vmem:[#allocation9 + $0x390] sm:$0xff] }
 0x6b1   :  { %3616 = vmatpush1.bf16.msra.mxu0 %v7496_v39  ;;  %3657 = vmatpush1.bf16.msra.mxu1 %v7498_v48  ;;  %v2847_v39 = vld [vmem:[#allocation9 + $0x2f0] sm:$0xff]  ;;  %v2844_v48 = vld [vmem:[#allocation9 + $0x2d8] sm:$0xff] }
 0x6b2   :  { %3617 = vmatprep.subr.bf16.mxu0 %v7505_v51  ;;  %3658 = vmatprep.subr.bf16.mxu1 %v7507_v2  ;;  %v2848_v51 = vld [vmem:[#allocation9 + $0x2f8] sm:$0xff]  ;;  %v7528_v2 = vcombine.low %v2835_v13, %v2839_v19  ;;  %v7537_v55 = vcombine.high %v2843_v16, %v2847_v39 }
 0x6b3   :  { %v7539_v7 = vcombine.high %v2844_v48, %v2848_v51  ;;  %v7538_v61 = vcombine.low %v2844_v48, %v2848_v51  ;;  %v2875_v51 = vld [vmem:[#allocation9 + $0x3d0] sm:$0xff] }
 0x6b5   :  { %3618 = vmatpush1.bf16.msra.mxu0 %v7504_v6  ;;  %3659 = vmatpush1.bf16.msra.mxu1 %v7506_v10  ;;  %v2855_v6 = vld [vmem:[#allocation9 + $0x330] sm:$0xff]  ;;  %v2852_v10 = vld [vmem:[#allocation9 + $0x318] sm:$0xff] }
 0x6b6   :  { %3619 = vmatprep.subr.bf16.mxu0 %v7513_v43  ;;  %3660 = vmatprep.subr.bf16.mxu1 %v7515_v54  ;;  %v2856_v43 = vld [vmem:[#allocation9 + $0x338] sm:$0xff]  ;;  %v7536_v54 = vcombine.low %v2843_v16, %v2847_v39  ;;  %v7545_v46 = vcombine.high %v2851_v58, %v2855_v6 }
 0x6b7   :  { %v7547_v15 = vcombine.high %v2852_v10, %v2856_v43  ;;  %v7546_v13 = vcombine.low %v2852_v10, %v2856_v43 }
 0x6b9   :  { %3620 = vmatpush1.bf16.msra.mxu0 %v7512_v17  ;;  %3661 = vmatpush1.bf16.msra.mxu1 %v7514_v36  ;;  %v2863_v17 = vld [vmem:[#allocation9 + $0x370] sm:$0xff]  ;;  %v2860_v36 = vld [vmem:[#allocation9 + $0x358] sm:$0xff] }
 0x6ba   :  { %3621 = vmatprep.subr.bf16.mxu0 %v7521_v52  ;;  %3662 = vmatprep.subr.bf16.mxu1 %v7523_v59  ;;  %v2864_v52 = vld [vmem:[#allocation9 + $0x378] sm:$0xff]  ;;  %v7544_v59 = vcombine.low %v2851_v58, %v2855_v6  ;;  %v7553_v19 = vcombine.high %v2859_v18, %v2863_v17 }
 0x6bb   :  { %v7555_v5 = vcombine.high %v2860_v36, %v2864_v52  ;;  %v7554_v16 = vcombine.low %v2860_v36, %v2864_v52  ;;  %v3986_v36 = vand.u32 31, %v9004_v31  ;;  %v3987_v52 = vand.u32 31, %v9011_v35 }
 0x6bd   :  { %3622 = vmatpush1.bf16.msra.mxu0 %v7520_v14  ;;  %3663 = vmatpush1.bf16.msra.mxu1 %v7522_v11  ;;  %v2871_v14 = vld [vmem:[#allocation9 + $0x3b0] sm:$0xff]  ;;  %v2868_v11 = vld [vmem:[#allocation9 + $0x398] sm:$0xff]  ;;  %vm4018_vm13 = vcmp.eq.s32.totalorder %v3986_v36, %v8989_v26  ;;  %vm4019_vm1 = vcmp.eq.s32.totalorder %v3987_v52, %v8989_v26  ;;  %v4012_v36 = vand.u32 31, %v9182_v24  ;;  %v4013_v52 = vand.u32 31, %v9196_v27 }
 0x6be   :  { %3623 = vmatprep.subr.bf16.mxu0 %v7529_v56  ;;  %3664 = vmatprep.subr.bf16.mxu1 %v7531_v1  ;;  %v2872_v56 = vld [vmem:[#allocation9 + $0x3b8] sm:$0xff]  ;;  %v7552_v1 = vcombine.low %v2859_v18, %v2863_v17  ;;  %v7561_v39 = vcombine.high %v2867_v34, %v2871_v14  ;;  %v3985_v18 = vand.u32 31, %v8984_v23  ;;  %v4003_v17 = vand.u32 31, %v8999_v30  ;;  %vm8411_vm4 = vmpackc.low %vm4019_vm1, %vm4018_vm13 }
 0x6bf   :  { %v7563_v48 = vcombine.high %v2868_v11, %v2872_v56  ;;  %v7562_v58 = vcombine.low %v2868_v11, %v2872_v56  ;;  %v3990_v11 = vand.u32 31, %v9052_v49  ;;  %v3991_v56 = vand.u32 31, %v9064_v53 }
 0x6c0   :  { %vm4017_vm15 = vcmp.eq.s32.totalorder %v3985_v18, %v8989_v26  ;;  %vm4035_vm5 = vcmp.eq.s32.totalorder %v4003_v17, %v8989_v26  ;;  %v3995_v18 = vand.u32 31, %v9152_v12 }
 0x6c1   :  { %3624 = vmatpush1.bf16.msra.mxu0 %v7528_v2  ;;  %3665 = vmatpush1.bf16.msra.mxu1 %v7530_v47  ;;  %v2879_v2 = vld [vmem:[#allocation9 + $0x3f0] sm:$0xff]  ;;  %v2876_v47 = vld [vmem:[#allocation9 + $0x3d8] sm:$0xff] }
 0x6c2   :  { %3625 = vmatprep.subr.bf16.mxu0 %v7537_v55  ;;  %3666 = vmatprep.subr.bf16.mxu1 %v7539_v7  ;;  %v2880_v55 = vld [vmem:[#allocation9 + $0x3f8] sm:$0xff]  ;;  %v7560_v7 = vcombine.low %v2867_v34, %v2871_v14  ;;  %v7569_v6 = vcombine.high %v2875_v51, %v2879_v2  ;;  %v7568_v43 = vcombine.low %v2875_v51, %v2879_v2  ;;  %v4006_v34 = vand.u32 31, %v9041_v44  ;;  %v11040_v51 = vld [vmem:[#allocation28_spill] sm:$0xff] }
 0x6c3   :  { %v7571_v10 = vcombine.high %v2876_v47, %v2880_v55  ;;  %v4007_v14 = vand.u32 31, %v9044_v45  ;;  %v3999_v2 = vand.u32 31, %v11040_v51 }
 0x6c5   :  { %3626 = vmatpush1.bf16.msra.mxu0 %v7536_v54  ;;  %3667 = vmatpush1.bf16.msra.mxu1 %v7538_v61  ;;  %v7570_v54 = vcombine.low %v2876_v47, %v2880_v55  ;;  %v4000_v61 = vand.u32 31, %v8978_v21  ;;  %v4008_v47 = vand.u32 31, %v9092_v60  ;;  %v4009_v55 = vand.u32 31, %v9106_v62 }
 0x6c6   :  { %3627 = vmatprep.subr.bf16.mxu0 %v7545_v46  ;;  %3668 = vmatprep.subr.bf16.mxu1 %v7547_v15  ;;  %v4001_v46 = vand.u32 31, %v8981_v22  ;;  %v3984_v15 = vand.u32 31, %v8975_v20 }
 0x6c7   :  { %vm4032_vm9 = vcmp.eq.s32.totalorder %v4000_v61, %v8989_v26  ;;  %vm9952_vm1 = vcmp.eq.s32.totalorder %v4008_v47, %v8989_v26  ;;  %v3685_v61 = vand.u32 3, %v8975_v20 }
 0x6c8   :  { %vm4033_vm11 = vcmp.eq.s32.totalorder %v4001_v46, %v8989_v26  ;;  %vm4016_vm14 = vcmp.eq.s32.totalorder %v3984_v15, %v8989_v26  ;;  %v3994_v15 = vand.u32 31, %v9142_v8 }
 0x6c9   :  { %3628 = vmatpush1.bf16.msra.mxu0 %v7544_v59  ;;  %3669 = vmatpush1.bf16.msra.mxu1 %v7546_v13  ;;  %vm8405_vm12 = vmpackc.low %vm4033_vm11, %vm4032_vm9  ;;  %v4004_v59 = vand.u32 31, %v9020_v38  ;;  %v4005_v13 = vand.u32 31, %v9028_v40 }
 0x6ca   :  { %3629 = vmatprep.subr.bf16.mxu0 %v7553_v19  ;;  %3670 = vmatprep.subr.bf16.mxu1 %v7555_v5  ;;  %vm8407_vm2 = vmpackc.low %vm4017_vm15, %vm4016_vm14  ;;  %v3988_v19 = vand.u32 31, %v9031_v41  ;;  %v3989_v5 = vand.u32 31, %v9034_v42  ;;  %vm9914_vm15 = vcmp.eq.s32.totalorder %v4006_v34, %v8989_v26 }
 0x6cb   :  { %vm4036_vm8 = vcmp.eq.s32.totalorder %v4004_v59, %v8989_v26  ;;  %vm4037_vm9 = vcmp.eq.s32.totalorder %v4005_v13, %v8989_v26 }
 0x6cc   :  { %vm8413_vm11 = vmpackc.low %vm4037_vm9, %vm4036_vm8  ;;  %vm9909_vm14 = vcmp.eq.s32.totalorder %v3989_v5, %v8989_v26  ;;  %v3997_v5 = vand.u32 31, %v9202_v33 }
 0x6cd   :  { %3630 = vmatpush1.bf16.msra.mxu0 %v7552_v1  ;;  %3671 = vmatpush1.bf16.msra.mxu1 %v7554_v16 }
 0x6ce   :  { %3631 = vmatprep.subr.bf16.mxu0 %v7561_v39  ;;  %3672 = vmatprep.subr.bf16.mxu1 %v7563_v48  ;;  %v11039_v39 = vld [vmem:[#allocation27_spill] sm:$0xff] }
 0x6cf   :  { %v3998_v48 = vand.u32 31, %v11039_v39 }
 0x6d1   :  { %3632 = vmatpush1.bf16.msra.mxu0 %v7560_v7  ;;  %3673 = vmatpush1.bf16.msra.mxu1 %v7562_v58  ;;  %v3992_v7 = vand.u32 31, %v9109_v63  ;;  %v3993_v58 = vand.u32 31, %v9112_v0 }
 0x6d2   :  { %3633 = vmatprep.subr.bf16.mxu0 %v7569_v6  ;;  %3674 = vmatprep.subr.bf16.mxu1 %v7571_v10  ;;  %v4010_v6 = vand.u32 31, %v9127_v3  ;;  %v4011_v10 = vand.u32 31, %v9130_v4 }
 0x6d5   :  { %3634 = vmatpush1.bf16.msra.mxu0 %v7568_v43  ;;  %3675 = vmatpush1.bf16.msra.mxu1 %v7570_v54 }
 0x6d6   :  { %8406 = vmatprep.subr.msk.bf16.mxu0 %vm8405_vm12, %v10956_v25  ;;  %8438 = vmatprep.subr.msk.bf16.mxu1 %vm8405_vm12, %v10956_v25  ;;  %vm9904_vm12 = vcmp.eq.s32.totalorder %v3988_v19, %v8989_v26  ;;  %v3996_v19 = vand.u32 31, %v9199_v28 }
 0x6d8   :  { %3636 = vmatmul.mubr.bf16.vlgmr.msra.gmra.mrb[20].mxu0 %v9857_v9  ;;  %3677 = vmatmul.mubr.bf16.vlgmr.msra.gmra.mrb[32].mxu1 %v9857_v9  ;;  %v4002_v9 = vand.u32 31, %v8996_v29 }
 0x6d9   :  { %8408 = vmatpush3.bf16.msk.msra.mxu0 %vm8407_vm2, %v10956_v25  ;;  %8440 = vmatpush3.bf16.msk.msra.mxu1 %vm8407_vm2, %v10956_v25  ;;  %vm9919_vm2 = vcmp.eq.s32.totalorder %v4007_v14, %v8989_v26 }
 0x6da   :  { %vm4034_vm3 = vcmp.eq.s32.totalorder %v4002_v9, %v8989_v26  ;;  %vm8417_vm13 = vmpackc.low %vm9919_vm2, %vm9914_vm15  ;;  %vm9989_vm15 = vcmp.eq.s32.totalorder %v4011_v10, %v8989_v26 }
 0x6db   :  { %vm8409_vm6 = vmpackc.low %vm4035_vm5, %vm4034_vm3  ;;  %vm9930_vm5 = vcmp.eq.s32.totalorder %v3990_v11, %v8989_v26  ;;  %v4014_v11 = vand.u32 31, %v9215_v37 }
 0x6dc   :  { %8410 = vmatprep.subr.msk.bf16.mxu0 %vm8409_vm6, %v10956_v25  ;;  %8442 = vmatprep.subr.msk.bf16.mxu1 %vm8409_vm6, %v10956_v25  ;;  %vm8415_vm3 = vmpackc.low %vm9909_vm14, %vm9904_vm12  ;;  %vm9935_vm6 = vcmp.eq.s32.totalorder %v3991_v56, %v8989_v26  ;;  %vm9977_vm12 = vcmp.eq.s32.totalorder %v3993_v58, %v8989_v26  ;;  %vm9984_vm14 = vcmp.eq.s32.totalorder %v4010_v6, %v8989_v26  ;;  %v11036_v56 = vld [vmem:[#allocation26_spill] sm:$0xff] }
 0x6dd   :  { %8412 = vmatpush3.bf16.msk.msra.mxu0 %vm8411_vm4, %v10956_v25  ;;  %8444 = vmatpush3.bf16.msk.msra.mxu1 %vm8411_vm4, %v10956_v25  ;;  %vm9957_vm4 = vcmp.eq.s32.totalorder %v4009_v55, %v8989_v26  ;;  %vm8419_vm8 = vmpackc.low %vm9935_vm6, %vm9930_vm5  ;;  %vm10008_vm5 = vcmp.eq.s32.totalorder %v3994_v15, %v8989_v26  ;;  %vm10013_vm6 = vcmp.eq.s32.totalorder %v3995_v18, %v8989_v26  ;;  %v4015_v1 = vand.u32 31, %v11036_v56 }
 0x6de   :  { %8414 = vmatprep.subr.msk.bf16.mxu0 %vm8413_vm11, %v10956_v25  ;;  %8446 = vmatprep.subr.msk.bf16.mxu1 %vm8413_vm11, %v10956_v25  ;;  %vm8421_vm9 = vmpackc.low %vm9957_vm4, %vm9952_vm1  ;;  %vm9972_vm11 = vcmp.eq.s32.totalorder %v3992_v7, %v8989_v26  ;;  %vm10025_vm1 = vcmp.eq.s32.totalorder %v4013_v52, %v8989_v26 }
 0x6df   :  { %vm8423_vm2 = vmpackc.low %vm9977_vm12, %vm9972_vm11  ;;  %vm4029_vm11 = vcmp.eq.s32.totalorder %v3997_v5, %v8989_v26  ;;  %vm4046_vm12 = vcmp.eq.s32.totalorder %v4014_v11, %v8989_v26 }
 0x6e0   :  { %vm8427_vm4 = vmpackc.low %vm10013_vm6, %vm10008_vm5  ;;  %vm4031_vm5 = vcmp.eq.s32.totalorder %v3999_v2, %v8989_v26 }
 0x6e1   :  { %8416 = vmatpush3.bf16.msk.msra.mxu0 %vm8415_vm3, %v10956_v25  ;;  %8448 = vmatpush3.bf16.msk.msra.mxu1 %vm8415_vm3, %v10956_v25  ;;  %vm8425_vm3 = vmpackc.low %vm9989_vm15, %vm9984_vm14  ;;  %vm4047_vm14 = vcmp.eq.s32.totalorder %v4015_v1, %v8989_v26 }
 0x6e2   :  { %8418 = vmatprep.subr.msk.bf16.mxu0 %vm8417_vm13, %v10956_v25  ;;  %8450 = vmatprep.subr.msk.bf16.mxu1 %vm8417_vm13, %v10956_v25  ;;  %vm10020_vm13 = vcmp.eq.s32.totalorder %v4012_v36, %v8989_v26 }
 0x6e5   :  { %8420 = vmatpush3.bf16.msk.msra.mxu0 %vm8419_vm8, %v10956_v25  ;;  %8452 = vmatpush3.bf16.msk.msra.mxu1 %vm8419_vm8, %v10956_v25  ;;  %vm8429_vm8 = vmpackc.low %vm10025_vm1, %vm10020_vm13  ;;  %vm3695_vm13 = vcmp.ne.s32.totalorder %v3685_v61, 3  ;;  %vm10068_vm1 = vcmp.ne.s32.totalorder %v3685_v61, 0 }
 0x6e6   :  { %8422 = vmatprep.subr.msk.bf16.mxu0 %vm8421_vm9, %v10956_v25  ;;  %8454 = vmatprep.subr.msk.bf16.mxu1 %vm8421_vm9, %v10956_v25  ;;  %vm10044_vm9 = vcmp.eq.s32.totalorder %v3996_v19, %v8989_v26 }
 0x6e7   :  { %vm8431_vm15 = vmpackc.low %vm4029_vm11, %vm10044_vm9 }
 0x6e9   :  { %8424 = vmatpush3.bf16.msk.msra.mxu0 %vm8423_vm2, %v10956_v25  ;;  %8456 = vmatpush3.bf16.msk.msra.mxu1 %vm8423_vm2, %v10956_v25  ;;  %vm8433_vm2 = vmpackc.low %vm4047_vm14, %vm4046_vm12 }
 0x6ea   :  { %8426 = vmatprep.subr.msk.bf16.mxu0 %vm8425_vm3, %v10956_v25  ;;  %8458 = vmatprep.subr.msk.bf16.mxu1 %vm8425_vm3, %v10956_v25  ;;  %vm4030_vm3 = vcmp.eq.s32.totalorder %v3998_v48, %v8989_v26 }
 0x6eb   :  { %vm8435_vm6 = vmpackc.low %vm4031_vm5, %vm4030_vm3 }
 0x6ed   :  { %8428 = vmatpush3.bf16.msk.msra.mxu0 %vm8427_vm4, %v10956_v25  ;;  %8460 = vmatpush3.bf16.msk.msra.mxu1 %vm8427_vm4, %v10956_v25 }
 0x6ee   :  { %8430 = vmatprep.subr.msk.bf16.mxu0 %vm8429_vm8, %v10956_v25  ;;  %8462 = vmatprep.subr.msk.bf16.mxu1 %vm8429_vm8, %v10956_v25 }
 0x6f1   :  { %8432 = vmatpush3.bf16.msk.msra.mxu0 %vm8431_vm15, %v10956_v25  ;;  %8464 = vmatpush3.bf16.msk.msra.mxu1 %vm8431_vm15, %v10956_v25 }
 0x6f2   :  { %8434 = vmatprep.subr.msk.bf16.mxu0 %vm8433_vm2, %v10956_v25  ;;  %8466 = vmatprep.subr.msk.bf16.mxu1 %vm8433_vm2, %v10956_v25 }
 0x6f5   :  { %8436 = vmatpush3.bf16.msk.msra.mxu0 %vm8435_vm6, %v10956_v25  ;;  %8468 = vmatpush3.bf16.msk.msra.mxu1 %vm8435_vm6, %v10956_v25 }
 0x76b   :  { %v3555_v47 = vpop.f32.mrb[16].mxu0  ;;  %v3596_v55 = vpop.f32.mrb[28].mxu1 }
 0x76c   :  { %v3557_v7 = vpop.f32.mrb[17].mxu0  ;;  %v3598_v58 = vpop.f32.mrb[29].mxu1  ;;  %v3688_v46 = vrot.slane %v3555_v47, 1 }
 0x76d   :  { %v3559_v6 = vpop.f32.mrb[18].mxu0  ;;  %v3600_v10 = vpop.f32.mrb[30].mxu1  ;;  %v3689_v15 = vrot.slane %v3557_v7, 1 }
 0x76e   :  { %v3560_v43 = vpop.f32.mrb[19].mxu0  ;;  %v3601_v54 = vpop.f32.mrb[31].mxu1  ;;  %v3696_v9 = vsel %vm3695_vm13, %v3688_v46, 0.0 }
 0x76f   :  { %v3697_v19 = vsel %vm3695_vm13, %v3689_v15, 0.0  ;;  %v11043_v54 = vld [vmem:[#allocation30_spill] sm:$0xff] }
 0x7ab   :  { %v3637_v18 = vpop.f32.mrb[20].mxu0  ;;  %v3678_v17 = vpop.f32.mrb[32].mxu1 }
 0x7ac   :  { %v3698_v52 = vadd.f32 %v3696_v9, %v3637_v18  ;;  %v3686_v59 = vrot.slane %v3678_v17, 7  ;;  %v3639_v13 = vpop.f32.mrb[21].mxu0  ;;  %v3680_v5 = vpop.f32.mrb[33].mxu1 }
 0x7ad   :  { %v3699_v34 = vadd.f32 %v3697_v19, %v3639_v13  ;;  %v3687_v14 = vrot.slane %v3680_v5, 7  ;;  %v3641_v11 = vpop.f32.mrb[22].mxu0  ;;  %v3682_v1 = vpop.f32.mrb[34].mxu1 }
 0x7ae   :  { %v3691_v16 = vsel %vm10068_vm1, %v3686_v59, 0.0  ;;  %v3642_v48 = vpop.f32.mrb[23].mxu0  ;;  %v3683_v2 = vpop.f32.mrb[35].mxu1 }
 0x7af   :  { %v3693_v47 = vadd.f32 %v3691_v16, %v3596_v55  ;;  %v3774_v7 = vcombine.low %v3698_v52, %v3699_v34  ;;  %v3775_v6 = vcombine.high %v3698_v52, %v3699_v34  ;;  %v3692_v10 = vsel %vm10068_vm1, %v3687_v14, 0.0 }
 0x7b0   :  { %v3694_v43 = vadd.f32 %v3692_v10, %v3598_v58 }
 0x7b1   :  { %v3782_v61 = vrot.slane %v3774_v7, %v11043_v54  ;;  %v3789_v46 = vrot.slane %v3775_v6, %v11043_v54 }
 0x7b2   :  { %v3702_v15 = vcombine.low %v3693_v47, %v3694_v43  ;;  %v3703_v18 = vcombine.high %v3693_v47, %v3694_v43 }
 0x7b3   :  { %v3790_v9 = vcombine.high %v3782_v61, %v3782_v61  ;;  %v3791_v17 = vcombine.high %v3789_v46, %v3789_v46  ;;  %v3798_v13 = vrot.slane %v3782_v61, %v11043_v54  ;;  %v3805_v59 = vrot.slane %v3789_v46, %v11043_v54 }
 0x7b4   :  { %v3710_v55 = vrot.slane %v3702_v15, %v11043_v54  ;;  %v3717_v52 = vrot.slane %v3703_v18, %v11043_v54 }
 0x7b5   :  { %v3812_v36 = vrot.slane %v3790_v9, %v11043_v54  ;;  %v3819_v58 = vrot.slane %v3791_v17, %v11043_v54  ;;  %v3820_v19 = vcombine.high %v3798_v13, %v3798_v13  ;;  %v3821_v5 = vcombine.high %v3805_v59, %v3805_v59  ;;  %3832 = vst.msk [vmem:[#allocation2 + $0x1] ss:$2 sm:$0x3] %vm9308_vm7, %v3798_v13 }
 0x7b6   :  { %3837 = vst.msk [vmem:[#allocation2 + $0x11] ss:$2 sm:$0x3] %vm9308_vm7, %v3805_v59  ;;  %v3718_v14 = vcombine.high %v3710_v55, %v3710_v55  ;;  %v3719_v11 = vcombine.high %v3717_v52, %v3717_v52  ;;  %v3726_v1 = vrot.slane %v3710_v55, %v11043_v54  ;;  %v3733_v16 = vrot.slane %v3717_v52, %v11043_v54 }
 0x7b7   :  { %v3822_v48 = vcombine.high %v3812_v36, %v3812_v36  ;;  %v3823_v2 = vcombine.high %v3819_v58, %v3819_v58  ;;  %3833 = vst.msk [vmem:[#allocation2 + $0x5] ss:$2 sm:$0x3] %vm9308_vm7, %v3812_v36  ;;  %3834 = vst.msk [vmem:[#allocation2 + $0x9] ss:$2 sm:$0x3] %vm9308_vm7, %v3820_v19 }
 0x7b8   :  { %3839 = vst.msk [vmem:[#allocation2 + $0x15] ss:$2 sm:$0x3] %vm9308_vm7, %v3819_v58  ;;  %3841 = vst.msk [vmem:[#allocation2 + $0x19] ss:$2 sm:$0x3] %vm9308_vm7, %v3821_v5  ;;  %v3740_v47 = vrot.slane %v3718_v14, %v11043_v54  ;;  %v3747_v7 = vrot.slane %v3719_v11, %v11043_v54  ;;  %v3748_v6 = vcombine.high %v3726_v1, %v3726_v1 }
 0x7b9   :  { %v3749_v10 = vcombine.high %v3733_v16, %v3733_v16  ;;  %3760 = vst.msk [vmem:[#allocation2] ss:$2 sm:$0x3] %vm9308_vm7, %v3726_v1  ;;  %3765 = vst.msk [vmem:[#allocation2 + $0x10] ss:$2 sm:$0x3] %vm9308_vm7, %v3733_v16 }
 0x7ba   :  { %3835 = vst.msk [vmem:[#allocation2 + $0xd] ss:$2 sm:$0x3] %vm9308_vm7, %v3822_v48  ;;  %3843 = vst.msk [vmem:[#allocation2 + $0x1d] ss:$2 sm:$0x3] %vm9308_vm7, %v3823_v2  ;;  %v3750_v43 = vcombine.high %v3740_v47, %v3740_v47  ;;  %v3751_v61 = vcombine.high %v3747_v7, %v3747_v7 }
 0x7bb   :  { %3761 = vst.msk [vmem:[#allocation2 + $0x4] ss:$2 sm:$0x3] %vm9308_vm7, %v3740_v47  ;;  %3762 = vst.msk [vmem:[#allocation2 + $0x8] ss:$2 sm:$0x3] %vm9308_vm7, %v3748_v6 }
 0x7bc   :  { %3767 = vst.msk [vmem:[#allocation2 + $0x14] ss:$2 sm:$0x3] %vm9308_vm7, %v3747_v7  ;;  %3769 = vst.msk [vmem:[#allocation2 + $0x18] ss:$2 sm:$0x3] %vm9308_vm7, %v3749_v10 }
 0x7bd   :  { %3763 = vst.msk [vmem:[#allocation2 + $0xc] ss:$2 sm:$0x3] %vm9308_vm7, %v3750_v43  ;;  %3771 = vst.msk [vmem:[#allocation2 + $0x1c] ss:$2 sm:$0x3] %vm9308_vm7, %v3751_v61 }
 0x7c0   :  { %v10120_v46 = vld [vmem:[#allocation2] sm:$0xf]  ;;  %v10122_v15 = vld [vmem:[#allocation2 + $0x10] sm:$0xf] }
 0x7c1   :  { %v3914_v19 = vmul.f32 %v10120_v46, %v10120_v46  ;;  %v3918_v5 = vmul.f32 %v10122_v15, %v10122_v15 }
 0x7c2   :  { %v10124_v18 = vld [vmem:[#allocation2 + $0x4] sm:$0xf]  ;;  %v10126_v9 = vld [vmem:[#allocation2 + $0x8] sm:$0xf] }
 0x7c3   :  { %v10128_v17 = vld [vmem:[#allocation2 + $0x14] sm:$0xf]  ;;  %v10130_v13 = vld [vmem:[#allocation2 + $0x18] sm:$0xf]  ;;  %v3860_v59 = vcombine.low %v10120_v46, %v10124_v18  ;;  %v3915_v52 = vmul.f32 %v10124_v18, %v10124_v18  ;;  %v3916_v16 = vmul.f32 %v10126_v9, %v10126_v9 }
 0x7c4   :  { %v3878_v55 = vcombine.low %v10122_v15, %v10128_v17  ;;  %v10138_v36 = vld [vmem:[#allocation2 + $0xc] sm:$0xf]  ;;  %v10140_v58 = vld [vmem:[#allocation2 + $0x1c] sm:$0xf]  ;;  %v3919_v14 = vmul.f32 %v10128_v17, %v10128_v17  ;;  %v3920_v48 = vmul.f32 %v10130_v13, %v10130_v13 }
 0x7c5   :  { %v3861_v11 = vcombine.low %v10126_v9, %v10138_v36  ;;  %v3879_v1 = vcombine.low %v10130_v13, %v10140_v58  ;;  %v3917_v2 = vmul.f32 %v10138_v36, %v10138_v36  ;;  %v3921_v47 = vmul.f32 %v10140_v58, %v10140_v58 }
 0x7c6   :  { %v3930_v7 = vcombine.low %v3914_v19, %v3915_v52  ;;  %v3948_v6 = vcombine.low %v3918_v5, %v3919_v14  ;;  %v3868_v10 = vrot.slane %v3860_v59, %v9328_v57  ;;  %v3886_v61 = vrot.slane %v3878_v55, %v9328_v57 }
 0x7c7   :  { %v3875_v43 = vrot.slane %v3861_v11, %v9328_v57  ;;  %v3893_v34 = vrot.slane %v3879_v1, %v9328_v57  ;;  %v3931_v54 = vcombine.low %v3916_v16, %v3917_v2  ;;  %v3949_v51 = vcombine.low %v3920_v48, %v3921_v47 }
 0x7c8   :  { %v3938_v28 = vrot.slane %v3930_v7, %v9328_v57  ;;  %v3956_v52 = vrot.slane %v3948_v6, %v9328_v57 }
 0x7c9   :  { %v3877_v39 = vcombine.high %v3868_v10, %v3875_v43  ;;  %v3895_v56 = vcombine.high %v3886_v61, %v3893_v34  ;;  %v3876_v37 = vcombine.low %v3868_v10, %v3875_v43  ;;  %v3894_v33 = vcombine.low %v3886_v61, %v3893_v34 }
 0x7ca   :  { %v3945_v27 = vrot.slane %v3931_v54, %v9328_v57  ;;  %v3963_v59 = vrot.slane %v3949_v51, %v9328_v57 }
 0x7cb   :  { %v3907_v19 = vadd.f32 %v3895_v56, %v3877_v39  ;;  %v3900_v5 = vadd.f32 %v3894_v33, %v3876_v37 }
 0x7cc   :  { %v3947_v14 = vcombine.high %v3938_v28, %v3945_v27  ;;  %v3965_v55 = vcombine.high %v3956_v52, %v3963_v59  ;;  %v3946_v11 = vcombine.low %v3938_v28, %v3945_v27  ;;  %v3964_v1 = vcombine.low %v3956_v52, %v3963_v59 }
 0x7cd   :  { %v3908_v16 = vrot.slane %v3907_v19, 4  ;;  %v3901_v48 = vrot.slane %v3900_v5, 4 }
 0x7ce   :  { %v3977_v2 = vadd.f32 %v3965_v55, %v3947_v14  ;;  %v3970_v47 = vadd.f32 %v3964_v1, %v3946_v11  ;;  %v11045_v11 = vld [vmem:[#allocation29_spill] sm:$0xff] }
 0x7cf   :  { %v3909_v10 = vadd.f32 %v3908_v16, %v3907_v19  ;;  %v3902_v34 = vadd.f32 %v3901_v48, %v3900_v5  ;;  %v4234_v1 = vand.u32 31, %v11045_v11  ;;  %v4233_v16 = vand.u32 31, %v8989_v26  ;;  %v4554_v48 = vld [vmem:[#allocation11 + $0x8] sm:$0xff] }
 0x7d0   :  { %v3978_v43 = vrot.slane %v3977_v2, 4  ;;  %v3971_v7 = vrot.slane %v3970_v47, 4 }
 0x7d1   :  { %v3910_v61 = vrot.slane %v3909_v10, 2  ;;  %v3903_v54 = vrot.slane %v3902_v34, 2  ;;  %vm4236_vm4 = vcmp.eq.s32.totalorder %v4234_v1, %v8975_v20  ;;  %vm4238_vm8 = vcmp.eq.s32.totalorder %v4234_v1, %v8984_v23 }
 0x7d2   :  { %v3979_v24 = vadd.f32 %v3978_v43, %v3977_v2  ;;  %v3972_v6 = vadd.f32 %v3971_v7, %v3970_v47  ;;  %vm4235_vm9 = vcmp.eq.s32.totalorder %v4233_v16, %v8975_v20  ;;  %vm4237_vm11 = vcmp.eq.s32.totalorder %v4233_v16, %v8984_v23  ;;  %vm8469_vm12 = vmpackc.low %vm4238_vm8, %vm4236_vm4 }
 0x7d3   :  { %v3911_v12 = vadd.f32 %v3910_v61, %v3909_v10  ;;  %v3904_v51 = vadd.f32 %v3903_v54, %v3902_v34  ;;  %vm4240_vm14 = vcmp.eq.s32.totalorder %v4234_v1, %v9004_v31  ;;  %vm4242_vm15 = vcmp.eq.s32.totalorder %v4234_v1, %v9011_v35  ;;  %8470 = vmatprep.subr.msk.bf16.mxu0 %vm8469_vm12, %v10956_v25  ;;  %vm8471_vm5 = vmpackc.low %vm4237_vm11, %vm4235_vm9  ;;  %v4558_v10 = vld [vmem:[#allocation11 + $0x28] sm:$0xff]  ;;  %v4230_v1 = vld [vmem:[%s10876_s12] sm:$0x1] }
 0x7d4   :  { %v3980_v56 = vrot.slane %v3979_v24, 2  ;;  %v3973_v33 = vrot.slane %v3972_v6, 2  ;;  %vm4239_vm2 = vcmp.eq.s32.totalorder %v4233_v16, %v9004_v31  ;;  %vm4241_vm3 = vcmp.eq.s32.totalorder %v4233_v16, %v9011_v35  ;;  %8478 = vmatprep.subr.msk.bf16.mxu1 %vm8469_vm12, %v10956_v25  ;;  %vm8473_vm6 = vmpackc.low %vm4242_vm15, %vm4240_vm14 }
 0x7d5   :  { %v3912_v37 = vrot.slane %v3911_v12, 1  ;;  %v3905_v39 = vrot.slane %v3904_v51, 1  ;;  %vm8475_vm13 = vmpackc.low %vm4241_vm3, %vm4239_vm2  ;;  %v7656_v34 = vcombine.low %v4554_v48, %v4558_v10  ;;  %v7657_v43 = vcombine.high %v4554_v48, %v4558_v10  ;;  %v4569_v48 = vld [vmem:[#allocation11 + $0x80] sm:$0xff] }
 0x7d6   :  { %v3981_v27 = vadd.f32 %v3980_v56, %v3979_v24  ;;  %v3974_v28 = vadd.f32 %v3973_v33, %v3972_v6  ;;  %v4557_v24 = vld [vmem:[#allocation11 + $0x20] sm:$0xff] }
 0x7d7   :  { %v3913_v52 = vadd.f32 %v3912_v37, %v3911_v12  ;;  %v3906_v59 = vadd.f32 %v3905_v39, %v3904_v51  ;;  %v4553_v12 = vld [vmem:[#allocation11] sm:$0xff] }
 0x7d8   :  { %v3982_v14 = vrot.slane %v3981_v27, 1  ;;  %v3975_v55 = vrot.slane %v3974_v28, 1  ;;  %v7654_v2 = vcombine.low %v4553_v12, %v4557_v24  ;;  %v7655_v47 = vcombine.high %v4553_v12, %v4557_v24  ;;  %v4562_v12 = vld [vmem:[#allocation11 + $0x48] sm:$0xff] }
 0x7d9   :  { %4144 = vmatprep.mubr.f32.mxu0 %v3913_v52  ;;  %v4566_v24 = vld [vmem:[#allocation11 + $0x68] sm:$0xff] }
 0x7da   :  { %4145 = vmatmul.mubr.f32.vlgmr.msra.gmra.mrb[14].mxu0 %v3906_v59  ;;  %v3983_v19 = vadd.f32 %v3982_v14, %v3981_v27  ;;  %v3976_v5 = vadd.f32 %v3975_v55, %v3974_v28  ;;  %v4226_v59 = vld [vmem:[%s10872_s8] sm:$0x1]  ;;  %v4561_v14 = vld [vmem:[#allocation11 + $0x40] sm:$0xff] }
 0x7db   :  { %4318 = vmatprep.mubr.f32.mxu0 %v10985_v32  ;;  %8472 = vmatpush1.bf16.msk.msra.mxu0 %vm8471_vm5, %v10956_v25  ;;  %v4565_v55 = vld [vmem:[#allocation11 + $0x60] sm:$0xff] }
 0x7dc   :  { %4214 = vmatprep.mubr.f32.mxu1 %v3983_v19  ;;  %8474 = vmatprep.subr.msk.bf16.mxu0 %vm8473_vm6, %v10956_v25  ;;  %v7663_v16 = vcombine.high %v4561_v14, %v4565_v55 }
 0x7dd   :  { %4215 = vmatmul.mubr.f32.vlgmr.msra.gmra.mrb[26].mxu1 %v3976_v5 }
 0x7de   :  { %4392 = vmatprep.mubr.f32.mxu1 %v10985_v32  ;;  %8480 = vmatpush1.bf16.msk.msra.mxu1 %vm8471_vm5, %v10956_v25 }
 0x7df   :  { %8482 = vmatprep.subr.msk.bf16.mxu1 %vm8473_vm6, %v10956_v25  ;;  %8476 = vmatpush1.bf16.msk.msra.mxu0 %vm8475_vm13, %v10956_v25 }
 0x7e0   :  { %5321 = vmatprep.subr.bf16.mxu0 %v7655_v47  ;;  %v4573_v47 = vld [vmem:[#allocation11 + $0xa0] sm:$0xff] }
 0x7e2   :  { %8484 = vmatpush1.bf16.msk.msra.mxu1 %vm8475_vm13, %v10956_v25 }
 0x7e3   :  { %5364 = vmatprep.subr.bf16.mxu1 %v7657_v43  ;;  %v7662_v43 = vcombine.low %v4561_v14, %v4565_v55  ;;  %v4589_v14 = vld [vmem:[#allocation11 + $0x120] sm:$0xff] }
 0x8ad   :  { %v8045_v7 = vpop.f32.mrb[14].mxu0 }
 0x8ae   :  { %v8046_v61 = vpop.f32.mrb[15].mxu0 }
 0x8af   :  { %v8047_v54 = vadd.f32 %v8046_v61, %v8045_v7  ;;  %v7665_v61 = vcombine.high %v4562_v12, %v4566_v24 }
 0x8b0   :  { %v8080_v6 = vpop.f32.mrb[26].mxu1 }
 0x8b1   :  { %v4221_v51 = vmul.f32 0.0078125, %v8047_v54  ;;  %v8081_v56 = vpop.f32.mrb[27].mxu1  ;;  %v7671_v54 = vcombine.high %v4569_v48, %v4573_v47 }
 0x8b2   :  { %v8082_v33 = vadd.f32 %v8081_v56, %v8080_v6  ;;  %v4570_v6 = vld [vmem:[#allocation11 + $0x88] sm:$0xff] }
 0x8b3   :  { %v4223_v37 = vmul.f32 %v4221_v51, %v4221_v51  ;;  %v4574_v56 = vld [vmem:[#allocation11 + $0xa8] sm:$0xff] }
 0x8b4   :  { %v4222_v39 = vmul.f32 0.0078125, %v8082_v33  ;;  %v4577_v33 = vld [vmem:[#allocation11 + $0xc0] sm:$0xff]  ;;  %v7672_v55 = vcombine.low %v4570_v6, %v4574_v56 }
 0x8b6   :  { %v4224_v27 = vsub.f32 %v4222_v39, %v4223_v37  ;;  %v4581_v37 = vld [vmem:[#allocation11 + $0xe0] sm:$0xff]  ;;  %v7664_v39 = vcombine.low %v4562_v12, %v4566_v24 }
 0x8b7   :  { %v4593_v12 = vld [vmem:[#allocation11 + $0x140] sm:$0xff] }
 0x8b8   :  { %v4225_v28 = vmax.f32 %v4224_v27, 0.0  ;;  %v7670_v27 = vcombine.low %v4569_v48, %v4573_v47  ;;  %v4597_v24 = vld [vmem:[#allocation11 + $0x160] sm:$0xff] }
 0x8ba   :  { %v4227_v52 = vadd.f32 1e-05, %v4225_v28  ;;  %v7673_v28 = vcombine.high %v4570_v6, %v4574_v56  ;;  %v4605_v6 = vld [vmem:[#allocation11 + $0x1a0] sm:$0xff] }
 0x8bc   :  { %8611 = vrsqrt.f32 %v4227_v52  ;;  %v4582_v52 = vld [vmem:[#allocation11 + $0xe8] sm:$0xff] }
 0x8c6   :  { %v8612_v19 = vpop.eup %8611 }
 0x8c7   :  { %v4229_v5 = vmul.f32 %v8612_v19, %v4226_v59  ;;  %v4585_v59 = vld [vmem:[#allocation11 + $0x100] sm:$0xff]  ;;  %v7678_v19 = vcombine.low %v4577_v33, %v4581_v37 }
 0x8c8   :  { %v7686_v47 = vcombine.low %v4585_v59, %v4589_v14 }
 0x8c9   :  { %7644 = vmatmul.mubr.msk.f32.vlgmr.msra.gmra.mrb[24].mxu0 %vm182_vm0, %v4229_v5  ;;  %v4231_v10 = vmul.f32 %v4229_v5, %v4221_v51  ;;  %v7679_v51 = vcombine.high %v4577_v33, %v4581_v37  ;;  %v7694_v33 = vcombine.low %v4593_v12, %v4597_v24 }
 0x8ca   :  { %5322 = vmatpush1.bf16.msra.mxu0 %v7654_v2  ;;  %v4578_v2 = vld [vmem:[#allocation11 + $0xc8] sm:$0xff] }
 0x8cb   :  { %v4232_v7 = vsub.f32 %v4230_v1, %v4231_v10  ;;  %5323 = vmatprep.subr.bf16.mxu0 %v7663_v16  ;;  %v7681_v5 = vcombine.high %v4578_v2, %v4582_v52  ;;  %v7687_v1 = vcombine.high %v4585_v59, %v4589_v14  ;;  %v4590_v16 = vld [vmem:[#allocation11 + $0x128] sm:$0xff]  ;;  %v7680_v48 = vcombine.low %v4578_v2, %v4582_v52  ;;  %v4613_v2 = vld [vmem:[#allocation11 + $0x1e0] sm:$0xff] }
 0x8cd   :  { %7653 = vmatmul.mubr.msk.f32.vlgmr.msra.gmra.mrb[36].mxu1 %vm182_vm0, %v4232_v7  ;;  %v4594_v7 = vld [vmem:[#allocation11 + $0x148] sm:$0xff] }
 0x8ce   :  { %5365 = vmatpush1.bf16.msra.mxu1 %v7656_v34  ;;  %5324 = vmatpush1.bf16.msra.mxu0 %v7662_v43  ;;  %v4586_v34 = vld [vmem:[#allocation11 + $0x108] sm:$0xff]  ;;  %v7695_v43 = vcombine.high %v4593_v12, %v4597_v24 }
 0x8cf   :  { %5366 = vmatprep.subr.bf16.mxu1 %v7665_v61  ;;  %5325 = vmatprep.subr.bf16.mxu0 %v7671_v54  ;;  %v7689_v10 = vcombine.high %v4586_v34, %v4590_v16  ;;  %v4598_v61 = vld [vmem:[#allocation11 + $0x168] sm:$0xff]  ;;  %v4601_v54 = vld [vmem:[#allocation11 + $0x180] sm:$0xff]  ;;  %v7688_v56 = vcombine.low %v4586_v34, %v4590_v16 }
 0x8d0   :  { %v7697_v37 = vcombine.high %v4594_v7, %v4598_v61  ;;  %v7696_v52 = vcombine.low %v4594_v7, %v4598_v61  ;;  %v7702_v59 = vcombine.low %v4601_v54, %v4605_v6  ;;  %v4621_v34 = vld [vmem:[#allocation11 + $0x220] sm:$0xff] }
 0x8d1   :  { %v4629_v7 = vld [vmem:[#allocation11 + $0x260] sm:$0xff] }
 0x8d2   :  { %5367 = vmatpush1.bf16.msra.mxu1 %v7664_v39  ;;  %5326 = vmatpush1.bf16.msra.mxu0 %v7670_v27  ;;  %v7703_v39 = vcombine.high %v4601_v54, %v4605_v6  ;;  %v4602_v27 = vld [vmem:[#allocation11 + $0x188] sm:$0xff] }
 0x8d3   :  { %5368 = vmatprep.subr.bf16.mxu1 %v7673_v28  ;;  %5327 = vmatprep.subr.bf16.mxu0 %v7679_v51  ;;  %v4606_v28 = vld [vmem:[#allocation11 + $0x1a8] sm:$0xff]  ;;  %v4609_v51 = vld [vmem:[#allocation11 + $0x1c0] sm:$0xff] }
 0x8d4   :  { %v7705_v14 = vcombine.high %v4602_v27, %v4606_v28  ;;  %v7704_v16 = vcombine.low %v4602_v27, %v4606_v28  ;;  %v7710_v12 = vcombine.low %v4609_v51, %v4613_v2 }
 0x8d6   :  { %5369 = vmatpush1.bf16.msra.mxu1 %v7672_v55  ;;  %5328 = vmatpush1.bf16.msra.mxu0 %v7678_v19  ;;  %v7711_v55 = vcombine.high %v4609_v51, %v4613_v2  ;;  %v4610_v19 = vld [vmem:[#allocation11 + $0x1c8] sm:$0xff]  ;;  %v4633_v2 = vld [vmem:[#allocation11 + $0x280] sm:$0xff] }
 0x8d7   :  { %5370 = vmatprep.subr.bf16.mxu1 %v7681_v5  ;;  %5329 = vmatprep.subr.bf16.mxu0 %v7687_v1  ;;  %v4614_v5 = vld [vmem:[#allocation11 + $0x1e8] sm:$0xff]  ;;  %v4617_v1 = vld [vmem:[#allocation11 + $0x200] sm:$0xff] }
 0x8d8   :  { %v7713_v24 = vcombine.high %v4610_v19, %v4614_v5  ;;  %v7712_v61 = vcombine.low %v4610_v19, %v4614_v5  ;;  %v7718_v54 = vcombine.low %v4617_v1, %v4621_v34 }
 0x8da   :  { %5371 = vmatpush1.bf16.msra.mxu1 %v7680_v48  ;;  %5330 = vmatpush1.bf16.msra.mxu0 %v7686_v47  ;;  %v7719_v48 = vcombine.high %v4617_v1, %v4621_v34  ;;  %v4618_v47 = vld [vmem:[#allocation11 + $0x208] sm:$0xff]  ;;  %v4641_v34 = vld [vmem:[#allocation11 + $0x2c0] sm:$0xff] }
 0x8db   :  { %5372 = vmatprep.subr.bf16.mxu1 %v7689_v10  ;;  %5331 = vmatprep.subr.bf16.mxu0 %v7695_v43  ;;  %v4622_v10 = vld [vmem:[#allocation11 + $0x228] sm:$0xff]  ;;  %v4625_v43 = vld [vmem:[#allocation11 + $0x240] sm:$0xff] }
 0x8dc   :  { %v7721_v6 = vcombine.high %v4618_v47, %v4622_v10  ;;  %v7726_v27 = vcombine.low %v4625_v43, %v4629_v7 }
 0x8de   :  { %5373 = vmatpush1.bf16.msra.mxu1 %v7688_v56  ;;  %5332 = vmatpush1.bf16.msra.mxu0 %v7694_v33  ;;  %v7727_v56 = vcombine.high %v4625_v43, %v4629_v7  ;;  %v4626_v33 = vld [vmem:[#allocation11 + $0x248] sm:$0xff]  ;;  %v4649_v7 = vld [vmem:[#allocation11 + $0x300] sm:$0xff] }
 0x8df   :  { %5374 = vmatprep.subr.bf16.mxu1 %v7697_v37  ;;  %5333 = vmatprep.subr.bf16.mxu0 %v7703_v39  ;;  %v4630_v37 = vld [vmem:[#allocation11 + $0x268] sm:$0xff]  ;;  %v7720_v39 = vcombine.low %v4618_v47, %v4622_v10 }
 0x8e0   :  { %v7729_v28 = vcombine.high %v4626_v33, %v4630_v37  ;;  %v7728_v51 = vcombine.low %v4626_v33, %v4630_v37 }
 0x8e2   :  { %5375 = vmatpush1.bf16.msra.mxu1 %v7696_v52  ;;  %5334 = vmatpush1.bf16.msra.mxu0 %v7702_v59  ;;  %v4637_v52 = vld [vmem:[#allocation11 + $0x2a0] sm:$0xff]  ;;  %v4634_v59 = vld [vmem:[#allocation11 + $0x288] sm:$0xff] }
 0x8e3   :  { %5376 = vmatprep.subr.bf16.mxu1 %v7705_v14  ;;  %5335 = vmatprep.subr.bf16.mxu0 %v7711_v55  ;;  %v7735_v14 = vcombine.high %v4633_v2, %v4637_v52  ;;  %v4638_v55 = vld [vmem:[#allocation11 + $0x2a8] sm:$0xff]  ;;  %v7734_v19 = vcombine.low %v4633_v2, %v4637_v52 }
 0x8e4   :  { %v7736_v5 = vcombine.low %v4634_v59, %v4638_v55  ;;  %v7737_v1 = vcombine.high %v4634_v59, %v4638_v55  ;;  %v4662_v52 = vld [vmem:[#allocation11 + $0x368] sm:$0xff] }
 0x8e6   :  { %5377 = vmatpush1.bf16.msra.mxu1 %v7704_v16  ;;  %5336 = vmatpush1.bf16.msra.mxu0 %v7710_v12  ;;  %v4645_v16 = vld [vmem:[#allocation11 + $0x2e0] sm:$0xff]  ;;  %v4642_v12 = vld [vmem:[#allocation11 + $0x2c8] sm:$0xff] }
 0x8e7   :  { %5378 = vmatprep.subr.bf16.mxu1 %v7713_v24  ;;  %5337 = vmatprep.subr.bf16.mxu0 %v7719_v48  ;;  %v7743_v24 = vcombine.high %v4641_v34, %v4645_v16  ;;  %v4646_v48 = vld [vmem:[#allocation11 + $0x2e8] sm:$0xff]  ;;  %v7742_v47 = vcombine.low %v4641_v34, %v4645_v16 }
 0x8e8   :  { %v7744_v10 = vcombine.low %v4642_v12, %v4646_v48  ;;  %v7745_v43 = vcombine.high %v4642_v12, %v4646_v48  ;;  %v4670_v12 = vld [vmem:[#allocation11 + $0x3a8] sm:$0xff]  ;;  %v4677_v48 = vld [vmem:[#allocation11 + $0x3e0] sm:$0xff] }
 0x8ea   :  { %5379 = vmatpush1.bf16.msra.mxu1 %v7712_v61  ;;  %5338 = vmatpush1.bf16.msra.mxu0 %v7718_v54  ;;  %v4653_v61 = vld [vmem:[#allocation11 + $0x320] sm:$0xff]  ;;  %v4650_v54 = vld [vmem:[#allocation11 + $0x308] sm:$0xff] }
 0x8eb   :  { %5380 = vmatprep.subr.bf16.mxu1 %v7721_v6  ;;  %5339 = vmatprep.subr.bf16.mxu0 %v7727_v56  ;;  %v7751_v6 = vcombine.high %v4649_v7, %v4653_v61  ;;  %v4654_v56 = vld [vmem:[#allocation11 + $0x328] sm:$0xff]  ;;  %v7750_v33 = vcombine.low %v4649_v7, %v4653_v61 }
 0x8ec   :  { %v7752_v37 = vcombine.low %v4650_v54, %v4654_v56  ;;  %v4674_v7 = vld [vmem:[#allocation11 + $0x3c8] sm:$0xff] }
 0x8ed   :  { %v4678_v61 = vld [vmem:[#allocation11 + $0x3e8] sm:$0xff] }
 0x8ee   :  { %5381 = vmatpush1.bf16.msra.mxu1 %v7720_v39  ;;  %5340 = vmatpush1.bf16.msra.mxu0 %v7726_v27  ;;  %v7753_v39 = vcombine.high %v4650_v54, %v4654_v56  ;;  %v4657_v27 = vld [vmem:[#allocation11 + $0x340] sm:$0xff]  ;;  %v7777_v54 = vcombine.high %v4674_v7, %v4678_v61  ;;  %v7776_v56 = vcombine.low %v4674_v7, %v4678_v61 }
 0x8ef   :  { %5382 = vmatprep.subr.bf16.mxu1 %v7729_v28  ;;  %5341 = vmatprep.subr.bf16.mxu0 %v7735_v14  ;;  %v4661_v28 = vld [vmem:[#allocation11 + $0x360] sm:$0xff] }
 0x8f0   :  { %v7759_v2 = vcombine.high %v4657_v27, %v4661_v28  ;;  %v7758_v59 = vcombine.low %v4657_v27, %v4661_v28 }
 0x8f2   :  { %5383 = vmatpush1.bf16.msra.mxu1 %v7728_v51  ;;  %5342 = vmatpush1.bf16.msra.mxu0 %v7734_v19  ;;  %v4658_v51 = vld [vmem:[#allocation11 + $0x348] sm:$0xff]  ;;  %v4665_v19 = vld [vmem:[#allocation11 + $0x380] sm:$0xff] }
 0x8f3   :  { %5384 = vmatprep.subr.bf16.mxu1 %v7737_v1  ;;  %5343 = vmatprep.subr.bf16.mxu0 %v7743_v24  ;;  %v7760_v14 = vcombine.low %v4658_v51, %v4662_v52  ;;  %v7761_v55 = vcombine.high %v4658_v51, %v4662_v52  ;;  %v4666_v1 = vld [vmem:[#allocation11 + $0x388] sm:$0xff]  ;;  %v4673_v24 = vld [vmem:[#allocation11 + $0x3c0] sm:$0xff]  ;;  %v10206_v51 = vld [vmem:[#allocation11 + $0x38] sm:$0xff] }
 0x8f6   :  { %5385 = vmatpush1.bf16.msra.mxu1 %v7736_v5  ;;  %5344 = vmatpush1.bf16.msra.mxu0 %v7742_v47  ;;  %v4669_v5 = vld [vmem:[#allocation11 + $0x3a0] sm:$0xff]  ;;  %v7768_v47 = vcombine.low %v4666_v1, %v4670_v12 }
 0x8f7   :  { %5386 = vmatprep.subr.bf16.mxu1 %v7745_v43  ;;  %5345 = vmatprep.subr.bf16.mxu0 %v7751_v6  ;;  %v7766_v34 = vcombine.low %v4665_v19, %v4669_v5  ;;  %v7767_v16 = vcombine.high %v4665_v19, %v4669_v5  ;;  %v7775_v43 = vcombine.high %v4673_v24, %v4677_v48 }
 0x8f8   :  { %v7774_v6 = vcombine.low %v4673_v24, %v4677_v48 }
 0x8fa   :  { %5387 = vmatpush1.bf16.msra.mxu1 %v7744_v10  ;;  %5346 = vmatpush1.bf16.msra.mxu0 %v7750_v33  ;;  %v7769_v10 = vcombine.high %v4666_v1, %v4670_v12  ;;  %v10196_v33 = vld [vmem:[#allocation11 + $0x10] sm:$0xff] }
 0x8fb   :  { %5388 = vmatprep.subr.bf16.mxu1 %v7753_v39  ;;  %5347 = vmatprep.subr.bf16.mxu0 %v7759_v2  ;;  %v10200_v39 = vld [vmem:[#allocation11 + $0x18] sm:$0xff] }
 0x8fc   :  { %v7661_v52 = vcombine.high %v10200_v39, %v10206_v51 }
 0x8fe   :  { %5389 = vmatpush1.bf16.msra.mxu1 %v7752_v37  ;;  %5348 = vmatpush1.bf16.msra.mxu0 %v7758_v59  ;;  %v10198_v37 = vld [vmem:[#allocation11 + $0x30] sm:$0xff] }
 0x8ff   :  { %5390 = vmatprep.subr.bf16.mxu1 %v7761_v55  ;;  %5349 = vmatprep.subr.bf16.mxu0 %v7767_v16  ;;  %v7658_v27 = vcombine.low %v10196_v33, %v10198_v37  ;;  %v7659_v28 = vcombine.high %v10196_v33, %v10198_v37 }
 0x902   :  { %5391 = vmatpush1.bf16.msra.mxu1 %v7760_v14  ;;  %5350 = vmatpush1.bf16.msra.mxu0 %v7766_v34 }
 0x903   :  { %5392 = vmatprep.subr.bf16.mxu1 %v7769_v10  ;;  %5351 = vmatprep.subr.bf16.mxu0 %v7775_v43 }
 0x906   :  { %5393 = vmatpush1.bf16.msra.mxu1 %v7768_v47  ;;  %5352 = vmatpush1.bf16.msra.mxu0 %v7774_v6 }
 0x907   :  { %5394 = vmatprep.subr.bf16.mxu1 %v7777_v54  ;;  %5407 = vmatprep.subr.bf16.mxu0 %v7659_v28 }
 0x90a   :  { %5395 = vmatpush1.bf16.msra.mxu1 %v7776_v56 }
 0x90b   :  { %5450 = vmatprep.subr.bf16.mxu1 %v7661_v52 }
 0x99c   :  { %v4320_v59 = vpop.f32.mrb[24].mxu0 }
 0x99d   :  { %v4402_v14 = vrot.slane %v4320_v59, %v9439_v50  ;;  %v4322_v55 = vpop.f32.mrb[25].mxu0 }
 0x99e   :  { %v4406_v19 = vrot.slane %v4322_v55, %v9439_v50 }
 0x9a0   :  { %v4409_v5 = vcombine.low %v4402_v14, %v4406_v19  ;;  %v4410_v1 = vcombine.high %v4402_v14, %v4406_v19  ;;  %v4394_v34 = vpop.f32.mrb[36].mxu1 }
 0x9a1   :  { %v4442_v16 = vrot.slane %v4394_v34, %v9439_v50  ;;  %v4396_v12 = vpop.f32.mrb[37].mxu1 }
 0x9a2   :  { %v4417_v24 = vrot.slane %v4409_v5, %v9328_v57  ;;  %v4424_v48 = vrot.slane %v4410_v1, %v9328_v57  ;;  %v4446_v47 = vrot.slane %v4396_v12, %v9439_v50 }
 0x9a4   :  { %v4425_v10 = vcombine.high %v4417_v24, %v4417_v24  ;;  %v4426_v43 = vcombine.high %v4424_v48, %v4424_v48  ;;  %v4449_v7 = vcombine.low %v4442_v16, %v4446_v47  ;;  %v4450_v61 = vcombine.high %v4442_v16, %v4446_v47 }
 0x9a5   :  { %v4431_v54 = vmul.f32 %v4417_v24, %v10120_v46  ;;  %v4433_v6 = vmul.f32 %v4424_v48, %v10126_v9  ;;  %v4435_v56 = vmul.f32 %v4417_v24, %v10122_v15  ;;  %v4437_v28 = vmul.f32 %v4424_v48, %v10130_v13 }
 0x9a6   :  { %v4457_v52 = vrot.slane %v4449_v7, %v9328_v57  ;;  %v4464_v59 = vrot.slane %v4450_v61, %v9328_v57  ;;  %v4432_v14 = vmul.f32 %v4425_v10, %v10124_v18  ;;  %v4434_v55 = vmul.f32 %v4426_v43, %v10138_v36 }
 0x9a7   :  { %v4436_v19 = vmul.f32 %v4425_v10, %v10128_v17  ;;  %v4438_v5 = vmul.f32 %v4426_v43, %v10140_v58 }
 0x9a8   :  { %v4465_v1 = vcombine.high %v4457_v52, %v4457_v52  ;;  %v4466_v46 = vcombine.high %v4464_v59, %v4464_v59  ;;  %v4471_v34 = vadd.f32 %v4457_v52, %v4431_v54  ;;  %v4473_v9 = vadd.f32 %v4464_v59, %v4433_v6 }
 0x9a9   :  { %v4475_v16 = vadd.f32 %v4457_v52, %v4435_v56  ;;  %v4477_v15 = vadd.f32 %v4464_v59, %v4437_v28 }
 0x9aa   :  { %v4472_v12 = vadd.f32 %v4465_v1, %v4432_v14  ;;  %v4474_v13 = vadd.f32 %v4466_v46, %v4434_v55  ;;  %v4476_v24 = vadd.f32 %v4465_v1, %v4436_v19  ;;  %v4478_v48 = vadd.f32 %v4466_v46, %v4438_v5 }
 0x9ab   :  { %vm4479_vm1 = vcmp.gt.f32.partialorder %v4471_v34, 0.0  ;;  %vm4481_vm4 = vcmp.gt.f32.partialorder %v4473_v9, 0.0  ;;  %vm4483_vm8 = vcmp.gt.f32.partialorder %v4475_v16, 0.0  ;;  %vm4485_vm9 = vcmp.gt.f32.partialorder %v4477_v15, 0.0 }
 0x9ac   :  { %vm4480_vm11 = vcmp.gt.f32.partialorder %v4472_v12, 0.0  ;;  %vm4482_vm12 = vcmp.gt.f32.partialorder %v4474_v13, 0.0  ;;  %vm4484_vm14 = vcmp.gt.f32.partialorder %v4476_v24, 0.0  ;;  %vm4486_vm15 = vcmp.gt.f32.partialorder %v4478_v48, 0.0 }
 0x9ad   :  { %v4487_v18 = vmul.f32 0.2, %v4471_v34  ;;  %v4488_v17 = vmul.f32 0.2, %v4472_v12  ;;  %v4489_v36 = vmul.f32 0.2, %v4473_v9 }
 0x9ae   :  { %v4490_v58 = vmul.f32 0.2, %v4474_v13  ;;  %v4491_v47 = vmul.f32 0.2, %v4475_v16  ;;  %v4492_v10 = vmul.f32 0.2, %v4476_v24 }
 0x9af   :  { %v4493_v43 = vmul.f32 0.2, %v4477_v15  ;;  %v4494_v7 = vmul.f32 0.2, %v4478_v48  ;;  %v4495_v61 = vsel %vm4479_vm1, %v4471_v34, %v4487_v18  ;;  %v4497_v54 = vsel %vm4481_vm4, %v4473_v9, %v4489_v36  ;;  %v4563_v18 = vld [vmem:[#allocation11 + $0x50] sm:$0xff] }
 0x9b0   :  { %v4499_v6 = vsel %vm4483_vm8, %v4475_v16, %v4491_v47  ;;  %v4496_v56 = vsel %vm4480_vm11, %v4472_v12, %v4488_v17  ;;  %v4498_v28 = vsel %vm4482_vm12, %v4474_v13, %v4490_v58  ;;  %v4500_v52 = vsel %vm4484_vm14, %v4476_v24, %v4492_v10  ;;  %v4564_v17 = vld [vmem:[#allocation11 + $0x58] sm:$0xff]  ;;  %v4571_v47 = vld [vmem:[#allocation11 + $0x90] sm:$0xff] }
 0x9b1   :  { %v4501_v59 = vsel %vm4485_vm9, %v4477_v15, %v4493_v43  ;;  %v4502_v14 = vsel %vm4486_vm15, %v4478_v48, %v4494_v7  ;;  %v4511_v55 = vcombine.low %v4495_v61, %v4496_v56  ;;  %v4512_v19 = vcombine.low %v4497_v54, %v4498_v28  ;;  %v4567_v15 = vld [vmem:[#allocation11 + $0x70] sm:$0xff]  ;;  %v4568_v48 = vld [vmem:[#allocation11 + $0x78] sm:$0xff] }
 0x9b2   :  { %v4529_v5 = vcombine.low %v4499_v6, %v4500_v52  ;;  %v4530_v1 = vcombine.low %v4501_v59, %v4502_v14  ;;  %v7667_v10 = vcombine.high %v4563_v18, %v4567_v15  ;;  %v7669_v43 = vcombine.high %v4564_v17, %v4568_v48  ;;  %v4575_v7 = vld [vmem:[#allocation11 + $0xb0] sm:$0xff]  ;;  %v4572_v61 = vld [vmem:[#allocation11 + $0x98] sm:$0xff] }
 0x9b3   :  { %v4519_v46 = vrot.slane %v4511_v55, %v9328_v57  ;;  %v4526_v2 = vrot.slane %v4512_v19, %v9328_v57  ;;  %v4576_v54 = vld [vmem:[#allocation11 + $0xb8] sm:$0xff]  ;;  %v7666_v6 = vcombine.low %v4563_v18, %v4567_v15  ;;  %v7668_v56 = vcombine.low %v4564_v17, %v4568_v48  ;;  %v4579_v59 = vld [vmem:[#allocation11 + $0xd0] sm:$0xff] }
 0x9b4   :  { %v4537_v34 = vrot.slane %v4529_v5, %v9328_v57  ;;  %v4544_v9 = vrot.slane %v4530_v1, %v9328_v57  ;;  %v7675_v28 = vcombine.high %v4571_v47, %v4575_v7  ;;  %v7677_v52 = vcombine.high %v4572_v61, %v4576_v54  ;;  %v4583_v14 = vld [vmem:[#allocation11 + $0xf0] sm:$0xff]  ;;  %v4580_v55 = vld [vmem:[#allocation11 + $0xd8] sm:$0xff] }
 0x9b5   :  { %v4528_v16 = vcombine.high %v4519_v46, %v4526_v2  ;;  %v4527_v12 = vcombine.low %v4519_v46, %v4526_v2  ;;  %v11046_v2 = vcombine.low %v10200_v39, %v10206_v51  ;;  %v4584_v19 = vld [vmem:[#allocation11 + $0xf8] sm:$0xff]  ;;  %v7674_v33 = vcombine.low %v4571_v47, %v4575_v7  ;;  %v4587_v51 = vld [vmem:[#allocation11 + $0x110] sm:$0xff] }
 0x9b6   :  { %v4546_v13 = vcombine.high %v4537_v34, %v4544_v9  ;;  %v4545_v24 = vcombine.low %v4537_v34, %v4544_v9  ;;  %v7676_v37 = vcombine.low %v4572_v61, %v4576_v54  ;;  %v7683_v39 = vcombine.high %v4579_v59, %v4583_v14  ;;  %v4591_v5 = vld [vmem:[#allocation11 + $0x130] sm:$0xff]  ;;  %v4588_v1 = vld [vmem:[#allocation11 + $0x118] sm:$0xff] }
 0x9b7   :  { %v4592_v46 = vld [vmem:[#allocation11 + $0x138] sm:$0xff]  ;;  %v7682_v34 = vcombine.low %v4579_v59, %v4583_v14  ;;  %v7684_v9 = vcombine.low %v4580_v55, %v4584_v19  ;;  %v7690_v17 = vcombine.low %v4587_v51, %v4591_v5 }
 0x9b8   :  { %v4552_v36 = vpack.c.bf16 %v4546_v13, %v4528_v16  ;;  %v10237_v58 = vpack.c.bf16 %v4545_v24, %v4527_v12  ;;  %v7691_v16 = vcombine.high %v4587_v51, %v4591_v5  ;;  %v7693_v12 = vcombine.high %v4588_v1, %v4592_v46  ;;  %v4595_v13 = vld [vmem:[#allocation11 + $0x150] sm:$0xff]  ;;  %v4596_v18 = vld [vmem:[#allocation11 + $0x158] sm:$0xff] }
 0x9b9   :  { %v4599_v24 = vld [vmem:[#allocation11 + $0x170] sm:$0xff]  ;;  %v4600_v15 = vld [vmem:[#allocation11 + $0x178] sm:$0xff]  ;;  %v7692_v48 = vcombine.low %v4588_v1, %v4592_v46 }
 0x9ba   :  { %5353 = vmatprep.mubr.bf16.mxu0 %v4552_v36  ;;  %5396 = vmatprep.mubr.bf16.mxu1 %v4552_v36  ;;  %v7701_v47 = vcombine.high %v4596_v18, %v4600_v15  ;;  %v4604_v7 = vld [vmem:[#allocation11 + $0x198] sm:$0xff]  ;;  %v7698_v54 = vcombine.low %v4595_v13, %v4599_v24 }
 0x9bb   :  { %5354 = vmatmul.mubr.bf16.vlgmr.msra.gmra.mrb[28].mxu0 %v10237_v58  ;;  %5397 = vmatmul.mubr.bf16.vlgmr.msra.gmra.mrb[40].mxu1 %v10237_v58  ;;  %v4608_v61 = vld [vmem:[#allocation11 + $0x1b8] sm:$0xff] }
 0x9bc   :  { %5408 = vmatpush1.bf16.msra.mxu0 %v7658_v27  ;;  %5451 = vmatpush1.bf16.msra.mxu1 %v11046_v2  ;;  %v7685_v27 = vcombine.high %v4580_v55, %v4584_v19  ;;  %v7700_v2 = vcombine.low %v4596_v18, %v4600_v15  ;;  %v4612_v59 = vld [vmem:[#allocation11 + $0x1d8] sm:$0xff]  ;;  %v7708_v19 = vcombine.low %v4604_v7, %v4608_v61 }
 0x9bd   :  { %5439 = vmatprep.mubr.bf16.mxu0 %v4552_v36  ;;  %5482 = vmatprep.mubr.bf16.mxu1 %v4552_v36  ;;  %v7699_v36 = vcombine.high %v4595_v13, %v4599_v24  ;;  %v4616_v14 = vld [vmem:[#allocation11 + $0x1f8] sm:$0xff] }
 0x9be   :  { %5409 = vmatprep.subr.bf16.mxu0 %v7667_v10  ;;  %5452 = vmatprep.subr.bf16.mxu1 %v7669_v43  ;;  %v4603_v10 = vld [vmem:[#allocation11 + $0x190] sm:$0xff]  ;;  %v4620_v51 = vld [vmem:[#allocation11 + $0x218] sm:$0xff]  ;;  %v7716_v46 = vcombine.low %v4612_v59, %v4616_v14 }
 0x9bf   :  { %v4607_v43 = vld [vmem:[#allocation11 + $0x1b0] sm:$0xff]  ;;  %v4624_v5 = vld [vmem:[#allocation11 + $0x238] sm:$0xff] }
 0x9c0   :  { %5410 = vmatpush1.bf16.msra.mxu0 %v7666_v6  ;;  %5453 = vmatpush1.bf16.msra.mxu1 %v7668_v56  ;;  %v7707_v6 = vcombine.high %v4603_v10, %v4607_v43  ;;  %v7709_v56 = vcombine.high %v4604_v7, %v4608_v61  ;;  %v7706_v55 = vcombine.low %v4603_v10, %v4607_v43  ;;  %v4628_v13 = vld [vmem:[#allocation11 + $0x258] sm:$0xff] }
 0x9c1   :  { %5411 = vmatprep.subr.bf16.mxu0 %v7675_v28  ;;  %5454 = vmatprep.subr.bf16.mxu1 %v7677_v52  ;;  %v4611_v28 = vld [vmem:[#allocation11 + $0x1d0] sm:$0xff]  ;;  %v4632_v24 = vld [vmem:[#allocation11 + $0x278] sm:$0xff]  ;;  %v7724_v15 = vcombine.low %v4620_v51, %v4624_v5 }
 0x9c2   :  { %v4615_v52 = vld [vmem:[#allocation11 + $0x1f0] sm:$0xff]  ;;  %v4636_v10 = vld [vmem:[#allocation11 + $0x298] sm:$0xff]  ;;  %v7732_v61 = vcombine.low %v4628_v13, %v4632_v24 }
 0x9c3   :  { %v7714_v1 = vcombine.low %v4611_v28, %v4615_v52  ;;  %v4640_v43 = vld [vmem:[#allocation11 + $0x2b8] sm:$0xff] }
 0x9c4   :  { %5412 = vmatpush1.bf16.msra.mxu0 %v7674_v33  ;;  %5455 = vmatpush1.bf16.msra.mxu1 %v7676_v37  ;;  %v7715_v33 = vcombine.high %v4611_v28, %v4615_v52  ;;  %v7717_v37 = vcombine.high %v4612_v59, %v4616_v14  ;;  %v4644_v28 = vld [vmem:[#allocation11 + $0x2d8] sm:$0xff]  ;;  %v7740_v14 = vcombine.low %v4636_v10, %v4640_v43 }
 0x9c5   :  { %5413 = vmatprep.subr.bf16.mxu0 %v7683_v39  ;;  %5456 = vmatprep.subr.bf16.mxu1 %v7685_v27  ;;  %v4619_v39 = vld [vmem:[#allocation11 + $0x210] sm:$0xff]  ;;  %v4648_v52 = vld [vmem:[#allocation11 + $0x2f8] sm:$0xff] }
 0x9c6   :  { %v4623_v27 = vld [vmem:[#allocation11 + $0x230] sm:$0xff] }
 0x9c7   :  { %v7722_v18 = vcombine.low %v4619_v39, %v4623_v27 }
 0x9c8   :  { %5414 = vmatpush1.bf16.msra.mxu0 %v7682_v34  ;;  %5457 = vmatpush1.bf16.msra.mxu1 %v7684_v9  ;;  %v7723_v34 = vcombine.high %v4619_v39, %v4623_v27  ;;  %v7725_v9 = vcombine.high %v4620_v51, %v4624_v5  ;;  %v4652_v39 = vld [vmem:[#allocation11 + $0x318] sm:$0xff]  ;;  %v7748_v5 = vcombine.low %v4644_v28, %v4648_v52 }
 0x9c9   :  { %5415 = vmatprep.subr.bf16.mxu0 %v7691_v16  ;;  %5458 = vmatprep.subr.bf16.mxu1 %v7693_v12  ;;  %v4627_v16 = vld [vmem:[#allocation11 + $0x250] sm:$0xff]  ;;  %v4656_v27 = vld [vmem:[#allocation11 + $0x338] sm:$0xff] }
 0x9ca   :  { %v4631_v12 = vld [vmem:[#allocation11 + $0x270] sm:$0xff] }
 0x9cb   :  { %v7730_v7 = vcombine.low %v4627_v16, %v4631_v12 }
 0x9cc   :  { %5416 = vmatpush1.bf16.msra.mxu0 %v7690_v17  ;;  %5459 = vmatpush1.bf16.msra.mxu1 %v7692_v48  ;;  %v7731_v17 = vcombine.high %v4627_v16, %v4631_v12  ;;  %v7733_v48 = vcombine.high %v4628_v13, %v4632_v24  ;;  %v4660_v16 = vld [vmem:[#allocation11 + $0x358] sm:$0xff]  ;;  %v7756_v24 = vcombine.low %v4652_v39, %v4656_v27 }
 0x9cd   :  { %5417 = vmatprep.subr.bf16.mxu0 %v7699_v36  ;;  %5460 = vmatprep.subr.bf16.mxu1 %v7701_v47  ;;  %v4635_v36 = vld [vmem:[#allocation11 + $0x290] sm:$0xff]  ;;  %v4664_v12 = vld [vmem:[#allocation11 + $0x378] sm:$0xff] }
 0x9ce   :  { %v4639_v47 = vld [vmem:[#allocation11 + $0x2b0] sm:$0xff] }
 0x9cf   :  { %v7738_v59 = vcombine.low %v4635_v36, %v4639_v47 }
 0x9d0   :  { %5418 = vmatpush1.bf16.msra.mxu0 %v7698_v54  ;;  %5461 = vmatpush1.bf16.msra.mxu1 %v7700_v2  ;;  %v7739_v54 = vcombine.high %v4635_v36, %v4639_v47  ;;  %v7741_v2 = vcombine.high %v4636_v10, %v4640_v43  ;;  %v4668_v36 = vld [vmem:[#allocation11 + $0x398] sm:$0xff]  ;;  %v7764_v43 = vcombine.low %v4660_v16, %v4664_v12 }
 0x9d1   :  { %5419 = vmatprep.subr.bf16.mxu0 %v7707_v6  ;;  %5462 = vmatprep.subr.bf16.mxu1 %v7709_v56  ;;  %v4643_v6 = vld [vmem:[#allocation11 + $0x2d0] sm:$0xff]  ;;  %v4672_v47 = vld [vmem:[#allocation11 + $0x3b8] sm:$0xff] }
 0x9d2   :  { %v4647_v56 = vld [vmem:[#allocation11 + $0x2f0] sm:$0xff] }
 0x9d3   :  { %v7746_v51 = vcombine.low %v4643_v6, %v4647_v56 }
 0x9d4   :  { %5420 = vmatpush1.bf16.msra.mxu0 %v7706_v55  ;;  %5463 = vmatpush1.bf16.msra.mxu1 %v7708_v19  ;;  %v7747_v55 = vcombine.high %v4643_v6, %v4647_v56  ;;  %v7749_v19 = vcombine.high %v4644_v28, %v4648_v52  ;;  %v4676_v6 = vld [vmem:[#allocation11 + $0x3d8] sm:$0xff]  ;;  %v7772_v52 = vcombine.low %v4668_v36, %v4672_v47 }
 0x9d5   :  { %5421 = vmatprep.subr.bf16.mxu0 %v7715_v33  ;;  %5464 = vmatprep.subr.bf16.mxu1 %v7717_v37  ;;  %v4651_v33 = vld [vmem:[#allocation11 + $0x310] sm:$0xff]  ;;  %v4680_v56 = vld [vmem:[#allocation11 + $0x3f8] sm:$0xff] }
 0x9d6   :  { %v4655_v37 = vld [vmem:[#allocation11 + $0x330] sm:$0xff] }
 0x9d7   :  { %v7754_v13 = vcombine.low %v4651_v33, %v4655_v37 }
 0x9d8   :  { %5422 = vmatpush1.bf16.msra.mxu0 %v7714_v1  ;;  %5465 = vmatpush1.bf16.msra.mxu1 %v7716_v46  ;;  %v7755_v1 = vcombine.high %v4651_v33, %v4655_v37  ;;  %v7757_v46 = vcombine.high %v4652_v39, %v4656_v27  ;;  %v6097_v33 = vand.u32 15, %v8978_v21  ;;  %v6098_v37 = vand.u32 15, %v8981_v22 }
 0x9d9   :  { %5423 = vmatprep.subr.bf16.mxu0 %v7723_v34  ;;  %5466 = vmatprep.subr.bf16.mxu1 %v7725_v9  ;;  %v4659_v34 = vld [vmem:[#allocation11 + $0x350] sm:$0xff]  ;;  %v10906_v39 = vand.u32 15, %v8975_v20  ;;  %v6082_v27 = vand.u32 15, %v8984_v23  ;;  %v6099_v21 = vand.u32 15, %v8996_v29  ;;  %v6100_v22 = vand.u32 15, %v8999_v30 }
 0x9da   :  { %v4663_v9 = vld [vmem:[#allocation11 + $0x370] sm:$0xff]  ;;  %vm6129_vm2 = vcmp.eq.s32.totalorder %v6097_v33, %v8989_v26  ;;  %vm6130_vm3 = vcmp.eq.s32.totalorder %v6098_v37, %v8989_v26  ;;  %v6085_v29 = vand.u32 15, %v9031_v41  ;;  %v6086_v30 = vand.u32 15, %v9034_v42 }
 0x9db   :  { %v7762_v10 = vcombine.low %v4659_v34, %v4663_v9  ;;  %vm8485_vm5 = vmpackc.low %vm6130_vm3, %vm6129_vm2  ;;  %vm6113_vm6 = vcmp.eq.s32.totalorder %v10906_v39, %v8989_v26  ;;  %vm6114_vm13 = vcmp.eq.s32.totalorder %v6082_v27, %v8989_v26  ;;  %vm6131_vm4 = vcmp.eq.s32.totalorder %v6099_v21, %v8989_v26  ;;  %v11093_v37 = vld [vmem:[#allocation26_spill] sm:$0xff] }
 0x9dc   :  { %5424 = vmatpush1.bf16.msra.mxu0 %v7722_v18  ;;  %5467 = vmatpush1.bf16.msra.mxu1 %v7724_v15  ;;  %v7763_v18 = vcombine.high %v4659_v34, %v4663_v9  ;;  %v7765_v15 = vcombine.high %v4660_v16, %v4664_v12  ;;  %vm8487_vm1 = vmpackc.low %vm6114_vm13, %vm6113_vm6  ;;  %vm6132_vm8 = vcmp.eq.s32.totalorder %v6100_v22, %v8989_v26  ;;  %v6103_v9 = vand.u32 15, %v9041_v44  ;;  %v11104_v22 = vld [vmem:[#allocation30_spill] sm:$0xff] }
 0x9dd   :  { %5425 = vmatprep.subr.bf16.mxu0 %v7731_v17  ;;  %5468 = vmatprep.subr.bf16.mxu1 %v7733_v48  ;;  %v4667_v17 = vld [vmem:[#allocation11 + $0x390] sm:$0xff]  ;;  %vm8489_vm9 = vmpackc.low %vm6132_vm8, %vm6131_vm4  ;;  %vm10306_vm3 = vcmp.eq.s32.totalorder %v6085_v29, %v8989_v26  ;;  %v6104_v16 = vand.u32 15, %v9044_v45  ;;  %v6087_v12 = vand.u32 15, %v9052_v49  ;;  %v6112_v21 = vand.u32 15, %v11093_v37  ;;  %v11097_v29 = vld [vmem:[#allocation28_spill] sm:$0xff] }
 0x9de   :  { %v4671_v48 = vld [vmem:[#allocation11 + $0x3b0] sm:$0xff]  ;;  %vm10328_vm13 = vcmp.eq.s32.totalorder %v6103_v9, %v8989_v26 }
 0x9df   :  { %v7770_v28 = vcombine.low %v4667_v17, %v4671_v48 }
 0x9e0   :  { %5426 = vmatpush1.bf16.msra.mxu0 %v7730_v7  ;;  %5469 = vmatpush1.bf16.msra.mxu1 %v7732_v61  ;;  %v7771_v7 = vcombine.high %v4667_v17, %v4671_v48  ;;  %v7773_v61 = vcombine.high %v4668_v36, %v4672_v47  ;;  %v6107_v48 = vand.u32 15, %v9127_v3  ;;  %v6108_v36 = vand.u32 15, %v9130_v4  ;;  %v11075_v4 = vld [vmem:[#allocation20_spill] sm:$0xff] }
 0x9e1   :  { %5427 = vmatprep.subr.bf16.mxu0 %v7739_v54  ;;  %5470 = vmatprep.subr.bf16.mxu1 %v7741_v2  ;;  %v4675_v54 = vld [vmem:[#allocation11 + $0x3d0] sm:$0xff]  ;;  %v6091_v3 = vand.u32 15, %v9142_v8  ;;  %v6092_v47 = vand.u32 15, %v11075_v4 }
 0x9e2   :  { %v4679_v2 = vld [vmem:[#allocation11 + $0x3f0] sm:$0xff] }
 0x9e4   :  { %5428 = vmatpush1.bf16.msra.mxu0 %v7738_v59  ;;  %5471 = vmatpush1.bf16.msra.mxu1 %v7740_v14  ;;  %v7779_v59 = vcombine.high %v4675_v54, %v4679_v2  ;;  %v7781_v14 = vcombine.high %v4676_v6, %v4680_v56 }
 0x9e5   :  { %5429 = vmatprep.subr.bf16.mxu0 %v7747_v55  ;;  %5472 = vmatprep.subr.bf16.mxu1 %v7749_v19  ;;  %v7778_v55 = vcombine.low %v4675_v54, %v4679_v2  ;;  %v7780_v19 = vcombine.low %v4676_v6, %v4680_v56  ;;  %v11081_v54 = vld [vmem:[#allocation22_spill] sm:$0xff]  ;;  %v11086_v56 = vld [vmem:[#allocation23_spill] sm:$0xff] }
 0x9e6   :  { %v6110_v2 = vand.u32 15, %v11081_v54 }
 0x9e8   :  { %5430 = vmatpush1.bf16.msra.mxu0 %v7746_v51  ;;  %5473 = vmatpush1.bf16.msra.mxu1 %v7748_v5  ;;  %v10905_v51 = vand.u32 15, %v9011_v35  ;;  %v6101_v5 = vand.u32 15, %v9020_v38 }
 0x9e9   :  { %5431 = vmatprep.subr.bf16.mxu0 %v7755_v1  ;;  %5474 = vmatprep.subr.bf16.mxu1 %v7757_v46  ;;  %v6102_v1 = vand.u32 15, %v9028_v40 }
 0x9ea   :  { %vm10285_vm12 = vcmp.eq.s32.totalorder %v10905_v51, %v8989_v26  ;;  %vm10290_vm14 = vcmp.eq.s32.totalorder %v6101_v5, %v8989_v26  ;;  %v11096_v5 = vld [vmem:[#allocation27_spill] sm:$0xff] }
 0x9eb   :  { %vm10295_vm15 = vcmp.eq.s32.totalorder %v6102_v1, %v8989_v26  ;;  %v6095_v1 = vand.u32 15, %v11096_v5 }
 0x9ec   :  { %5432 = vmatpush1.bf16.msra.mxu0 %v7754_v13  ;;  %5475 = vmatpush1.bf16.msra.mxu1 %v7756_v24  ;;  %vm8493_vm6 = vmpackc.low %vm10295_vm15, %vm10290_vm14  ;;  %v6088_v13 = vand.u32 15, %v9064_v53  ;;  %v6105_v24 = vand.u32 15, %v9092_v60  ;;  %v6089_v60 = vand.u32 15, %v9109_v63 }
 0x9ed   :  { %5433 = vmatprep.subr.bf16.mxu0 %v7763_v18  ;;  %5476 = vmatprep.subr.bf16.mxu1 %v7765_v15  ;;  %v6106_v18 = vand.u32 15, %v9106_v62  ;;  %v6090_v62 = vand.u32 15, %v9112_v0 }
 0x9ef   :  { %vm10365_vm14 = vcmp.eq.s32.totalorder %v6106_v18, %v8989_v26 }
 0x9f0   :  { %5434 = vmatpush1.bf16.msra.mxu0 %v7762_v10  ;;  %5477 = vmatpush1.bf16.msra.mxu1 %v7764_v43 }
 0x9f1   :  { %5435 = vmatprep.subr.bf16.mxu0 %v7771_v7  ;;  %5478 = vmatprep.subr.bf16.mxu1 %v7773_v61  ;;  %v11080_v7 = vld [vmem:[#allocation21_spill] sm:$0xff] }
 0x9f2   :  { %v6109_v61 = vand.u32 15, %v11080_v7 }
 0x9f4   :  { %5436 = vmatpush1.bf16.msra.mxu0 %v7770_v28  ;;  %5479 = vmatpush1.bf16.msra.mxu1 %v7772_v52  ;;  %v6093_v28 = vand.u32 15, %v11086_v56  ;;  %v11087_v52 = vld [vmem:[#allocation24_spill] sm:$0xff] }
 0x9f5   :  { %5437 = vmatprep.subr.bf16.mxu0 %v7779_v59  ;;  %5480 = vmatprep.subr.bf16.mxu1 %v7781_v14  ;;  %v6094_v59 = vand.u32 15, %v11087_v52 }
 0x9f8   :  { %5438 = vmatpush1.bf16.msra.mxu0 %v7778_v55  ;;  %5481 = vmatpush1.bf16.msra.mxu1 %v7780_v19  ;;  %v11092_v19 = vld [vmem:[#allocation25_spill] sm:$0xff] }
 0x9f9   :  { %8486 = vmatprep.subr.msk.bf16.mxu0 %vm8485_vm5, %v10956_v25  ;;  %8518 = vmatprep.subr.msk.bf16.mxu1 %vm8485_vm5, %v10956_v25  ;;  %vm10311_vm5 = vcmp.eq.s32.totalorder %v6086_v30, %v8989_v26  ;;  %v6111_v33 = vand.u32 15, %v11092_v19  ;;  %v6096_v30 = vand.u32 15, %v11097_v29 }
 0x9fa   :  { %vm8495_vm4 = vmpackc.low %vm10311_vm5, %vm10306_vm3  ;;  %vm10384_vm3 = vcmp.eq.s32.totalorder %v6089_v60, %v8989_v26  ;;  %vm10389_vm5 = vcmp.eq.s32.totalorder %v6090_v62, %v8989_v26  ;;  %v5493_v60 = vand.u32 7, %v8975_v20  ;;  %v5494_v62 = vand.u32 7, %v8984_v23 }
 0x9fb   :  { %5440 = vmatmul.mubr.bf16.vlgmr.msra.gmra.mrb[32].mxu0 %v10237_v58  ;;  %5483 = vmatmul.mubr.bf16.vlgmr.msra.gmra.mrb[44].mxu1 %v10237_v58  ;;  %v6083_v58 = vand.u32 15, %v9004_v31 }
 0x9fc   :  { %8488 = vmatpush3.bf16.msk.msra.mxu0 %vm8487_vm1, %v10956_v25  ;;  %8520 = vmatpush3.bf16.msk.msra.mxu1 %vm8487_vm1, %v10956_v25  ;;  %vm10333_vm1 = vcmp.eq.s32.totalorder %v6104_v16, %v8989_v26 }
 0x9fd   :  { %vm10278_vm11 = vcmp.eq.s32.totalorder %v6083_v58, %v8989_v26  ;;  %8490 = vmatprep.subr.msk.bf16.mxu0 %vm8489_vm9, %v10956_v25  ;;  %8522 = vmatprep.subr.msk.bf16.mxu1 %vm8489_vm9, %v10956_v25  ;;  %vm8497_vm8 = vmpackc.low %vm10333_vm1, %vm10328_vm13  ;;  %vm10348_vm9 = vcmp.eq.s32.totalorder %v6087_v12, %v8989_v26  ;;  %vm10401_vm13 = vcmp.eq.s32.totalorder %v6108_v36, %v8989_v26 }
 0x9fe   :  { %vm8491_vm2 = vmpackc.low %vm10285_vm12, %vm10278_vm11  ;;  %vm10353_vm11 = vcmp.eq.s32.totalorder %v6088_v13, %v8989_v26  ;;  %vm10360_vm12 = vcmp.eq.s32.totalorder %v6105_v24, %v8989_v26 }
 0x9ff   :  { %vm8499_vm15 = vmpackc.low %vm10353_vm11, %vm10348_vm9  ;;  %vm10425_vm9 = vcmp.eq.s32.totalorder %v6092_v47, %v8989_v26  ;;  %vm10432_vm11 = vcmp.eq.s32.totalorder %v6109_v61, %v8989_v26 }
 0xa00   :  { %8492 = vmatpush3.bf16.msk.msra.mxu0 %vm8491_vm2, %v10956_v25  ;;  %8524 = vmatpush3.bf16.msk.msra.mxu1 %vm8491_vm2, %v10956_v25  ;;  %vm8501_vm2 = vmpackc.low %vm10365_vm14, %vm10360_vm12  ;;  %vm10437_vm12 = vcmp.eq.s32.totalorder %v6110_v2, %v8989_v26 }
 0xa01   :  { %8494 = vmatprep.subr.msk.bf16.mxu0 %vm8493_vm6, %v10956_v25  ;;  %8526 = vmatprep.subr.msk.bf16.mxu1 %vm8493_vm6, %v10956_v25  ;;  %vm10396_vm6 = vcmp.eq.s32.totalorder %v6107_v48, %v8989_v26  ;;  %vm8503_vm1 = vmpackc.low %vm10389_vm5, %vm10384_vm3  ;;  %vm6126_vm3 = vcmp.eq.s32.totalorder %v6094_v59, %v8989_v26  ;;  %vm6143_vm5 = vcmp.eq.s32.totalorder %v6111_v33, %v8989_v26 }
 0xa04   :  { %8496 = vmatpush3.bf16.msk.msra.mxu0 %vm8495_vm4, %v10956_v25  ;;  %8528 = vmatpush3.bf16.msk.msra.mxu1 %vm8495_vm4, %v10956_v25  ;;  %vm8505_vm4 = vmpackc.low %vm10401_vm13, %vm10396_vm6  ;;  %vm6144_vm6 = vcmp.eq.s32.totalorder %v6112_v21, %v8989_v26 }
 0xa05   :  { %8498 = vmatprep.subr.msk.bf16.mxu0 %vm8497_vm8, %v10956_v25  ;;  %8530 = vmatprep.subr.msk.bf16.mxu1 %vm8497_vm8, %v10956_v25  ;;  %vm10420_vm8 = vcmp.eq.s32.totalorder %v6091_v3, %v8989_v26 }
 0xa06   :  { %vm8507_vm14 = vmpackc.low %vm10425_vm9, %vm10420_vm8  ;;  %vm6128_vm8 = vcmp.eq.s32.totalorder %v6096_v30, %v8989_v26 }
 0xa08   :  { %8500 = vmatpush3.bf16.msk.msra.mxu0 %vm8499_vm15, %v10956_v25  ;;  %8532 = vmatpush3.bf16.msk.msra.mxu1 %vm8499_vm15, %v10956_v25  ;;  %vm8509_vm15 = vmpackc.low %vm10437_vm12, %vm10432_vm11  ;;  %vm5508_vm11 = vcmp.lt.s32.totalorder %v8975_v20, 7  ;;  %vm5523_vm12 = vcmp.ne.s32.totalorder %v5493_v60, 7 }
 0xa09   :  { %8502 = vmatprep.subr.msk.bf16.mxu0 %vm8501_vm2, %v10956_v25  ;;  %8534 = vmatprep.subr.msk.bf16.mxu1 %vm8501_vm2, %v10956_v25  ;;  %vm10456_vm2 = vcmp.eq.s32.totalorder %v6093_v28, %v8989_v26 }
 0xa0a   :  { %vm8511_vm13 = vmpackc.low %vm6126_vm3, %vm10456_vm2  ;;  %vm10502_vm2 = vcmp.ne.s32.totalorder %v5494_v62, 0  ;;  %vm5499_vm3 = vcmp.lt.s32.totalorder %v8975_v20, 1 }
 0xa0c   :  { %8504 = vmatpush3.bf16.msk.msra.mxu0 %vm8503_vm1, %v10956_v25  ;;  %8536 = vmatpush3.bf16.msk.msra.mxu1 %vm8503_vm1, %v10956_v25  ;;  %vm8513_vm1 = vmpackc.low %vm6144_vm6, %vm6143_vm5 }
 0xa0d   :  { %8506 = vmatprep.subr.msk.bf16.mxu0 %vm8505_vm4, %v10956_v25  ;;  %8538 = vmatprep.subr.msk.bf16.mxu1 %vm8505_vm4, %v10956_v25  ;;  %vm6127_vm4 = vcmp.eq.s32.totalorder %v6095_v1, %v8989_v26 }
 0xa0e   :  { %vm8515_vm9 = vmpackc.low %vm6128_vm8, %vm6127_vm4  ;;  %vm6340_vm8 = vcmask 130048  }
 0xa10   :  { %8508 = vmatpush3.bf16.msk.msra.mxu0 %vm8507_vm14, %v10956_v25  ;;  %8540 = vmatpush3.bf16.msk.msra.mxu1 %vm8507_vm14, %v10956_v25  ;;  %vm10494_vm14 = vcmp.ne.s32.totalorder %v5494_v62, 7 }
 0xa11   :  { %8510 = vmatprep.subr.msk.bf16.mxu0 %vm8509_vm15, %v10956_v25  ;;  %8542 = vmatprep.subr.msk.bf16.mxu1 %vm8509_vm15, %v10956_v25  ;;  %vm10498_vm15 = vcmp.ne.s32.totalorder %v5493_v60, 0 }
 0xa14   :  { %8512 = vmatpush3.bf16.msk.msra.mxu0 %vm8511_vm13, %v10956_v25  ;;  %8544 = vmatpush3.bf16.msk.msra.mxu1 %vm8511_vm13, %v10956_v25 }
 0xa15   :  { %8514 = vmatprep.subr.msk.bf16.mxu0 %vm8513_vm1, %v10956_v25  ;;  %8546 = vmatprep.subr.msk.bf16.mxu1 %vm8513_vm1, %v10956_v25 }
 0xa18   :  { %8516 = vmatpush3.bf16.msk.msra.mxu0 %vm8515_vm9, %v10956_v25  ;;  %8548 = vmatpush3.bf16.msk.msra.mxu1 %vm8515_vm9, %v10956_v25 }
 0xa8e   :  { %v5355_v38 = vpop.f32.mrb[28].mxu0  ;;  %v5398_v40 = vpop.f32.mrb[40].mxu1 }
 0xa8f   :  { %v5357_v41 = vpop.f32.mrb[29].mxu0  ;;  %v10479_v42 = vpop.f32.mrb[41].mxu1  ;;  %v5504_v9 = vrot.slane %v5355_v38, 1 }
 0xa90   :  { %v5359_v46 = vpop.f32.mrb[30].mxu0  ;;  %v5402_v34 = vpop.f32.mrb[42].mxu1  ;;  %v5505_v24 = vrot.slane %v5357_v41, 1 }
 0xa91   :  { %v5506_v16 = vrot.slane %v5359_v46, 1  ;;  %v5361_v12 = vpop.f32.mrb[31].mxu0  ;;  %v10482_v13 = vpop.f32.mrb[43].mxu1 }
 0xa92   :  { %v5507_v18 = vrot.slane %v5361_v12, 1 }
 0xa93   :  { %v5509_v44 = vsel %vm5508_vm11, %v5504_v9, %v5506_v16  ;;  %v5511_v45 = vsel %vm5508_vm11, %v5506_v16, %v5504_v9 }
 0xa94   :  { %v5510_v49 = vsel %vm5508_vm11, %v5505_v24, %v5507_v18  ;;  %v5512_v53 = vsel %vm5508_vm11, %v5507_v18, %v5505_v24  ;;  %v5525_v48 = vsel %vm5523_vm12, %v5509_v44, 0.0  ;;  %v5527_v61 = vsel %vm10494_vm14, %v5511_v45, 0.0 }
 0xa95   :  { %v5526_v4 = vsel %vm5523_vm12, %v5510_v49, 0.0  ;;  %v5528_v28 = vsel %vm10494_vm14, %v5512_v53, 0.0 }
 0xace   :  { %v5441_v17 = vpop.f32.mrb[32].mxu0  ;;  %v5484_v36 = vpop.f32.mrb[44].mxu1 }
 0xacf   :  { %v5529_v0 = vadd.f32 %v5525_v48, %v5441_v17  ;;  %v5443_v3 = vpop.f32.mrb[33].mxu0  ;;  %v5486_v47 = vpop.f32.mrb[45].mxu1  ;;  %v5495_v2 = vrot.slane %v5484_v36, 7 }
 0xad0   :  { %v5530_v10 = vadd.f32 %v5526_v4, %v5443_v3  ;;  %v5445_v43 = vpop.f32.mrb[34].mxu0  ;;  %v5488_v54 = vpop.f32.mrb[46].mxu1  ;;  %v5496_v19 = vrot.slane %v5486_v47, 7 }
 0xad1   :  { %v5531_v8 = vadd.f32 %v5527_v61, %v5445_v43  ;;  %v5497_v6 = vrot.slane %v5488_v54, 7  ;;  %v5447_v56 = vpop.f32.mrb[35].mxu0  ;;  %v5490_v52 = vpop.f32.mrb[47].mxu1 }
 0xad2   :  { %v5681_v59 = vcombine.low %v5529_v0, %v5530_v10  ;;  %v5682_v14 = vcombine.high %v5529_v0, %v5530_v10  ;;  %v5532_v55 = vadd.f32 %v5528_v28, %v5447_v56  ;;  %v5498_v21 = vrot.slane %v5490_v52, 7 }
 0xad3   :  { %v5500_v33 = vsel %vm5499_vm3, %v5495_v2, %v5497_v6  ;;  %v5502_v37 = vsel %vm5499_vm3, %v5497_v6, %v5495_v2 }
 0xad4   :  { %v5689_v5 = vrot.slane %v5681_v59, %v11104_v22  ;;  %v5696_v1 = vrot.slane %v5682_v14, %v11104_v22  ;;  %v5515_v29 = vsel %vm10498_vm15, %v5502_v37, 0.0  ;;  %v5517_v30 = vsel %vm10502_vm2, %v5500_v33, 0.0 }
 0xad5   :  { %v5519_v38 = vadd.f32 %v5515_v29, %v5398_v40  ;;  %v5521_v41 = vadd.f32 %v5517_v30, %v5402_v34  ;;  %v5731_v46 = vcombine.low %v5531_v8, %v5532_v55  ;;  %v5732_v9 = vcombine.high %v5531_v8, %v5532_v55 }
 0xad6   :  { %v5697_v16 = vcombine.high %v5689_v5, %v5689_v5  ;;  %v5698_v12 = vcombine.high %v5696_v1, %v5696_v1  ;;  %v5705_v24 = vrot.slane %v5689_v5, %v11104_v22  ;;  %v5712_v18 = vrot.slane %v5696_v1, %v11104_v22 }
 0xad7   :  { %v5739_v44 = vrot.slane %v5731_v46, %v11104_v22  ;;  %v5746_v45 = vrot.slane %v5732_v9, %v11104_v22  ;;  %v5501_v49 = vsel %vm5499_vm3, %v5496_v19, %v5498_v21  ;;  %v5503_v53 = vsel %vm5499_vm3, %v5498_v21, %v5496_v19 }
 0xad8   :  { %v5719_v40 = vrot.slane %v5697_v16, %v11104_v22  ;;  %v5726_v34 = vrot.slane %v5698_v12, %v11104_v22  ;;  %v5727_v60 = vcombine.high %v5705_v24, %v5705_v24  ;;  %v5728_v62 = vcombine.high %v5712_v18, %v5712_v18  ;;  %5797 = vst.msk [vmem:[#allocation2 + $0x1] ss:$2 sm:$0x3] %vm9308_vm7, %v5705_v24 }
 0xad9   :  { %5801 = vst.msk [vmem:[#allocation2 + $0x11] ss:$2 sm:$0x3] %vm9308_vm7, %v5712_v18  ;;  %v5747_v17 = vcombine.high %v5739_v44, %v5739_v44  ;;  %v5748_v48 = vcombine.high %v5746_v45, %v5746_v45  ;;  %v5755_v36 = vrot.slane %v5739_v44, %v11104_v22  ;;  %v5762_v0 = vrot.slane %v5746_v45, %v11104_v22 }
 0xada   :  { %v5729_v3 = vcombine.high %v5719_v40, %v5719_v40  ;;  %v5730_v4 = vcombine.high %v5726_v34, %v5726_v34  ;;  %5798 = vst.msk [vmem:[#allocation2 + $0x5] ss:$2 sm:$0x3] %vm9308_vm7, %v5719_v40  ;;  %5799 = vst.msk [vmem:[#allocation2 + $0x9] ss:$2 sm:$0x3] %vm9308_vm7, %v5727_v60 }
 0xadb   :  { %5802 = vst.msk [vmem:[#allocation2 + $0x15] ss:$2 sm:$0x3] %vm9308_vm7, %v5726_v34  ;;  %5803 = vst.msk [vmem:[#allocation2 + $0x19] ss:$2 sm:$0x3] %vm9308_vm7, %v5728_v62  ;;  %v5769_v43 = vrot.slane %v5747_v17, %v11104_v22  ;;  %v5776_v61 = vrot.slane %v5748_v48, %v11104_v22  ;;  %v5777_v54 = vcombine.high %v5755_v36, %v5755_v36 }
 0xadc   :  { %v5516_v47 = vsel %vm10498_vm15, %v5503_v53, 0.0  ;;  %v5518_v10 = vsel %vm10502_vm2, %v5501_v49, 0.0  ;;  %v5778_v2 = vcombine.high %v5762_v0, %v5762_v0  ;;  %5806 = vst.msk [vmem:[#allocation2 + $0x21] ss:$2 sm:$0x3] %vm9308_vm7, %v5755_v36 }
 0xadd   :  { %5814 = vst.msk [vmem:[#allocation2 + $0x31] ss:$2 sm:$0x3] %vm9308_vm7, %v5762_v0  ;;  %5800 = vst.msk [vmem:[#allocation2 + $0xd] ss:$2 sm:$0x3] %vm9308_vm7, %v5729_v3  ;;  %v5520_v63 = vadd.f32 %v5516_v47, %v10479_v42  ;;  %v5522_v7 = vadd.f32 %v5518_v10, %v10482_v13  ;;  %v5779_v8 = vcombine.high %v5769_v43, %v5769_v43 }
 0xade   :  { %5804 = vst.msk [vmem:[#allocation2 + $0x1d] ss:$2 sm:$0x3] %vm9308_vm7, %v5730_v4  ;;  %v5780_v6 = vcombine.high %v5776_v61, %v5776_v61  ;;  %5808 = vst.msk [vmem:[#allocation2 + $0x25] ss:$2 sm:$0x3] %vm9308_vm7, %v5769_v43 }
 0xadf   :  { %5810 = vst.msk [vmem:[#allocation2 + $0x29] ss:$2 sm:$0x3] %vm9308_vm7, %v5777_v54  ;;  %5816 = vst.msk [vmem:[#allocation2 + $0x35] ss:$2 sm:$0x3] %vm9308_vm7, %v5776_v61  ;;  %v5537_v56 = vcombine.low %v5519_v38, %v5520_v63  ;;  %v5538_v28 = vcombine.high %v5519_v38, %v5520_v63  ;;  %v5587_v52 = vcombine.low %v5521_v41, %v5522_v7 }
 0xae0   :  { %5818 = vst.msk [vmem:[#allocation2 + $0x39] ss:$2 sm:$0x3] %vm9308_vm7, %v5778_v2  ;;  %v5588_v42 = vcombine.high %v5521_v41, %v5522_v7  ;;  %5812 = vst.msk [vmem:[#allocation2 + $0x2d] ss:$2 sm:$0x3] %vm9308_vm7, %v5779_v8 }
 0xae1   :  { %5820 = vst.msk [vmem:[#allocation2 + $0x3d] ss:$2 sm:$0x3] %vm9308_vm7, %v5780_v6  ;;  %v5545_v13 = vrot.slane %v5537_v56, %v11104_v22  ;;  %v5552_v59 = vrot.slane %v5538_v28, %v11104_v22  ;;  %v5595_v14 = vrot.slane %v5587_v52, %v11104_v22 }
 0xae2   :  { %v5602_v55 = vrot.slane %v5588_v42, %v11104_v22 }
 0xae3   :  { %v5553_v19 = vcombine.high %v5545_v13, %v5545_v13  ;;  %v5554_v33 = vcombine.high %v5552_v59, %v5552_v59  ;;  %v5561_v37 = vrot.slane %v5545_v13, %v11104_v22  ;;  %v5568_v21 = vrot.slane %v5552_v59, %v11104_v22 }
 0xae4   :  { %v5603_v5 = vcombine.high %v5595_v14, %v5595_v14  ;;  %v5604_v1 = vcombine.high %v5602_v55, %v5602_v55  ;;  %v5611_v29 = vrot.slane %v5595_v14, %v11104_v22  ;;  %v5618_v30 = vrot.slane %v5602_v55, %v11104_v22 }
 0xae5   :  { %v5575_v38 = vrot.slane %v5553_v19, %v11104_v22  ;;  %v5582_v41 = vrot.slane %v5554_v33, %v11104_v22  ;;  %v5583_v46 = vcombine.high %v5561_v37, %v5561_v37  ;;  %v5584_v9 = vcombine.high %v5568_v21, %v5568_v21  ;;  %5653 = vst.msk [vmem:[#allocation2] ss:$2 sm:$0x3] %vm9308_vm7, %v5561_v37 }
 0xae6   :  { %5657 = vst.msk [vmem:[#allocation2 + $0x10] ss:$2 sm:$0x3] %vm9308_vm7, %v5568_v21  ;;  %v5625_v16 = vrot.slane %v5603_v5, %v11104_v22  ;;  %v5632_v12 = vrot.slane %v5604_v1, %v11104_v22  ;;  %v5633_v24 = vcombine.high %v5611_v29, %v5611_v29  ;;  %v5634_v18 = vcombine.high %v5618_v30, %v5618_v30 }
 0xae7   :  { %5662 = vst.msk [vmem:[#allocation2 + $0x20] ss:$2 sm:$0x3] %vm9308_vm7, %v5611_v29  ;;  %5670 = vst.msk [vmem:[#allocation2 + $0x30] ss:$2 sm:$0x3] %vm9308_vm7, %v5618_v30  ;;  %v5585_v44 = vcombine.high %v5575_v38, %v5575_v38  ;;  %v5586_v45 = vcombine.high %v5582_v41, %v5582_v41 }
 0xae8   :  { %5654 = vst.msk [vmem:[#allocation2 + $0x4] ss:$2 sm:$0x3] %vm9308_vm7, %v5575_v38  ;;  %5655 = vst.msk [vmem:[#allocation2 + $0x8] ss:$2 sm:$0x3] %vm9308_vm7, %v5583_v46  ;;  %v5635_v22 = vcombine.high %v5625_v16, %v5625_v16  ;;  %v5636_v49 = vcombine.high %v5632_v12, %v5632_v12 }
 0xae9   :  { %5658 = vst.msk [vmem:[#allocation2 + $0x14] ss:$2 sm:$0x3] %vm9308_vm7, %v5582_v41  ;;  %5659 = vst.msk [vmem:[#allocation2 + $0x18] ss:$2 sm:$0x3] %vm9308_vm7, %v5584_v9 }
 0xaea   :  { %5664 = vst.msk [vmem:[#allocation2 + $0x24] ss:$2 sm:$0x3] %vm9308_vm7, %v5625_v16  ;;  %5666 = vst.msk [vmem:[#allocation2 + $0x28] ss:$2 sm:$0x3] %vm9308_vm7, %v5633_v24 }
 0xaeb   :  { %5672 = vst.msk [vmem:[#allocation2 + $0x34] ss:$2 sm:$0x3] %vm9308_vm7, %v5632_v12  ;;  %5674 = vst.msk [vmem:[#allocation2 + $0x38] ss:$2 sm:$0x3] %vm9308_vm7, %v5634_v18 }
 0xaec   :  { %5656 = vst.msk [vmem:[#allocation2 + $0xc] ss:$2 sm:$0x3] %vm9308_vm7, %v5585_v44  ;;  %5660 = vst.msk [vmem:[#allocation2 + $0x1c] ss:$2 sm:$0x3] %vm9308_vm7, %v5586_v45 }
 0xaed   :  { %5668 = vst.msk [vmem:[#allocation2 + $0x2c] ss:$2 sm:$0x3] %vm9308_vm7, %v5635_v22  ;;  %5676 = vst.msk [vmem:[#allocation2 + $0x3c] ss:$2 sm:$0x3] %vm9308_vm7, %v5636_v49 }
 0xaee   :  { %v10617_v53 = vld [vmem:[#allocation2] sm:$0xf]  ;;  %v10619_v40 = vld [vmem:[#allocation2 + $0x10] sm:$0xf] }
 0xaef   :  { %v10621_v34 = vld [vmem:[#allocation2 + $0x20] sm:$0xf]  ;;  %v10623_v60 = vld [vmem:[#allocation2 + $0x30] sm:$0xf]  ;;  %v10625_v62 = vld [vmem:[#allocation2 + $0x4] sm:$0xf]  ;;  %v5951_v36 = vmul.f32 %v10617_v53, %v10617_v53  ;;  %v10635_v15 = vmul.f32 %v10619_v40, %v10619_v40 }
 0xaf0   :  { %v10627_v17 = vld [vmem:[#allocation2 + $0x8] sm:$0xf]  ;;  %v10629_v48 = vld [vmem:[#allocation2 + $0x14] sm:$0xf]  ;;  %v10639_v0 = vmul.f32 %v10621_v34, %v10621_v34  ;;  %v10643_v3 = vmul.f32 %v10623_v60, %v10623_v60  ;;  %v10645_v4 = vld [vmem:[#allocation2 + $0x18] sm:$0xf]  ;;  %v5853_v43 = vcombine.low %v10617_v53, %v10625_v62  ;;  %v5952_v54 = vmul.f32 %v10625_v62, %v10625_v62 }
 0xaf1   :  { %v10647_v47 = vld [vmem:[#allocation2 + $0x24] sm:$0xf]  ;;  %v10649_v10 = vld [vmem:[#allocation2 + $0x28] sm:$0xf]  ;;  %v5871_v61 = vcombine.low %v10619_v40, %v10629_v48  ;;  %v5953_v2 = vmul.f32 %v10627_v17, %v10627_v17  ;;  %v5956_v56 = vmul.f32 %v10629_v48, %v10629_v48  ;;  %v5957_v28 = vmul.f32 %v10645_v4, %v10645_v4 }
 0xaf2   :  { %v10663_v8 = vld [vmem:[#allocation2 + $0x34] sm:$0xf]  ;;  %v5889_v6 = vcombine.low %v10621_v34, %v10647_v47  ;;  %v5960_v52 = vmul.f32 %v10647_v47, %v10647_v47  ;;  %v10675_v13 = vld [vmem:[#allocation2 + $0x38] sm:$0xf]  ;;  %v5861_v55 = vrot.slane %v5853_v43, %v9328_v57  ;;  %v5961_v12 = vmul.f32 %v10649_v10, %v10649_v10 }
 0xaf3   :  { %v10659_v63 = vld [vmem:[#allocation2 + $0xc] sm:$0xf]  ;;  %v10661_v7 = vld [vmem:[#allocation2 + $0x1c] sm:$0xf]  ;;  %v5879_v33 = vrot.slane %v5871_v61, %v9328_v57  ;;  %v5907_v5 = vcombine.low %v10623_v60, %v10663_v8 }
 0xaf4   :  { %v10673_v42 = vld [vmem:[#allocation2 + $0x2c] sm:$0xf]  ;;  %v10677_v59 = vld [vmem:[#allocation2 + $0x3c] sm:$0xf]  ;;  %v5854_v14 = vcombine.low %v10627_v17, %v10659_v63  ;;  %v5872_v19 = vcombine.low %v10645_v4, %v10661_v7  ;;  %v5897_v21 = vrot.slane %v5889_v6, %v9328_v57  ;;  %v5954_v38 = vmul.f32 %v10659_v63, %v10659_v63 }
 0xaf5   :  { %v5890_v37 = vcombine.low %v10649_v10, %v10673_v42  ;;  %v5908_v1 = vcombine.low %v10675_v13, %v10677_v59  ;;  %v5958_v41 = vmul.f32 %v10661_v7, %v10661_v7  ;;  %v5915_v9 = vrot.slane %v5907_v5, %v9328_v57 }
 0xaf6   :  { %v5868_v29 = vrot.slane %v5854_v14, %v9328_v57  ;;  %v5886_v30 = vrot.slane %v5872_v19, %v9328_v57  ;;  %v5962_v19 = vmul.f32 %v10673_v42, %v10673_v42  ;;  %v5965_v5 = vmul.f32 %v10675_v13, %v10675_v13 }
 0xaf7   :  { %v5904_v46 = vrot.slane %v5890_v37, %v9328_v57  ;;  %v5922_v16 = vrot.slane %v5908_v1, %v9328_v57  ;;  %v5964_v37 = vmul.f32 %v10663_v8, %v10663_v8  ;;  %v5966_v1 = vmul.f32 %v10677_v59, %v10677_v59 }
 0xaf8   :  { %v5870_v24 = vcombine.high %v5861_v55, %v5868_v29  ;;  %v5888_v18 = vcombine.high %v5879_v33, %v5886_v30  ;;  %v5869_v44 = vcombine.low %v5861_v55, %v5868_v29  ;;  %v5887_v45 = vcombine.low %v5879_v33, %v5886_v30 }
 0xaf9   :  { %v5906_v22 = vcombine.high %v5897_v21, %v5904_v46  ;;  %v5924_v49 = vcombine.high %v5915_v9, %v5922_v16  ;;  %v5905_v43 = vcombine.low %v5897_v21, %v5904_v46  ;;  %v5923_v61 = vcombine.low %v5915_v9, %v5922_v16 }
 0xafa   :  { %v5942_v6 = vadd.f32 %v5888_v18, %v5870_v24  ;;  %v5933_v14 = vadd.f32 %v5887_v45, %v5869_v44  ;;  %v5983_v55 = vcombine.low %v5951_v36, %v5952_v54  ;;  %v5984_v33 = vcombine.low %v5953_v2, %v5954_v38 }
 0xafb   :  { %v6001_v21 = vcombine.low %v10635_v15, %v5956_v56  ;;  %v6002_v46 = vcombine.low %v5957_v28, %v5958_v41  ;;  %v6019_v24 = vcombine.low %v10639_v0, %v5960_v52  ;;  %v6020_v18 = vcombine.low %v5961_v12, %v5962_v19 }
 0xafc   :  { %v5943_v29 = vadd.f32 %v5942_v6, %v5906_v22  ;;  %v5934_v30 = vadd.f32 %v5933_v14, %v5905_v43  ;;  %v5991_v9 = vrot.slane %v5983_v55, %v9328_v57  ;;  %v5998_v16 = vrot.slane %v5984_v33, %v9328_v57 }
 0xafd   :  { %v6009_v51 = vrot.slane %v6001_v21, %v9328_v57  ;;  %v6016_v39 = vrot.slane %v6002_v46, %v9328_v57  ;;  %v6027_v54 = vrot.slane %v6019_v24, %v9328_v57  ;;  %v6034_v2 = vrot.slane %v6020_v18, %v9328_v57 }
 0xafe   :  { %v5944_v44 = vadd.f32 %v5943_v29, %v5924_v49  ;;  %v5935_v45 = vadd.f32 %v5934_v30, %v5923_v61  ;;  %v6000_v36 = vcombine.high %v5991_v9, %v5998_v16  ;;  %v6037_v15 = vcombine.low %v10643_v3, %v5964_v37 }
 0xaff   :  { %v6018_v38 = vcombine.high %v6009_v51, %v6016_v39  ;;  %v6038_v41 = vcombine.low %v5965_v5, %v5966_v1  ;;  %v6036_v22 = vcombine.high %v6027_v54, %v6034_v2  ;;  %v5999_v52 = vcombine.low %v5991_v9, %v5998_v16 }
 0xb00   :  { %v5945_v56 = vrot.slane %v5944_v44, 4  ;;  %v5936_v28 = vrot.slane %v5935_v45, 4  ;;  %v6045_v0 = vrot.slane %v6037_v15, %v9328_v57  ;;  %v6017_v12 = vcombine.low %v6009_v51, %v6016_v39 }
 0xb01   :  { %v6052_v61 = vrot.slane %v6038_v41, %v9328_v57  ;;  %v6072_v6 = vadd.f32 %v6018_v38, %v6000_v36  ;;  %v6035_v14 = vcombine.low %v6027_v54, %v6034_v2 }
 0xb02   :  { %v5946_v49 = vadd.f32 %v5945_v56, %v5944_v44  ;;  %v5937_v43 = vadd.f32 %v5936_v28, %v5935_v45  ;;  %v6063_v19 = vadd.f32 %v6017_v12, %v5999_v52 }
 0xb03   :  { %v6054_v29 = vcombine.high %v6045_v0, %v6052_v61  ;;  %v6073_v3 = vadd.f32 %v6072_v6, %v6036_v22  ;;  %v6053_v37 = vcombine.low %v6045_v0, %v6052_v61  ;;  %v6331_v22 = vand.u32 15, %v11045_v11 }
 0xb04   :  { %v5947_v55 = vrot.slane %v5946_v49, 2  ;;  %v5938_v33 = vrot.slane %v5937_v43, 2  ;;  %v6064_v30 = vadd.f32 %v6063_v19, %v6035_v14  ;;  %v6330_v0 = vand.u32 15, %v8989_v26 }
 0xb05   :  { %v6074_v1 = vadd.f32 %v6073_v3, %v6054_v29  ;;  %vm6333_vm7 = vcmp.eq.s32.totalorder %v6331_v22, %v8975_v20  ;;  %vm6335_vm5 = vcmp.eq.s32.totalorder %v6331_v22, %v8984_v23  ;;  %v6323_v29 = vld [vmem:[%s10873_s9] sm:$0x1]  ;;  %v8592_v3 = vld [vmem:[#allocation12] sm:$0xff]   ;;  %s8802_s9 = smov 96  }
 0xb06   :  { %v5948_v21 = vadd.f32 %v5947_v55, %v5946_v49  ;;  %v5939_v5 = vadd.f32 %v5938_v33, %v5937_v43  ;;  %v6065_v46 = vadd.f32 %v6064_v30, %v6053_v37  ;;  %vm6332_vm6 = vcmp.eq.s32.totalorder %v6330_v0, %v8975_v20  ;;  %vm8549_vm1 = vmpackc.low %vm6335_vm5, %vm6333_vm7  ;;  %v6327_v30 = vld [vmem:[%s10877_s13] sm:$0x1] }
 0xb07   :  { %v6075_v39 = vrot.slane %v6074_v1, 4  ;;  %vm6334_vm13 = vcmp.eq.s32.totalorder %v6330_v0, %v8984_v23  ;;  %8550 = vmatprep.subr.msk.bf16.mxu0 %vm8549_vm1, %v10956_v25  ;;  %8554 = vmatprep.subr.msk.bf16.mxu1 %vm8549_vm1, %v10956_v25 }
 0xb08   :  { %v5949_v24 = vrot.slane %v5948_v21, 1  ;;  %v5940_v9 = vrot.slane %v5939_v5, 1  ;;  %v6066_v51 = vrot.slane %v6065_v46, 4  ;;  %vm8551_vm4 = vmpackc.low %vm6334_vm13, %vm6332_vm6 }
 0xb09   :  { %v6076_v44 = vadd.f32 %v6075_v39, %v6074_v1  ;;  %v8593_v1 = vld [vmem:[#allocation12 + $0x48] sm:$0xff]   ;;  %v8597_v39 = vld [vmem:[#allocation12 + $0x58] sm:$0xff]  }
 0xb0a   :  { %v5950_v16 = vadd.f32 %v5949_v24, %v5948_v21  ;;  %v5941_v18 = vadd.f32 %v5940_v9, %v5939_v5  ;;  %v6067_v45 = vadd.f32 %v6066_v51, %v6065_v46  ;;  %v8594_v46 = vld [vmem:[#allocation12 + $0x8] sm:$0xff]   ;;  %v8595_v24 = vld [vmem:[#allocation12 + $0x50] sm:$0xff]   ;;  %v8598_v51 = vld [vmem:[#allocation12 + $0x18] sm:$0xff]  }
 0xb0b   :  { %v6077_v36 = vrot.slane %v6076_v44, 2  ;;  %v8596_v9 = vld [vmem:[#allocation12 + $0x10] sm:$0xff]  }
 0xb0c   :  { %6241 = vmatprep.mubr.f32.mxu0 %v5950_v16  ;;  %v6068_v54 = vrot.slane %v6067_v45, 2  ;;  %v8599_v16 = vld [vmem:[#allocation12 + $0x60] sm:$0xff]  }
 0xb0d   :  { %6242 = vmatmul.mubr.f32.vlgmr.msra.gmra.mrb[26].mxu0 %v5941_v18  ;;  %v6078_v2 = vadd.f32 %v6077_v36, %v6076_v44  ;;  %v8600_v18 = vld [vmem:[#allocation12 + $0x20] sm:$0xff]   ;;  %v8601_v44 = vld [vmem:[#allocation12 + $0x68] sm:$0xff]   ;;  %v8603_v36 = vld [vmem:[#allocation12 + $0x70] sm:$0xff]  }
 0xb0e   :  { %6408 = vmatprep.mubr.f32.mxu0 %v10985_v32  ;;  %v6069_v15 = vadd.f32 %v6068_v54, %v6067_v45  ;;  %8552 = vmatpush1.bf16.msk.msra.mxu0 %vm8551_vm4, %v10956_v25  ;;  %v8602_v45 = vld [vmem:[#allocation12 + $0x28] sm:$0xff]   ;;  %v8604_v54 = vld [vmem:[#allocation12 + $0x30] sm:$0xff]  }
 0xb0f   :  { %v6079_v56 = vrot.slane %v6078_v2, 1 }
 0xb10   :  { %v6070_v28 = vrot.slane %v6069_v15, 1 }
 0xb11   :  { %v6080_v38 = vadd.f32 %v6079_v56, %v6078_v2  ;;  %v8605_v2 = vld [vmem:[#allocation12 + $0x78] sm:$0xff]  }
 0xb12   :  { %v6071_v41 = vadd.f32 %v6070_v28, %v6069_v15  ;;  %v8606_v15 = vld [vmem:[#allocation12 + $0x38] sm:$0xff]  }
 0xb13   :  { %6311 = vmatprep.mubr.f32.mxu1 %v6080_v38 }
 0xb14   :  { %6312 = vmatmul.mubr.f32.vlgmr.msra.gmra.mrb[38].mxu1 %v6071_v41 }
 0xb15   :  { %6482 = vmatprep.mubr.f32.mxu1 %v10985_v32  ;;  %8556 = vmatpush1.bf16.msk.msra.mxu1 %vm8551_vm4, %v10956_v25  ;;  %v8591_v32 = vld [vmem:[#allocation12 + $0x40] sm:$0xff]  }
 0xb16   :  { %8153 = vmatprep.subr.bf16.mxu0 %v8591_v32 }
 0xbe0   :  { %v8115_v26 = vpop.f32.mrb[26].mxu0 }
 0xbe1   :  { %v8116_v11 = vpop.f32.mrb[27].mxu0 }
 0xbe2   :  { %v8117_v52 = vadd.f32 %v8116_v11, %v8115_v26 }
 0xbe4   :  { %v6318_v12 = vmul.f32 0.001953125, %v8117_v52 }
 0xbe6   :  { %v6320_v61 = vmul.f32 %v6318_v12, %v6318_v12 }
 0xbe7   :  { %v8150_v49 = vpop.f32.mrb[38].mxu1 }
 0xbe8   :  { %v8151_v43 = vpop.f32.mrb[39].mxu1 }
 0xbe9   :  { %v8152_v6 = vadd.f32 %v8151_v43, %v8150_v49 }
 0xbeb   :  { %v6319_v14 = vmul.f32 0.001953125, %v8152_v6 }
 0xbed   :  { %v6321_v19 = vsub.f32 %v6319_v14, %v6320_v61 }
 0xbef   :  { %v6322_v55 = vmax.f32 %v6321_v19, 0.0 }
 0xbf1   :  { %v6324_v33 = vadd.f32 1e-05, %v6322_v55 }
 0xbf3   :  { %8613 = vrsqrt.f32 %v6324_v33 }
 0xbfd   :  { %v8614_v25 = vpop.eup %8613 }
 0xbfe   :  { %v6326_v37 = vmul.f32 %v8614_v25, %v6323_v29 }
 0xc00   :  { %7850 = vmatmul.mubr.msk.f32.vlgmr.msra.gmra.mrb[36].mxu0 %vm6340_vm8, %v6326_v37  ;;  %v6328_v21 = vmul.f32 %v6326_v37, %v6318_v12 }
 0xc01   :  { %8154 = vmatpush3.bf16.msra.mxu0 %v8592_v3 }
 0xc02   :  { %v6329_v5 = vsub.f32 %v6327_v30, %v6328_v21  ;;  %8155 = vmatprep.subr.bf16.mxu0 %v8593_v1 }
 0xc04   :  { %7855 = vmatmul.mubr.msk.f32.vlgmr.msra.gmra.mrb[48].mxu1 %vm6340_vm8, %v6329_v5 }
 0xc05   :  { %8156 = vmatpush3.bf16.msra.mxu0 %v8594_v46 }
 0xc06   :  { %8157 = vmatprep.subr.bf16.mxu0 %v8595_v24 }
 0xc09   :  { %8158 = vmatpush3.bf16.msra.mxu0 %v8596_v9 }
 0xc0a   :  { %8159 = vmatprep.subr.bf16.mxu0 %v8597_v39 }
 0xc0d   :  { %8160 = vmatpush3.bf16.msra.mxu0 %v8598_v51 }
 0xc0e   :  { %8161 = vmatprep.subr.bf16.mxu0 %v8599_v16 }
 0xc11   :  { %8162 = vmatpush3.bf16.msra.mxu0 %v8600_v18 }
 0xc12   :  { %8163 = vmatprep.subr.bf16.mxu0 %v8601_v44 }
 0xc15   :  { %8164 = vmatpush3.bf16.msra.mxu0 %v8602_v45 }
 0xc16   :  { %8165 = vmatprep.subr.bf16.mxu0 %v8603_v36 }
 0xc19   :  { %8166 = vmatpush3.bf16.msra.mxu0 %v8604_v54 }
 0xc1a   :  { %8167 = vmatprep.subr.bf16.mxu0 %v8605_v2 }
 0xc1d   :  { %8168 = vmatpush3.bf16.msra.mxu0 %v8606_v15 }
 0xcd3   :  { %v6410_v56 = vpop.f32.mrb[36].mxu0 }
 0xcd4   :  { %v6492_v28 = vrot.slane %v6410_v56, %v9439_v50  ;;  %v6412_v38 = vpop.f32.mrb[37].mxu0 }
 0xcd5   :  { %v6496_v41 = vrot.slane %v6412_v38, %v9439_v50 }
 0xcd7   :  { %v6499_v22 = vcombine.low %v6492_v28, %v6496_v41  ;;  %v6500_v0 = vcombine.high %v6492_v28, %v6496_v41  ;;  %v6484_v32 = vpop.f32.mrb[48].mxu1 }
 0xcd8   :  { %v6486_v26 = vpop.f32.mrb[49].mxu1  ;;  %v6540_v12 = vrot.slane %v6484_v32, %v9439_v50 }
 0xcd9   :  { %v6507_v11 = vrot.slane %v6499_v22, %v9328_v57  ;;  %v6514_v52 = vrot.slane %v6500_v0, %v9328_v57  ;;  %v6544_v49 = vrot.slane %v6486_v26, %v9439_v50 }
 0xcdb   :  { %v6515_v43 = vcombine.high %v6507_v11, %v6507_v11  ;;  %v6516_v61 = vcombine.high %v6514_v52, %v6514_v52  ;;  %v6521_v6 = vmul.f32 %v6507_v11, %v10617_v53  ;;  %v6523_v14 = vmul.f32 %v6514_v52, %v10627_v17 }
 0xcdc   :  { %v6525_v19 = vmul.f32 %v6507_v11, %v10619_v40  ;;  %v6527_v55 = vmul.f32 %v6514_v52, %v10645_v4  ;;  %v6529_v33 = vmul.f32 %v6507_v11, %v10621_v34  ;;  %v6531_v29 = vmul.f32 %v6514_v52, %v10649_v10 }
 0xcdd   :  { %v6547_v25 = vcombine.low %v6540_v12, %v6544_v49  ;;  %v6548_v3 = vcombine.high %v6540_v12, %v6544_v49  ;;  %v6533_v37 = vmul.f32 %v6507_v11, %v10623_v60  ;;  %v6535_v50 = vmul.f32 %v6514_v52, %v10675_v13 }
 0xcde   :  { %v6522_v30 = vmul.f32 %v6515_v43, %v10625_v62  ;;  %v6524_v53 = vmul.f32 %v6516_v61, %v10659_v63  ;;  %v6526_v4 = vmul.f32 %v6515_v43, %v10629_v48  ;;  %v6528_v34 = vmul.f32 %v6516_v61, %v10661_v7 }
 0xcdf   :  { %v6555_v17 = vrot.slane %v6547_v25, %v9328_v57  ;;  %v6562_v40 = vrot.slane %v6548_v3, %v9328_v57  ;;  %v6530_v10 = vmul.f32 %v6515_v43, %v10647_v47  ;;  %v6532_v21 = vmul.f32 %v6516_v61, %v10673_v42 }
 0xce0   :  { %v6534_v60 = vmul.f32 %v6515_v43, %v10663_v8  ;;  %v6536_v13 = vmul.f32 %v6516_v61, %v10677_v59 }
 0xce1   :  { %v6563_v5 = vcombine.high %v6555_v17, %v6555_v17  ;;  %v6564_v62 = vcombine.high %v6562_v40, %v6562_v40  ;;  %v6569_v1 = vadd.f32 %v6555_v17, %v6521_v6  ;;  %v6571_v63 = vadd.f32 %v6562_v40, %v6523_v14 }
 0xce2   :  { %v6573_v46 = vadd.f32 %v6555_v17, %v6525_v19  ;;  %v6575_v24 = vadd.f32 %v6562_v40, %v6527_v55  ;;  %v10764_v9 = vadd.f32 %v6555_v17, %v6529_v33  ;;  %v10766_v39 = vadd.f32 %v6562_v40, %v6531_v29 }
 0xce3   :  { %v6570_v48 = vadd.f32 %v6563_v5, %v6522_v30  ;;  %v6572_v7 = vadd.f32 %v6564_v62, %v6524_v53  ;;  %v6574_v51 = vadd.f32 %v6563_v5, %v6526_v4  ;;  %v6576_v47 = vadd.f32 %v6564_v62, %v6528_v34 }
 0xce4   :  { %vm6585_vm9 = vcmp.gt.f32.partialorder %v6569_v1, 0.0  ;;  %vm6587_vm12 = vcmp.gt.f32.partialorder %v6571_v63, 0.0  ;;  %vm6589_vm14 = vcmp.gt.f32.partialorder %v6573_v46, 0.0  ;;  %vm6591_vm15 = vcmp.gt.f32.partialorder %v6575_v24, 0.0 }
 0xce5   :  { %vm6586_vm2 = vcmp.gt.f32.partialorder %v6570_v48, 0.0  ;;  %vm6588_vm7 = vcmp.gt.f32.partialorder %v6572_v7, 0.0  ;;  %vm6590_vm5 = vcmp.gt.f32.partialorder %v6574_v51, 0.0  ;;  %vm6592_vm6 = vcmp.gt.f32.partialorder %v6576_v47, 0.0 }
 0xce6   :  { %v6601_v8 = vmul.f32 0.2, %v6569_v1  ;;  %v6602_v42 = vmul.f32 0.2, %v6570_v48  ;;  %v6603_v59 = vmul.f32 0.2, %v6571_v63  ;;  %v6578_v16 = vadd.f32 %v6563_v5, %v6530_v10 }
 0xce7   :  { %v6604_v18 = vmul.f32 0.2, %v6572_v7  ;;  %v6605_v44 = vmul.f32 0.2, %v6573_v46  ;;  %v6606_v45 = vmul.f32 0.2, %v6574_v51  ;;  %v6580_v36 = vadd.f32 %v6564_v62, %v6532_v21 }
 0xce8   :  { %v6607_v54 = vmul.f32 0.2, %v6575_v24  ;;  %v6608_v2 = vmul.f32 0.2, %v6576_v47  ;;  %v6617_v15 = vsel %vm6585_vm9, %v6569_v1, %v6601_v8  ;;  %v6618_v56 = vsel %vm6586_vm2, %v6570_v48, %v6602_v42 }
 0xce9   :  { %v6619_v28 = vsel %vm6587_vm12, %v6571_v63, %v6603_v59  ;;  %v6620_v38 = vsel %vm6588_vm7, %v6572_v7, %v6604_v18  ;;  %v6621_v41 = vsel %vm6589_vm14, %v6573_v46, %v6605_v44  ;;  %v6622_v22 = vsel %vm6590_vm5, %v6574_v51, %v6606_v45 }
 0xcea   :  { %v6623_v0 = vsel %vm6591_vm15, %v6575_v24, %v6607_v54  ;;  %v6624_v32 = vsel %vm6592_vm6, %v6576_v47, %v6608_v2  ;;  %v6649_v26 = vcombine.low %v6617_v15, %v6618_v56  ;;  %v6650_v11 = vcombine.low %v6619_v28, %v6620_v38 }
 0xceb   :  { %v6667_v52 = vcombine.low %v6621_v41, %v6622_v22  ;;  %v6668_v12 = vcombine.low %v6623_v0, %v6624_v32  ;;  %v6581_v49 = vadd.f32 %v6555_v17, %v6533_v37  ;;  %v6582_v43 = vadd.f32 %v6563_v5, %v6534_v60 }
 0xcec   :  { %v6657_v61 = vrot.slane %v6649_v26, %v9328_v57  ;;  %v6664_v6 = vrot.slane %v6650_v11, %v9328_v57  ;;  %v6583_v14 = vadd.f32 %v6562_v40, %v6535_v50  ;;  %v6584_v19 = vadd.f32 %v6564_v62, %v6536_v13 }
 0xced   :  { %v6675_v55 = vrot.slane %v6667_v52, %v9328_v57  ;;  %v6682_v33 = vrot.slane %v6668_v12, %v9328_v57  ;;  %vm6593_vm13 = vcmp.gt.f32.partialorder %v10764_v9, 0.0  ;;  %vm6594_vm1 = vcmp.gt.f32.partialorder %v6578_v16, 0.0 }
 0xcee   :  { %v6666_v29 = vcombine.high %v6657_v61, %v6664_v6  ;;  %v6665_v25 = vcombine.low %v6657_v61, %v6664_v6  ;;  %vm6595_vm4 = vcmp.gt.f32.partialorder %v10766_v39, 0.0  ;;  %vm6596_vm8 = vcmp.gt.f32.partialorder %v6580_v36, 0.0 }
 0xcef   :  { %v6684_v3 = vcombine.high %v6675_v55, %v6682_v33  ;;  %v6683_v37 = vcombine.low %v6675_v55, %v6682_v33  ;;  %vm6597_vm9 = vcmp.gt.f32.partialorder %v6581_v49, 0.0  ;;  %vm6598_vm12 = vcmp.gt.f32.partialorder %v6582_v43, 0.0 }
 0xcf0   :  { %vm6599_vm14 = vcmp.gt.f32.partialorder %v6583_v14, 0.0  ;;  %vm6600_vm15 = vcmp.gt.f32.partialorder %v6584_v19, 0.0  ;;  %v6609_v50 = vmul.f32 0.2, %v10764_v9  ;;  %v6610_v30 = vmul.f32 0.2, %v6578_v16 }
 0xcf1   :  { %v6730_v53 = vpack.c.bf16 %v6684_v3, %v6666_v29  ;;  %v6729_v17 = vpack.c.bf16 %v6683_v37, %v6665_v25  ;;  %v6611_v40 = vmul.f32 0.2, %v10766_v39  ;;  %v6612_v4 = vmul.f32 0.2, %v6580_v36 }
 0xcf2   :  { %v6613_v34 = vmul.f32 0.2, %v6581_v49  ;;  %v6614_v10 = vmul.f32 0.2, %v6582_v43  ;;  %v6615_v21 = vmul.f32 0.2, %v6583_v14  ;;  %v6625_v13 = vsel %vm6593_vm13, %v10764_v9, %v6609_v50 }
 0xcf3   :  { %6893 = vmatprep.mubr.bf16.mxu0 %v6730_v53  ;;  %v6616_v60 = vmul.f32 0.2, %v6584_v19  ;;  %v6626_v5 = vsel %vm6594_vm1, %v6578_v16, %v6610_v30  ;;  %v6628_v62 = vsel %vm6596_vm8, %v6580_v36, %v6612_v4  ;;  %v6627_v1 = vsel %vm6595_vm4, %v10766_v39, %v6611_v40 }
 0xcf4   :  { %6894 = vmatmul.mubr.bf16.vlgmr.msra.gmra.mrb[40].mxu0 %v6729_v17  ;;  %v6629_v63 = vsel %vm6597_vm9, %v6581_v49, %v6613_v34  ;;  %v6630_v46 = vsel %vm6598_vm12, %v6582_v43, %v6614_v10  ;;  %v6685_v24 = vcombine.low %v6625_v13, %v6626_v5  ;;  %v6631_v48 = vsel %vm6599_vm14, %v6583_v14, %v6615_v21 }
 0xcf5   :  { %v6632_v7 = vsel %vm6600_vm15, %v6584_v19, %v6616_v60  ;;  %v6686_v51 = vcombine.low %v6627_v1, %v6628_v62  ;;  %v6703_v9 = vcombine.low %v6629_v63, %v6630_v46  ;;  %vm6971_vm2 = vcmp.ne.s32.totalorder %v6082_v27, 15 }
 0xcf6   :  { %v6693_v47 = vrot.slane %v6685_v24, %v9328_v57  ;;  %v6704_v8 = vcombine.low %v6631_v48, %v6632_v7  ;;  %vm6944_vm7 = vcmp.ne.s32.totalorder %v6083_v58, 0  ;;  %v11106_v53 = vand.u32 15, %v8975_v20 }
 0xcf7   :  { %v6700_v42 = vrot.slane %v6686_v51, %v9328_v57  ;;  %v6711_v59 = vrot.slane %v6703_v9, %v9328_v57  ;;  %v11107_v4 = vand.u32 15, %v9011_v35 }
 0xcf8   :  { %v6718_v39 = vrot.slane %v6704_v8, %v9328_v57  ;;  %vm6942_vm5 = vcmp.ne.s32.totalorder %v11106_v53, 0 }
 0xcf9   :  { %v6702_v16 = vcombine.high %v6693_v47, %v6700_v42  ;;  %v6701_v18 = vcombine.low %v6693_v47, %v6700_v42  ;;  %vm6973_vm6 = vcmp.ne.s32.totalorder %v11107_v4, 15  ;;  %v7872_v42 = vld [vmem:[%s10878_s14] ss:$0 sm:$0xff]  ;;  %s8803_s14 = smov [#allocation14]  }
 0xcfa   :  { %v6720_v44 = vcombine.high %v6711_v59, %v6718_v39  ;;  %v6719_v45 = vcombine.low %v6711_v59, %v6718_v39  ;;  %s7058_s23 = sshll.u32 %s8803_s14, 4  ;;  %s7059_s23 = int_to_ptr.vmem [resolvable:$true] %s7058_s23 }
 0xcfb   :  { %s8755_s0 = scalar_lea.vmem %s7059_s23, 512  ;;  %p8760_p7 = scmp.lt.s32.totalorder %s7059_s23, %s7059_s23 }
 0xcfc   :  { %v6732_v36 = vpack.c.bf16 %v6720_v44, %v6702_v16  ;;  %v6731_v54 = vpack.c.bf16 %v6719_v45, %v6701_v18  ;;  %p8756_p6 = scmp.ne.s32.totalorder %s7059_s23, %s8755_s0  ;;  %p8761_p8 = scmp.lt.s32.totalorder %s8755_s0, %s8755_s0 }
 0xcfe   :  { %6901 = vmatprep.mubr.bf16.mxu0 %v6732_v36  ;;  %p8762_p9 = por %p8761_p8, %p8760_p7 }
 0xcff   :  { %6902 = vmatmul.mubr.bf16.gmra.mrb[44].mxu0 %v6731_v54 }
 0xd00   :  { %p8763_p10 = pnand %p8762_p9, %p8756_p6 }
 0xdc7   :  { %v8169_v2 = vpop.f32.mrb[40].mxu0 }
 0xdc8   :  { %v8170_v15 = vpop.f32.mrb[41].mxu0 }
 0xdc9   :  { %v10799_v56 = vadd.f32 %v8170_v15, %v8169_v2  ;;  %v8172_v28 = vpop.f32.mrb[42].mxu0 }
 0xdca   :  { %v8173_v38 = vpop.f32.mrb[43].mxu0 }
 0xdcb   :  { %v8174_v41 = vadd.f32 %v8173_v38, %v8172_v28  ;;  %6914 = vrot.lane.b32.xlu0 %v10799_v56, %s8789_s29  ;;  %v6934_v57 = vrot.slane %v10799_v56, 1 }
 0xdcd   :  { %v6935_v22 = vrot.slane %v8174_v41, 1 }
 0xdcf   :  { %6916 = vrot.lane.b32.xlu0 %v8174_v41, %s8789_s29  ;;  %v6940_v32 = vsel %vm5508_vm11, %v6934_v57, %v6935_v22 }
 0xdd2   :  { %v8175_v0 = vpop.f32.mrb[44].mxu0 }
 0xdd3   :  { %v8176_v26 = vpop.f32.mrb[45].mxu0  ;;  %6982 = vrot.lane.b32.xlu0 %v6940_v32, %s8795_s4 }
 0xdd4   :  { %v8177_v11 = vadd.f32 %v8176_v26, %v8175_v0  ;;  %v8178_v52 = vpop.f32.mrb[46].mxu0 }
 0xdd5   :  { %v8179_v12 = vpop.f32.mrb[47].mxu0 }
 0xdd6   :  { %v8180_v49 = vadd.f32 %v8179_v12, %v8178_v52  ;;  %6918 = vrot.lane.b32.xlu1 %v8177_v11, %s8789_s29  ;;  %v6936_v43 = vrot.slane %v8177_v11, 1 }
 0xdd8   :  { %v6939_v61 = vsel %vm5508_vm11, %v6935_v22, %v6936_v43  ;;  %v6937_v50 = vrot.slane %v8180_v49, 1 }
 0xdd9   :  { %v6975_v6 = vsel %vm6971_vm2, %v6939_v61, 0.0 }
 0xdda   :  { %6920 = vrot.lane.b32.xlu1 %v8180_v49, %s8789_s29  ;;  %v6941_v58 = vsel %vm5508_vm11, %v6937_v50, %v6934_v57  ;;  %v6938_v60 = vsel %vm5508_vm11, %v6936_v43, %v6937_v50 }
 0xddb   :  { %v6977_v10 = vsel %vm6973_vm6, %v6941_v58, 0.0 }
 0xdde   :  { %6984 = vrot.lane.b32.xlu1 %v6975_v6, %s8795_s4 }
 0xe3d   :  { %v6915_v14 = vpop.permute.xlu0 %6914 }
 0xe3e   :  { %v6926_v55 = vrot.slane %v6915_v14, 7 }
 0xe41   :  { %v6917_v19 = vpop.permute.xlu0 %6916 }
 0xe42   :  { %v6927_v33 = vrot.slane %v6917_v19, 7 }
 0xe44   :  { %v6932_v29 = vsel %vm5499_vm3, %v6926_v55, %v6927_v33 }
 0xe45   :  { %6956 = vrot.lane.b32.xlu1 %v6932_v29, %s8789_s29  ;;  %v6983_v21 = vpop.permute.xlu0 %6982 }
 0xe46   :  { %v6994_v5 = vadd.f32 %v10799_v56, %v6983_v21 }
 0xe48   :  { %v6919_v25 = vpop.permute.xlu1 %6918 }
 0xe49   :  { %v6928_v3 = vrot.slane %v6919_v25, 7 }
 0xe4b   :  { %v6931_v23 = vsel %vm5499_vm3, %v6927_v33, %v6928_v3 }
 0xe4c   :  { %v6921_v27 = vpop.permute.xlu1 %6920  ;;  %v6948_v37 = vsel %vm6944_vm7, %v6931_v23, 0.0 }
 0xe4d   :  { %v6929_v30 = vrot.slane %v6921_v27, 7  ;;  %6958 = vrot.lane.b32.xlu0 %v6948_v37, %s8789_s29 }
 0xe4f   :  { %v6930_v17 = vsel %vm5499_vm3, %v6928_v3, %v6929_v30  ;;  %v6933_v40 = vsel %vm5499_vm3, %v6929_v30, %v6926_v55 }
 0xe50   :  { %6960 = vrot.lane.b32.xlu1 %v6930_v17, %s8789_s29  ;;  %v6946_v31 = vsel %vm6942_vm5, %v6933_v40, 0.0  ;;  %v6985_v34 = vpop.permute.xlu1 %6984 }
 0xe51   :  { %6954 = vrot.lane.b32.xlu0 %v6946_v31, %s8789_s29  ;;  %v6995_v13 = vadd.f32 %v8174_v41, %v6985_v34 }
 0xe54   :  { %6988 = vrot.lane.b32.xlu1 %v6977_v10, %s8795_s4 }
 0xe55   :  { %6986 = vrot.lane.b32.xlu0 %v6938_v60, %s8795_s4 }
 0xe58   :  { %7020 = vrot.lane.b32.xlu1 %v6995_v13, %s8802_s9 }
 0xe59   :  { %7018 = vrot.lane.b32.xlu0 %v6994_v5, %s8802_s9 }
 0xeb7   :  { %v6957_v35 = vpop.permute.xlu1 %6956 }
 0xeb8   :  { %v6967_v62 = vadd.f32 %v8174_v41, %v6957_v35 }
 0xeba   :  { %7004 = vrot.lane.b32.xlu1 %v6967_v62, %s8802_s9 }
 0xebf   :  { %v6959_v1 = vpop.permute.xlu0 %6958 }
 0xec0   :  { %v6968_v63 = vadd.f32 %v8177_v11, %v6959_v1 }
 0xec2   :  { %v6961_v46 = vpop.permute.xlu1 %6960  ;;  %7006 = vrot.lane.b32.xlu0 %v6968_v63, %s8802_s9 }
 0xec3   :  { %v6969_v24 = vadd.f32 %v8180_v49, %v6961_v46  ;;  %v6955_v48 = vpop.permute.xlu0 %6954 }
 0xec4   :  { %v6966_v20 = vadd.f32 %v10799_v56, %v6955_v48 }
 0xec5   :  { %7008 = vrot.lane.b32.xlu1 %v6969_v24, %s8802_s9 }
 0xec6   :  { %v6989_v7 = vpop.permute.xlu1 %6988  ;;  %7002 = vrot.lane.b32.xlu0 %v6966_v20, %s8802_s9 }
 0xec7   :  { %v6997_v51 = vadd.f32 %v8180_v49, %v6989_v7  ;;  %v6987_v9 = vpop.permute.xlu0 %6986 }
 0xec8   :  { %v6996_v47 = vadd.f32 %v8177_v11, %v6987_v9 }
 0xec9   :  { %7024 = vrot.lane.b32.xlu1 %v6997_v51, %s8802_s9 }
 0xeca   :  { %7022 = vrot.lane.b32.xlu0 %v6996_v47, %s8802_s9  ;;  %v7021_v8 = vpop.permute.xlu1 %7020 }
 0xecb   :  { %v7019_v18 = vpop.permute.xlu0 %7018 }
 0xf2c   :  { %v7005_v59 = vpop.permute.xlu1 %7004 }
 0xf2d   :  { %v7031_v39 = vsel %vm182_vm0, %v7005_v59, %v7021_v8 }
 0xf2e   :  { %v7042_v16 = vadd.f32 %v7872_v42, %v7031_v39 }
 0xf30   :  { %8615 = vtanh.f32 %v7042_v16 }
 0xf34   :  { %v7007_v44 = vpop.permute.xlu0 %7006 }
 0xf37   :  { %v7009_v45 = vpop.permute.xlu1 %7008 }
 0xf38   :  { %v7003_v36 = vpop.permute.xlu0 %7002 }
 0xf39   :  { %v7030_v54 = vsel %vm182_vm0, %v7003_v36, %v7019_v18 }
 0xf3a   :  { %v8616_v2 = vpop.eup %8615  ;;  %v7041_v15 = vadd.f32 %v7872_v42, %v7030_v54 }
 0xf3b   :  { %7050 = vst.msk [vmem:[#allocation14 + $0x8] sm:$0xff] %vm2494_vm10, %v8616_v2  ;;  %v7025_v56 = vpop.permute.xlu1 %7024 }
 0xf3c   :  { %8617 = vtanh.f32 %v7041_v15  ;;  %v7033_v28 = vsel %vm182_vm0, %v7009_v45, %v7025_v56  ;;  %v7023_v38 = vpop.permute.xlu0 %7022 }
 0xf3d   :  { %v7044_v41 = vadd.f32 %v7872_v42, %v7033_v28  ;;  %v7032_v22 = vsel %vm182_vm0, %v7007_v44, %v7023_v38 }
 0xf3e   :  { %v7043_v57 = vadd.f32 %v7872_v42, %v7032_v22 }
 0xf3f   :  { %8619 = vtanh.f32 %v7044_v41 }
 0xf40   :  { %8621 = vtanh.f32 %v7043_v57 }
 0xf46   :  { %v8618_v0 = vpop.eup %8617 }
 0xf47   :  { %7049 = vst.msk [vmem:[#allocation14] sm:$0xff] %vm2494_vm10, %v8618_v0 }
 0xf49   :  { %v8620_v32 = vpop.eup %8619 }
 0xf4a   :  { %v8622_v26 = vpop.eup %8621  ;;  %7052 = vst.msk [vmem:[#allocation14 + $0x18] sm:$0xff] %vm2494_vm10, %v8620_v32 }
 0xf4b   :  { %7051 = vst.msk [vmem:[#allocation14 + $0x10] sm:$0xff] %vm2494_vm10, %v8622_v26 }
 0xf4c   :  { %8766 = shalt.err (!%p8763_p10)
}
 0xf4d   :  { %s11108_s25 = sld [smem:[#allocation32_spill]] }
 0xf53   :  { %s8767_s3 = scalar_lea.hbm %s11108_s25, 512 }
 0xf54   :  { %p8768_p11 = scmp.ne.s32.totalorder %s11108_s25, %s8767_s3  ;;  %p8771_p12 = scmp.lt.u32.totalorder %s8767_s3, %s11108_s25 }
 0xf56   :  { %p8773_p13 = pnand %p8771_p12, %p8768_p11 }
 0xf58   :  { %8776 = shalt.err (!%p8773_p13)
}
 0xf59   :  { %s8804_s26 = smov 128   ;;  %s8805_s5 = smov 8  }
 0xf5a   :  { %7064 = dma.vmem_to_hbm [thread:$0]  %s7059_s23, 512, %s11108_s25, [#allocation5], %s8804_s26, %s8804_s26, %s8805_s5  }
 0xf5b   :  { %8785 = dma.done.wait [#allocation5], 512  }
 0xf5c   :  { %8786 = vsyncadd [#allocation5], 4294966784 }
 0xf5d   :  { %7068 = vsyncpa [#allocation4], 1 }
 0xf5e   :  { %7069 = vsyncpa [#allocation7], 1 }
 0xf5f   :  { %7070 = vsyncpa [#allocation10], 1 }
 0xf60   :  { %7071 = vsyncpa [#allocation13], 1 }
 0xf61   :  { %7072 = vsyncpa [#allocation5], 1 }

</bundles_post_ra>
